<compile_context>
chip_gen: v5e
topology: v5e:2x2
jax: 0.10.0
libtpu: 0.0.40
codegen_flags: <defaults>
</compile_context>

<pallas_src>
import functools

import jax
import jax.numpy as jnp
from jax.experimental import pallas as pl
from jax.experimental.pallas import tpu as pltpu


# ---------------------------------------------------------------------------
# Fused bidirectional GRU recurrence kernel for one layer (single invocation).
#
#   gi_ref : (2, 3, T, B, H)  precomputed x @ W_ih^T + b_ih  (dir, gate r|z|n, t, b, h)
#   whh_ref: (2, 3, H, H)     per-direction, per-gate hidden weight tiles (W_hh^T blocks)
#   bhh_ref: (2, 3, 1, H)     per-direction, per-gate hidden bias
#   out_ref: (B, T, 2H)       fwd hidden in [..., :H], bwd hidden in [..., H:]
# ---------------------------------------------------------------------------
def _bigru_layer_kernel(gi_ref, whh_ref, bhh_ref, out_ref):
    _, _, T, B, H = gi_ref.shape

    # Hoist weight loads and bias broadcasts out of the unrolled time loop.
    w = [[whh_ref[d, g] for g in range(3)] for d in range(2)]                   # (H, H)
    b = [[jnp.broadcast_to(bhh_ref[d, g], (B, H)) for g in range(3)]            # (B, H)
         for d in range(2)]

    h_f = jnp.zeros((B, H), jnp.float32)
    h_b = jnp.zeros((B, H), jnp.float32)

    # T is small and static -> fully unroll; all indices below are static
    # (forward walks t, backward walks T-1-t), so every load/store is statically
    # scheduled and the two direction chains interleave.
    for t in range(T):
        tb = T - 1 - t

        # Six independent (B,H)@(H,H) matmuls per step -- they pipeline on the MXU
        # and each direction's chain hides under the other's gate math.
        ghf_r = jnp.dot(h_f, w[0][0], preferred_element_type=jnp.float32) + b[0][0]
        ghf_z = jnp.dot(h_f, w[0][1], preferred_element_type=jnp.float32) + b[0][1]
        ghf_n = jnp.dot(h_f, w[0][2], preferred_element_type=jnp.float32) + b[0][2]
        ghb_r = jnp.dot(h_b, w[1][0], preferred_element_type=jnp.float32) + b[1][0]
        ghb_z = jnp.dot(h_b, w[1][1], preferred_element_type=jnp.float32) + b[1][1]
        ghb_n = jnp.dot(h_b, w[1][2], preferred_element_type=jnp.float32) + b[1][2]

        # PyTorch gate order: r, z, n
        r_f = jax.nn.sigmoid(gi_ref[0, 0, t] + ghf_r)
        z_f = jax.nn.sigmoid(gi_ref[0, 1, t] + ghf_z)
        n_f = jnp.tanh(gi_ref[0, 2, t] + r_f * ghf_n)
        h_f = n_f + z_f * (h_f - n_f)                       # == (1-z)*n + z*h

        r_b = jax.nn.sigmoid(gi_ref[1, 0, tb] + ghb_r)
        z_b = jax.nn.sigmoid(gi_ref[1, 1, tb] + ghb_z)
        n_b = jnp.tanh(gi_ref[1, 2, tb] + r_b * ghb_n)
        h_b = n_b + z_b * (h_b - n_b)

        # Write directly into the final (B, T, 2H) layout (static indices).
        out_ref[:, t, :H] = h_f
        out_ref[:, tb, H:] = h_b


def gru_bidir_layer(gi, whh_gates, bhh_gates, hidden_size):
    """gi: (2, 3, T, B, H), whh_gates: (2, 3, H, H), bhh_gates: (2, 3, 1, H).
       Returns the layer output in its final layout (B, T, 2H)."""
    _, _, T, B, H = gi.shape
    assert H == hidden_size
    # Everything here is tiny vs. VMEM, so the whole slabs live in VMEM for the
    # single kernel invocation (no grid).  See TODO above for T-tiling at scale.
    return pl.pallas_call(
        _bigru_layer_kernel,
        out_shape=jax.ShapeDtypeStruct((B, T, 2 * H), jnp.float32),
    )(gi, whh_gates, bhh_gates)


# ---------------------------------------------------------------------------
# Parameter init (deterministic, PyTorch-like uniform(-1/sqrt(H), 1/sqrt(H)))
# Weights are stored pre-transposed: (in, 3H) / (H, 3H), gate order r|z|n,
# stacked along a leading direction axis of size 2 (fwd, bwd).
# ---------------------------------------------------------------------------
def init_params(key, input_size, hidden_size, num_layers):
    H = hidden_size
    bound = 1.0 / jnp.sqrt(jnp.float32(H))

    def u(k, shape):
        return jax.random.uniform(k, shape, jnp.float32, -bound, bound)

    layers = []
    for layer in range(num_layers):
        in_size = input_size if layer == 0 else 2 * H
        key, k1, k2, k3, k4 = jax.random.split(key, 5)
        layers.append(dict(
            w_ih=u(k1, (2, in_size, 3 * H)),   # (dir, in, 3H)
            w_hh=u(k2, (2, H, 3 * H)),         # (dir, H, 3H)
            b_ih=u(k3, (2, 3 * H)),            # folded into the precomputed projection
            b_hh=u(k4, (2, 1, 3 * H)),
        ))

    key, kf1, kf2 = jax.random.split(key, 3)
    return dict(layers=layers,
                fc_w_t=u(kf1, (2 * H, H)),     # nn.Linear(2H, H).weight^T
                fc_b=u(kf2, (H,)))


# ---------------------------------------------------------------------------
# Full encoder forward: x (B, T, input_size) -> outputs (B, T, 2H), hidden (B, H)
# ---------------------------------------------------------------------------
@functools.partial(jax.jit, static_argnums=(2, 3))
def encoder_attn_forward(x_btf, params, hidden_size, num_layers):
    H = hidden_size
    x = x_btf.astype(jnp.float32)                                 # (B, T, F)
    B, T, _ = x.shape

    layer_in = x                                                  # (B, T, Fin)
    for layer in range(num_layers):
        p = params["layers"][layer]
        in_size = layer_in.shape[-1]

        # One big gate-major matmul over all T*B rows, bias folded in (hoisted out
        # of the recurrence; plain XLA einsum).
        w_ih = p["w_ih"].reshape(2, in_size, 3, H)                # (dir, in, gate, H)
        gi = jnp.einsum("btf,dfgh->dgtbh", layer_in, w_ih)        # (2, 3, T, B, H)
        gi = gi + p["b_ih"].reshape(2, 3, H)[:, :, None, None, :]

        whh_gates = p["w_hh"].reshape(2, H, 3, H).transpose(0, 2, 1, 3)   # (2, 3, H, H)
        bhh_gates = p["b_hh"].reshape(2, 3, H)[:, :, None, :]             # (2, 3, 1, H)

        layer_in = gru_bidir_layer(gi, whh_gates, bhh_gates, H)   # (B, T, 2H)
        # (inter-layer dropout = identity in eval mode)

    outputs = layer_in                                            # (B, T, 2H), already final

    # hidden[-2] = last-layer fwd final state = out[:, T-1, :H];
    # hidden[-1] = last-layer bwd final state = out[:, 0, H:].
    h_cat = jnp.concatenate([outputs[:, T - 1, :H], outputs[:, 0, H:]], axis=1)   # (B, 2H)
    hidden = jnp.tanh(h_cat @ params["fc_w_t"] + params["fc_b"])                  # (B, H)
    return outputs, hidden


# ---------------------------------------------------------------------------
# Pure-JAX reference (lax.scan GRU) for correctness checking.
# ---------------------------------------------------------------------------
def reference_forward(x_btf, params, hidden_size, num_layers):
    H = hidden_size
    x = jnp.transpose(x_btf, (1, 0, 2)).astype(jnp.float32)      # (T, B, F)
    T, B, _ = x.shape

    def gru_dir(seq, w_ih, w_hh, b_ih, b_hh):
        def step(h, x_t):
            gi = x_t @ w_ih + b_ih
            gh = h @ w_hh + b_hh[0]
            r = jax.nn.sigmoid(gi[:, :H] + gh[:, :H])
            z = jax.nn.sigmoid(gi[:, H:2 * H] + gh[:, H:2 * H])
            n = jnp.tanh(gi[:, 2 * H:] + r * gh[:, 2 * H:])
            h_new = (1.0 - z) * n + z * h
            return h_new, h_new
        h_last, outs = jax.lax.scan(step, jnp.zeros((B, H), jnp.float32), seq)
        return outs, h_last

    layer_in = x
    hf = hb = None
    for l in range(num_layers):
        p = params["layers"][l]
        of, hf = gru_dir(layer_in, p["w_ih"][0], p["w_hh"][0], p["b_ih"][0], p["b_hh"][0])
        ob_r, hb = gru_dir(layer_in[::-1], p["w_ih"][1], p["w_hh"][1], p["b_ih"][1], p["b_hh"][1])
        layer_in = jnp.concatenate([of, ob_r[::-1]], axis=-1)
    outputs = jnp.transpose(layer_in, (1, 0, 2))
    hidden = jnp.tanh(jnp.concatenate([hf, hb], axis=1) @ params["fc_w_t"] + params["fc_b"])
    return outputs, hidden


if __name__ == "__main__":
    INPUT_SIZE = 16
    HIDDEN_SIZE = 32
    NUM_LAYERS = 2
    B, T = 2, 8

    key = jax.random.PRNGKey(0)
    key_p, key_x = jax.random.split(key)
    params = init_params(key_p, INPUT_SIZE, HIDDEN_SIZE, NUM_LAYERS)
    x = jax.random.normal(key_x, (B, T, INPUT_SIZE), jnp.float32)

    outputs, hidden = encoder_attn_forward(x, params, HIDDEN_SIZE, NUM_LAYERS)
    jax.block_until_ready((outputs, hidden))

    assert outputs.shape == (B, T, 2 * HIDDEN_SIZE), outputs.shape
    assert hidden.shape == (B, HIDDEN_SIZE), hidden.shape

    out_ref, hid_ref = reference_forward(x, params, HIDDEN_SIZE, NUM_LAYERS)
    assert bool(jnp.allclose(outputs, out_ref, atol=1e-3, rtol=1e-3)), "outputs mismatch"
    assert bool(jnp.allclose(hidden, hid_ref, atol=1e-3, rtol=1e-3)), "hidden mismatch"

    print("KERNEL_OK")
</pallas_src>

<mosaic_0001>
module attributes {stable_mosaic.version = 11 : i64} {
  func.func @_bigru_layer_kernel(%arg0: memref<2x3x8x2x32xf32, #tpu.memory_space<vmem>>, %arg1: memref<2x3x32x32xf32, #tpu.memory_space<vmem>>, %arg2: memref<2x3x1x32xf32, #tpu.memory_space<vmem>>, %arg3: memref<2x8x64xf32, #tpu.memory_space<vmem>>) attributes {dimension_semantics = [], scalar_prefetch = 0 : i64, scratch_operands = 0 : i64, tpu.core_type = #tpu.core_type<tc>} {
    %c0 = arith.constant 0 : index
    %c0_0 = arith.constant 0 : index
    %c0_1 = arith.constant 0 : index
    %c0_2 = arith.constant 0 : index
    %0 = vector.load %arg1[%c0, %c0_0, %c0_1, %c0_2] : memref<2x3x32x32xf32, #tpu.memory_space<vmem>>, vector<1x1x32x32xf32>
    %1 = vector.shape_cast %0 : vector<1x1x32x32xf32> to vector<32x32xf32>
    %c0_3 = arith.constant 0 : index
    %c1 = arith.constant 1 : index
    %c0_4 = arith.constant 0 : index
    %c0_5 = arith.constant 0 : index
    %2 = vector.load %arg1[%c0_3, %c1, %c0_4, %c0_5] : memref<2x3x32x32xf32, #tpu.memory_space<vmem>>, vector<1x1x32x32xf32>
    %3 = vector.shape_cast %2 : vector<1x1x32x32xf32> to vector<32x32xf32>
    %c0_6 = arith.constant 0 : index
    %c2 = arith.constant 2 : index
    %c0_7 = arith.constant 0 : index
    %c0_8 = arith.constant 0 : index
    %4 = vector.load %arg1[%c0_6, %c2, %c0_7, %c0_8] : memref<2x3x32x32xf32, #tpu.memory_space<vmem>>, vector<1x1x32x32xf32>
    %5 = vector.shape_cast %4 : vector<1x1x32x32xf32> to vector<32x32xf32>
    %c1_9 = arith.constant 1 : index
    %c0_10 = arith.constant 0 : index
    %c0_11 = arith.constant 0 : index
    %c0_12 = arith.constant 0 : index
    %6 = vector.load %arg1[%c1_9, %c0_10, %c0_11, %c0_12] : memref<2x3x32x32xf32, #tpu.memory_space<vmem>>, vector<1x1x32x32xf32>
    %7 = vector.shape_cast %6 : vector<1x1x32x32xf32> to vector<32x32xf32>
    %c1_13 = arith.constant 1 : index
    %c1_14 = arith.constant 1 : index
    %c0_15 = arith.constant 0 : index
    %c0_16 = arith.constant 0 : index
    %8 = vector.load %arg1[%c1_13, %c1_14, %c0_15, %c0_16] : memref<2x3x32x32xf32, #tpu.memory_space<vmem>>, vector<1x1x32x32xf32>
    %9 = vector.shape_cast %8 : vector<1x1x32x32xf32> to vector<32x32xf32>
    %c1_17 = arith.constant 1 : index
    %c2_18 = arith.constant 2 : index
    %c0_19 = arith.constant 0 : index
    %c0_20 = arith.constant 0 : index
    %10 = vector.load %arg1[%c1_17, %c2_18, %c0_19, %c0_20] : memref<2x3x32x32xf32, #tpu.memory_space<vmem>>, vector<1x1x32x32xf32>
    %11 = vector.shape_cast %10 : vector<1x1x32x32xf32> to vector<32x32xf32>
    %c0_21 = arith.constant 0 : index
    %c0_22 = arith.constant 0 : index
    %c0_23 = arith.constant 0 : index
    %c0_24 = arith.constant 0 : index
    %12 = vector.load %arg2[%c0_21, %c0_22, %c0_23, %c0_24] : memref<2x3x1x32xf32, #tpu.memory_space<vmem>>, vector<1x1x1x32xf32>
    %13 = vector.shape_cast %12 : vector<1x1x1x32xf32> to vector<1x32xf32>
    %14 = vector.shape_cast %13 : vector<1x32xf32> to vector<1x32xf32>
    %15 = vector.broadcast %14 : vector<1x32xf32> to vector<2x32xf32>
    %c0_25 = arith.constant 0 : index
    %c1_26 = arith.constant 1 : index
    %c0_27 = arith.constant 0 : index
    %c0_28 = arith.constant 0 : index
    %16 = vector.load %arg2[%c0_25, %c1_26, %c0_27, %c0_28] : memref<2x3x1x32xf32, #tpu.memory_space<vmem>>, vector<1x1x1x32xf32>
    %17 = vector.shape_cast %16 : vector<1x1x1x32xf32> to vector<1x32xf32>
    %18 = vector.shape_cast %17 : vector<1x32xf32> to vector<1x32xf32>
    %19 = vector.broadcast %18 : vector<1x32xf32> to vector<2x32xf32>
    %c0_29 = arith.constant 0 : index
    %c2_30 = arith.constant 2 : index
    %c0_31 = arith.constant 0 : index
    %c0_32 = arith.constant 0 : index
    %20 = vector.load %arg2[%c0_29, %c2_30, %c0_31, %c0_32] : memref<2x3x1x32xf32, #tpu.memory_space<vmem>>, vector<1x1x1x32xf32>
    %21 = vector.shape_cast %20 : vector<1x1x1x32xf32> to vector<1x32xf32>
    %22 = vector.shape_cast %21 : vector<1x32xf32> to vector<1x32xf32>
    %23 = vector.broadcast %22 : vector<1x32xf32> to vector<2x32xf32>
    %c1_33 = arith.constant 1 : index
    %c0_34 = arith.constant 0 : index
    %c0_35 = arith.constant 0 : index
    %c0_36 = arith.constant 0 : index
    %24 = vector.load %arg2[%c1_33, %c0_34, %c0_35, %c0_36] : memref<2x3x1x32xf32, #tpu.memory_space<vmem>>, vector<1x1x1x32xf32>
    %25 = vector.shape_cast %24 : vector<1x1x1x32xf32> to vector<1x32xf32>
    %26 = vector.shape_cast %25 : vector<1x32xf32> to vector<1x32xf32>
    %27 = vector.broadcast %26 : vector<1x32xf32> to vector<2x32xf32>
    %c1_37 = arith.constant 1 : index
    %c1_38 = arith.constant 1 : index
    %c0_39 = arith.constant 0 : index
    %c0_40 = arith.constant 0 : index
    %28 = vector.load %arg2[%c1_37, %c1_38, %c0_39, %c0_40] : memref<2x3x1x32xf32, #tpu.memory_space<vmem>>, vector<1x1x1x32xf32>
    %29 = vector.shape_cast %28 : vector<1x1x1x32xf32> to vector<1x32xf32>
    %30 = vector.shape_cast %29 : vector<1x32xf32> to vector<1x32xf32>
    %31 = vector.broadcast %30 : vector<1x32xf32> to vector<2x32xf32>
    %c1_41 = arith.constant 1 : index
    %c2_42 = arith.constant 2 : index
    %c0_43 = arith.constant 0 : index
    %c0_44 = arith.constant 0 : index
    %32 = vector.load %arg2[%c1_41, %c2_42, %c0_43, %c0_44] : memref<2x3x1x32xf32, #tpu.memory_space<vmem>>, vector<1x1x1x32xf32>
    %33 = vector.shape_cast %32 : vector<1x1x1x32xf32> to vector<1x32xf32>
    %34 = vector.shape_cast %33 : vector<1x32xf32> to vector<1x32xf32>
    %35 = vector.broadcast %34 : vector<1x32xf32> to vector<2x32xf32>
    %cst = arith.constant 0.000000e+00 : f32
    %36 = vector.broadcast %cst : f32 to vector<2x32xf32>
    %cst_45 = arith.constant 0.000000e+00 : f32
    %37 = vector.broadcast %cst_45 : f32 to vector<2x32xf32>
    %cst_46 = arith.constant dense<0.000000e+00> : vector<2x32xf32>
    %38 = tpu.matmul %36, %1, %cst_46 {dimension_numbers = #tpu.dot_dimension_numbers<[1], [0], [0], [1], [0, 0, 1, 1], [], []>} : vector<2x32xf32>, vector<32x32xf32>, vector<2x32xf32> -> vector<2x32xf32>
    %39 = arith.addf %38, %15 : vector<2x32xf32>
    %cst_47 = arith.constant dense<0.000000e+00> : vector<2x32xf32>
    %40 = tpu.matmul %36, %3, %cst_47 {dimension_numbers = #tpu.dot_dimension_numbers<[1], [0], [0], [1], [0, 0, 1, 1], [], []>} : vector<2x32xf32>, vector<32x32xf32>, vector<2x32xf32> -> vector<2x32xf32>
    %41 = arith.addf %40, %19 : vector<2x32xf32>
    %cst_48 = arith.constant dense<0.000000e+00> : vector<2x32xf32>
    %42 = tpu.matmul %36, %5, %cst_48 {dimension_numbers = #tpu.dot_dimension_numbers<[1], [0], [0], [1], [0, 0, 1, 1], [], []>} : vector<2x32xf32>, vector<32x32xf32>, vector<2x32xf32> -> vector<2x32xf32>
    %43 = arith.addf %42, %23 : vector<2x32xf32>
    %cst_49 = arith.constant dense<0.000000e+00> : vector<2x32xf32>
    %44 = tpu.matmul %37, %7, %cst_49 {dimension_numbers = #tpu.dot_dimension_numbers<[1], [0], [0], [1], [0, 0, 1, 1], [], []>} : vector<2x32xf32>, vector<32x32xf32>, vector<2x32xf32> -> vector<2x32xf32>
    %45 = arith.addf %44, %27 : vector<2x32xf32>
    %cst_50 = arith.constant dense<0.000000e+00> : vector<2x32xf32>
    %46 = tpu.matmul %37, %9, %cst_50 {dimension_numbers = #tpu.dot_dimension_numbers<[1], [0], [0], [1], [0, 0, 1, 1], [], []>} : vector<2x32xf32>, vector<32x32xf32>, vector<2x32xf32> -> vector<2x32xf32>
    %47 = arith.addf %46, %31 : vector<2x32xf32>
    %cst_51 = arith.constant dense<0.000000e+00> : vector<2x32xf32>
    %48 = tpu.matmul %37, %11, %cst_51 {dimension_numbers = #tpu.dot_dimension_numbers<[1], [0], [0], [1], [0, 0, 1, 1], [], []>} : vector<2x32xf32>, vector<32x32xf32>, vector<2x32xf32> -> vector<2x32xf32>
    %49 = arith.addf %48, %35 : vector<2x32xf32>
    %c0_52 = arith.constant 0 : index
    %c0_53 = arith.constant 0 : index
    %c0_54 = arith.constant 0 : index
    %c0_55 = arith.constant 0 : index
    %c0_56 = arith.constant 0 : index
    %50 = vector.load %arg0[%c0_52, %c0_53, %c0_54, %c0_55, %c0_56] : memref<2x3x8x2x32xf32, #tpu.memory_space<vmem>>, vector<1x1x1x2x32xf32>
    %51 = vector.shape_cast %50 : vector<1x1x1x2x32xf32> to vector<2x32xf32>
    %52 = arith.addf %51, %39 : vector<2x32xf32>
    %53 = arith.negf %52 : vector<2x32xf32>
    %54 = math.exp %53 : vector<2x32xf32>
    %cst_57 = arith.constant 1.000000e+00 : f32
    %55 = vector.broadcast %cst_57 : f32 to vector<2x32xf32>
    %56 = arith.addf %55, %54 : vector<2x32xf32>
    %57 = arith.divf %55, %56 : vector<2x32xf32>
    %c0_58 = arith.constant 0 : index
    %c1_59 = arith.constant 1 : index
    %c0_60 = arith.constant 0 : index
    %c0_61 = arith.constant 0 : index
    %c0_62 = arith.constant 0 : index
    %58 = vector.load %arg0[%c0_58, %c1_59, %c0_60, %c0_61, %c0_62] : memref<2x3x8x2x32xf32, #tpu.memory_space<vmem>>, vector<1x1x1x2x32xf32>
    %59 = vector.shape_cast %58 : vector<1x1x1x2x32xf32> to vector<2x32xf32>
    %60 = arith.addf %59, %41 : vector<2x32xf32>
    %61 = arith.negf %60 : vector<2x32xf32>
    %62 = math.exp %61 : vector<2x32xf32>
    %cst_63 = arith.constant 1.000000e+00 : f32
    %63 = vector.broadcast %cst_63 : f32 to vector<2x32xf32>
    %64 = arith.addf %63, %62 : vector<2x32xf32>
    %65 = arith.divf %63, %64 : vector<2x32xf32>
    %c0_64 = arith.constant 0 : index
    %c2_65 = arith.constant 2 : index
    %c0_66 = arith.constant 0 : index
    %c0_67 = arith.constant 0 : index
    %c0_68 = arith.constant 0 : index
    %66 = vector.load %arg0[%c0_64, %c2_65, %c0_66, %c0_67, %c0_68] : memref<2x3x8x2x32xf32, #tpu.memory_space<vmem>>, vector<1x1x1x2x32xf32>
    %67 = vector.shape_cast %66 : vector<1x1x1x2x32xf32> to vector<2x32xf32>
    %68 = arith.mulf %57, %43 : vector<2x32xf32>
    %69 = arith.addf %67, %68 : vector<2x32xf32>
    %70 = math.tanh %69 : vector<2x32xf32>
    %71 = arith.subf %36, %70 : vector<2x32xf32>
    %72 = arith.mulf %65, %71 : vector<2x32xf32>
    %73 = arith.addf %70, %72 : vector<2x32xf32>
    %c1_69 = arith.constant 1 : index
    %c0_70 = arith.constant 0 : index
    %c7 = arith.constant 7 : index
    %c0_71 = arith.constant 0 : index
    %c0_72 = arith.constant 0 : index
    %74 = vector.load %arg0[%c1_69, %c0_70, %c7, %c0_71, %c0_72] : memref<2x3x8x2x32xf32, #tpu.memory_space<vmem>>, vector<1x1x1x2x32xf32>
    %75 = vector.shape_cast %74 : vector<1x1x1x2x32xf32> to vector<2x32xf32>
    %76 = arith.addf %75, %45 : vector<2x32xf32>
    %77 = arith.negf %76 : vector<2x32xf32>
    %78 = math.exp %77 : vector<2x32xf32>
    %cst_73 = arith.constant 1.000000e+00 : f32
    %79 = vector.broadcast %cst_73 : f32 to vector<2x32xf32>
    %80 = arith.addf %79, %78 : vector<2x32xf32>
    %81 = arith.divf %79, %80 : vector<2x32xf32>
    %c1_74 = arith.constant 1 : index
    %c1_75 = arith.constant 1 : index
    %c7_76 = arith.constant 7 : index
    %c0_77 = arith.constant 0 : index
    %c0_78 = arith.constant 0 : index
    %82 = vector.load %arg0[%c1_74, %c1_75, %c7_76, %c0_77, %c0_78] : memref<2x3x8x2x32xf32, #tpu.memory_space<vmem>>, vector<1x1x1x2x32xf32>
    %83 = vector.shape_cast %82 : vector<1x1x1x2x32xf32> to vector<2x32xf32>
    %84 = arith.addf %83, %47 : vector<2x32xf32>
    %85 = arith.negf %84 : vector<2x32xf32>
    %86 = math.exp %85 : vector<2x32xf32>
    %cst_79 = arith.constant 1.000000e+00 : f32
    %87 = vector.broadcast %cst_79 : f32 to vector<2x32xf32>
    %88 = arith.addf %87, %86 : vector<2x32xf32>
    %89 = arith.divf %87, %88 : vector<2x32xf32>
    %c1_80 = arith.constant 1 : index
    %c2_81 = arith.constant 2 : index
    %c7_82 = arith.constant 7 : index
    %c0_83 = arith.constant 0 : index
    %c0_84 = arith.constant 0 : index
    %90 = vector.load %arg0[%c1_80, %c2_81, %c7_82, %c0_83, %c0_84] : memref<2x3x8x2x32xf32, #tpu.memory_space<vmem>>, vector<1x1x1x2x32xf32>
    %91 = vector.shape_cast %90 : vector<1x1x1x2x32xf32> to vector<2x32xf32>
    %92 = arith.mulf %81, %49 : vector<2x32xf32>
    %93 = arith.addf %91, %92 : vector<2x32xf32>
    %94 = math.tanh %93 : vector<2x32xf32>
    %95 = arith.subf %37, %94 : vector<2x32xf32>
    %96 = arith.mulf %89, %95 : vector<2x32xf32>
    %97 = arith.addf %94, %96 : vector<2x32xf32>
    %c0_85 = arith.constant 0 : index
    %c0_86 = arith.constant 0 : index
    %c0_87 = arith.constant 0 : index
    %98 = vector.load %arg3[%c0_85, %c0_86, %c0_87] : memref<2x8x64xf32, #tpu.memory_space<vmem>>, vector<2x1x32xf32>
    %99 = vector.shape_cast %98 : vector<2x1x32xf32> to vector<2x32xf32>
    %100 = vector.shape_cast %73 : vector<2x32xf32> to vector<2x1x32xf32>
    tpu.vector_store %arg3[%c0_85, %c0_86, %c0_87], %100 {strides = array<i32>} : memref<2x8x64xf32, #tpu.memory_space<vmem>>, vector<2x1x32xf32>,
    %c0_88 = arith.constant 0 : index
    %c7_89 = arith.constant 7 : index
    %c32 = arith.constant 32 : index
    %101 = vector.load %arg3[%c0_88, %c7_89, %c32] : memref<2x8x64xf32, #tpu.memory_space<vmem>>, vector<2x1x32xf32>
    %102 = vector.shape_cast %101 : vector<2x1x32xf32> to vector<2x32xf32>
    %103 = vector.shape_cast %97 : vector<2x32xf32> to vector<2x1x32xf32>
    tpu.vector_store %arg3[%c0_88, %c7_89, %c32], %103 {strides = array<i32>} : memref<2x8x64xf32, #tpu.memory_space<vmem>>, vector<2x1x32xf32>,
    %cst_90 = arith.constant dense<0.000000e+00> : vector<2x32xf32>
    %104 = tpu.matmul %73, %1, %cst_90 {dimension_numbers = #tpu.dot_dimension_numbers<[1], [0], [0], [1], [0, 0, 1, 1], [], []>} : vector<2x32xf32>, vector<32x32xf32>, vector<2x32xf32> -> vector<2x32xf32>
    %105 = arith.addf %104, %15 : vector<2x32xf32>
    %cst_91 = arith.constant dense<0.000000e+00> : vector<2x32xf32>
    %106 = tpu.matmul %73, %3, %cst_91 {dimension_numbers = #tpu.dot_dimension_numbers<[1], [0], [0], [1], [0, 0, 1, 1], [], []>} : vector<2x32xf32>, vector<32x32xf32>, vector<2x32xf32> -> vector<2x32xf32>
    %107 = arith.addf %106, %19 : vector<2x32xf32>
    %cst_92 = arith.constant dense<0.000000e+00> : vector<2x32xf32>
    %108 = tpu.matmul %73, %5, %cst_92 {dimension_numbers = #tpu.dot_dimension_numbers<[1], [0], [0], [1], [0, 0, 1, 1], [], []>} : vector<2x32xf32>, vector<32x32xf32>, vector<2x32xf32> -> vector<2x32xf32>
    %109 = arith.addf %108, %23 : vector<2x32xf32>
    %cst_93 = arith.constant dense<0.000000e+00> : vector<2x32xf32>
    %110 = tpu.matmul %97, %7, %cst_93 {dimension_numbers = #tpu.dot_dimension_numbers<[1], [0], [0], [1], [0, 0, 1, 1], [], []>} : vector<2x32xf32>, vector<32x32xf32>, vector<2x32xf32> -> vector<2x32xf32>
    %111 = arith.addf %110, %27 : vector<2x32xf32>
    %cst_94 = arith.constant dense<0.000000e+00> : vector<2x32xf32>
    %112 = tpu.matmul %97, %9, %cst_94 {dimension_numbers = #tpu.dot_dimension_numbers<[1], [0], [0], [1], [0, 0, 1, 1], [], []>} : vector<2x32xf32>, vector<32x32xf32>, vector<2x32xf32> -> vector<2x32xf32>
    %113 = arith.addf %112, %31 : vector<2x32xf32>
    %cst_95 = arith.constant dense<0.000000e+00> : vector<2x32xf32>
    %114 = tpu.matmul %97, %11, %cst_95 {dimension_numbers = #tpu.dot_dimension_numbers<[1], [0], [0], [1], [0, 0, 1, 1], [], []>} : vector<2x32xf32>, vector<32x32xf32>, vector<2x32xf32> -> vector<2x32xf32>
    %115 = arith.addf %114, %35 : vector<2x32xf32>
    %c0_96 = arith.constant 0 : index
    %c0_97 = arith.constant 0 : index
    %c1_98 = arith.constant 1 : index
    %c0_99 = arith.constant 0 : index
    %c0_100 = arith.constant 0 : index
    %116 = vector.load %arg0[%c0_96, %c0_97, %c1_98, %c0_99, %c0_100] : memref<2x3x8x2x32xf32, #tpu.memory_space<vmem>>, vector<1x1x1x2x32xf32>
    %117 = vector.shape_cast %116 : vector<1x1x1x2x32xf32> to vector<2x32xf32>
    %118 = arith.addf %117, %105 : vector<2x32xf32>
    %119 = arith.negf %118 : vector<2x32xf32>
    %120 = math.exp %119 : vector<2x32xf32>
    %cst_101 = arith.constant 1.000000e+00 : f32
    %121 = vector.broadcast %cst_101 : f32 to vector<2x32xf32>
    %122 = arith.addf %121, %120 : vector<2x32xf32>
    %123 = arith.divf %121, %122 : vector<2x32xf32>
    %c0_102 = arith.constant 0 : index
    %c1_103 = arith.constant 1 : index
    %c1_104 = arith.constant 1 : index
    %c0_105 = arith.constant 0 : index
    %c0_106 = arith.constant 0 : index
    %124 = vector.load %arg0[%c0_102, %c1_103, %c1_104, %c0_105, %c0_106] : memref<2x3x8x2x32xf32, #tpu.memory_space<vmem>>, vector<1x1x1x2x32xf32>
    %125 = vector.shape_cast %124 : vector<1x1x1x2x32xf32> to vector<2x32xf32>
    %126 = arith.addf %125, %107 : vector<2x32xf32>
    %127 = arith.negf %126 : vector<2x32xf32>
    %128 = math.exp %127 : vector<2x32xf32>
    %cst_107 = arith.constant 1.000000e+00 : f32
    %129 = vector.broadcast %cst_107 : f32 to vector<2x32xf32>
    %130 = arith.addf %129, %128 : vector<2x32xf32>
    %131 = arith.divf %129, %130 : vector<2x32xf32>
    %c0_108 = arith.constant 0 : index
    %c2_109 = arith.constant 2 : index
    %c1_110 = arith.constant 1 : index
    %c0_111 = arith.constant 0 : index
    %c0_112 = arith.constant 0 : index
    %132 = vector.load %arg0[%c0_108, %c2_109, %c1_110, %c0_111, %c0_112] : memref<2x3x8x2x32xf32, #tpu.memory_space<vmem>>, vector<1x1x1x2x32xf32>
    %133 = vector.shape_cast %132 : vector<1x1x1x2x32xf32> to vector<2x32xf32>
    %134 = arith.mulf %123, %109 : vector<2x32xf32>
    %135 = arith.addf %133, %134 : vector<2x32xf32>
    %136 = math.tanh %135 : vector<2x32xf32>
    %137 = arith.subf %73, %136 : vector<2x32xf32>
    %138 = arith.mulf %131, %137 : vector<2x32xf32>
    %139 = arith.addf %136, %138 : vector<2x32xf32>
    %c1_113 = arith.constant 1 : index
    %c0_114 = arith.constant 0 : index
    %c6 = arith.constant 6 : index
    %c0_115 = arith.constant 0 : index
    %c0_116 = arith.constant 0 : index
    %140 = vector.load %arg0[%c1_113, %c0_114, %c6, %c0_115, %c0_116] : memref<2x3x8x2x32xf32, #tpu.memory_space<vmem>>, vector<1x1x1x2x32xf32>
    %141 = vector.shape_cast %140 : vector<1x1x1x2x32xf32> to vector<2x32xf32>
    %142 = arith.addf %141, %111 : vector<2x32xf32>
    %143 = arith.negf %142 : vector<2x32xf32>
    %144 = math.exp %143 : vector<2x32xf32>
    %cst_117 = arith.constant 1.000000e+00 : f32
    %145 = vector.broadcast %cst_117 : f32 to vector<2x32xf32>
    %146 = arith.addf %145, %144 : vector<2x32xf32>
    %147 = arith.divf %145, %146 : vector<2x32xf32>
    %c1_118 = arith.constant 1 : index
    %c1_119 = arith.constant 1 : index
    %c6_120 = arith.constant 6 : index
    %c0_121 = arith.constant 0 : index
    %c0_122 = arith.constant 0 : index
    %148 = vector.load %arg0[%c1_118, %c1_119, %c6_120, %c0_121, %c0_122] : memref<2x3x8x2x32xf32, #tpu.memory_space<vmem>>, vector<1x1x1x2x32xf32>
    %149 = vector.shape_cast %148 : vector<1x1x1x2x32xf32> to vector<2x32xf32>
    %150 = arith.addf %149, %113 : vector<2x32xf32>
    %151 = arith.negf %150 : vector<2x32xf32>
    %152 = math.exp %151 : vector<2x32xf32>
    %cst_123 = arith.constant 1.000000e+00 : f32
    %153 = vector.broadcast %cst_123 : f32 to vector<2x32xf32>
    %154 = arith.addf %153, %152 : vector<2x32xf32>
    %155 = arith.divf %153, %154 : vector<2x32xf32>
    %c1_124 = arith.constant 1 : index
    %c2_125 = arith.constant 2 : index
    %c6_126 = arith.constant 6 : index
    %c0_127 = arith.constant 0 : index
    %c0_128 = arith.constant 0 : index
    %156 = vector.load %arg0[%c1_124, %c2_125, %c6_126, %c0_127, %c0_128] : memref<2x3x8x2x32xf32, #tpu.memory_space<vmem>>, vector<1x1x1x2x32xf32>
    %157 = vector.shape_cast %156 : vector<1x1x1x2x32xf32> to vector<2x32xf32>
    %158 = arith.mulf %147, %115 : vector<2x32xf32>
    %159 = arith.addf %157, %158 : vector<2x32xf32>
    %160 = math.tanh %159 : vector<2x32xf32>
    %161 = arith.subf %97, %160 : vector<2x32xf32>
    %162 = arith.mulf %155, %161 : vector<2x32xf32>
    %163 = arith.addf %160, %162 : vector<2x32xf32>
    %c0_129 = arith.constant 0 : index
    %c1_130 = arith.constant 1 : index
    %c0_131 = arith.constant 0 : index
    %164 = vector.load %arg3[%c0_129, %c1_130, %c0_131] : memref<2x8x64xf32, #tpu.memory_space<vmem>>, vector<2x1x32xf32>
    %165 = vector.shape_cast %164 : vector<2x1x32xf32> to vector<2x32xf32>
    %166 = vector.shape_cast %139 : vector<2x32xf32> to vector<2x1x32xf32>
    tpu.vector_store %arg3[%c0_129, %c1_130, %c0_131], %166 {strides = array<i32>} : memref<2x8x64xf32, #tpu.memory_space<vmem>>, vector<2x1x32xf32>,
    %c0_132 = arith.constant 0 : index
    %c6_133 = arith.constant 6 : index
    %c32_134 = arith.constant 32 : index
    %167 = vector.load %arg3[%c0_132, %c6_133, %c32_134] : memref<2x8x64xf32, #tpu.memory_space<vmem>>, vector<2x1x32xf32>
    %168 = vector.shape_cast %167 : vector<2x1x32xf32> to vector<2x32xf32>
    %169 = vector.shape_cast %163 : vector<2x32xf32> to vector<2x1x32xf32>
    tpu.vector_store %arg3[%c0_132, %c6_133, %c32_134], %169 {strides = array<i32>} : memref<2x8x64xf32, #tpu.memory_space<vmem>>, vector<2x1x32xf32>,
    %cst_135 = arith.constant dense<0.000000e+00> : vector<2x32xf32>
    %170 = tpu.matmul %139, %1, %cst_135 {dimension_numbers = #tpu.dot_dimension_numbers<[1], [0], [0], [1], [0, 0, 1, 1], [], []>} : vector<2x32xf32>, vector<32x32xf32>, vector<2x32xf32> -> vector<2x32xf32>
    %171 = arith.addf %170, %15 : vector<2x32xf32>
    %cst_136 = arith.constant dense<0.000000e+00> : vector<2x32xf32>
    %172 = tpu.matmul %139, %3, %cst_136 {dimension_numbers = #tpu.dot_dimension_numbers<[1], [0], [0], [1], [0, 0, 1, 1], [], []>} : vector<2x32xf32>, vector<32x32xf32>, vector<2x32xf32> -> vector<2x32xf32>
    %173 = arith.addf %172, %19 : vector<2x32xf32>
    %cst_137 = arith.constant dense<0.000000e+00> : vector<2x32xf32>
    %174 = tpu.matmul %139, %5, %cst_137 {dimension_numbers = #tpu.dot_dimension_numbers<[1], [0], [0], [1], [0, 0, 1, 1], [], []>} : vector<2x32xf32>, vector<32x32xf32>, vector<2x32xf32> -> vector<2x32xf32>
    %175 = arith.addf %174, %23 : vector<2x32xf32>
    %cst_138 = arith.constant dense<0.000000e+00> : vector<2x32xf32>
    %176 = tpu.matmul %163, %7, %cst_138 {dimension_numbers = #tpu.dot_dimension_numbers<[1], [0], [0], [1], [0, 0, 1, 1], [], []>} : vector<2x32xf32>, vector<32x32xf32>, vector<2x32xf32> -> vector<2x32xf32>
    %177 = arith.addf %176, %27 : vector<2x32xf32>
    %cst_139 = arith.constant dense<0.000000e+00> : vector<2x32xf32>
    %178 = tpu.matmul %163, %9, %cst_139 {dimension_numbers = #tpu.dot_dimension_numbers<[1], [0], [0], [1], [0, 0, 1, 1], [], []>} : vector<2x32xf32>, vector<32x32xf32>, vector<2x32xf32> -> vector<2x32xf32>
    %179 = arith.addf %178, %31 : vector<2x32xf32>
    %cst_140 = arith.constant dense<0.000000e+00> : vector<2x32xf32>
    %180 = tpu.matmul %163, %11, %cst_140 {dimension_numbers = #tpu.dot_dimension_numbers<[1], [0], [0], [1], [0, 0, 1, 1], [], []>} : vector<2x32xf32>, vector<32x32xf32>, vector<2x32xf32> -> vector<2x32xf32>
    %181 = arith.addf %180, %35 : vector<2x32xf32>
    %c0_141 = arith.constant 0 : index
    %c0_142 = arith.constant 0 : index
    %c2_143 = arith.constant 2 : index
    %c0_144 = arith.constant 0 : index
    %c0_145 = arith.constant 0 : index
    %182 = vector.load %arg0[%c0_141, %c0_142, %c2_143, %c0_144, %c0_145] : memref<2x3x8x2x32xf32, #tpu.memory_space<vmem>>, vector<1x1x1x2x32xf32>
    %183 = vector.shape_cast %182 : vector<1x1x1x2x32xf32> to vector<2x32xf32>
    %184 = arith.addf %183, %171 : vector<2x32xf32>
    %185 = arith.negf %184 : vector<2x32xf32>
    %186 = math.exp %185 : vector<2x32xf32>
    %cst_146 = arith.constant 1.000000e+00 : f32
    %187 = vector.broadcast %cst_146 : f32 to vector<2x32xf32>
    %188 = arith.addf %187, %186 : vector<2x32xf32>
    %189 = arith.divf %187, %188 : vector<2x32xf32>
    %c0_147 = arith.constant 0 : index
    %c1_148 = arith.constant 1 : index
    %c2_149 = arith.constant 2 : index
    %c0_150 = arith.constant 0 : index
    %c0_151 = arith.constant 0 : index
    %190 = vector.load %arg0[%c0_147, %c1_148, %c2_149, %c0_150, %c0_151] : memref<2x3x8x2x32xf32, #tpu.memory_space<vmem>>, vector<1x1x1x2x32xf32>
    %191 = vector.shape_cast %190 : vector<1x1x1x2x32xf32> to vector<2x32xf32>
    %192 = arith.addf %191, %173 : vector<2x32xf32>
    %193 = arith.negf %192 : vector<2x32xf32>
    %194 = math.exp %193 : vector<2x32xf32>
    %cst_152 = arith.constant 1.000000e+00 : f32
    %195 = vector.broadcast %cst_152 : f32 to vector<2x32xf32>
    %196 = arith.addf %195, %194 : vector<2x32xf32>
    %197 = arith.divf %195, %196 : vector<2x32xf32>
    %c0_153 = arith.constant 0 : index
    %c2_154 = arith.constant 2 : index
    %c2_155 = arith.constant 2 : index
    %c0_156 = arith.constant 0 : index
    %c0_157 = arith.constant 0 : index
    %198 = vector.load %arg0[%c0_153, %c2_154, %c2_155, %c0_156, %c0_157] : memref<2x3x8x2x32xf32, #tpu.memory_space<vmem>>, vector<1x1x1x2x32xf32>
    %199 = vector.shape_cast %198 : vector<1x1x1x2x32xf32> to vector<2x32xf32>
    %200 = arith.mulf %189, %175 : vector<2x32xf32>
    %201 = arith.addf %199, %200 : vector<2x32xf32>
    %202 = math.tanh %201 : vector<2x32xf32>
    %203 = arith.subf %139, %202 : vector<2x32xf32>
    %204 = arith.mulf %197, %203 : vector<2x32xf32>
    %205 = arith.addf %202, %204 : vector<2x32xf32>
    %c1_158 = arith.constant 1 : index
    %c0_159 = arith.constant 0 : index
    %c5 = arith.constant 5 : index
    %c0_160 = arith.constant 0 : index
    %c0_161 = arith.constant 0 : index
    %206 = vector.load %arg0[%c1_158, %c0_159, %c5, %c0_160, %c0_161] : memref<2x3x8x2x32xf32, #tpu.memory_space<vmem>>, vector<1x1x1x2x32xf32>
    %207 = vector.shape_cast %206 : vector<1x1x1x2x32xf32> to vector<2x32xf32>
    %208 = arith.addf %207, %177 : vector<2x32xf32>
    %209 = arith.negf %208 : vector<2x32xf32>
    %210 = math.exp %209 : vector<2x32xf32>
    %cst_162 = arith.constant 1.000000e+00 : f32
    %211 = vector.broadcast %cst_162 : f32 to vector<2x32xf32>
    %212 = arith.addf %211, %210 : vector<2x32xf32>
    %213 = arith.divf %211, %212 : vector<2x32xf32>
    %c1_163 = arith.constant 1 : index
    %c1_164 = arith.constant 1 : index
    %c5_165 = arith.constant 5 : index
    %c0_166 = arith.constant 0 : index
    %c0_167 = arith.constant 0 : index
    %214 = vector.load %arg0[%c1_163, %c1_164, %c5_165, %c0_166, %c0_167] : memref<2x3x8x2x32xf32, #tpu.memory_space<vmem>>, vector<1x1x1x2x32xf32>
    %215 = vector.shape_cast %214 : vector<1x1x1x2x32xf32> to vector<2x32xf32>
    %216 = arith.addf %215, %179 : vector<2x32xf32>
    %217 = arith.negf %216 : vector<2x32xf32>
    %218 = math.exp %217 : vector<2x32xf32>
    %cst_168 = arith.constant 1.000000e+00 : f32
    %219 = vector.broadcast %cst_168 : f32 to vector<2x32xf32>
    %220 = arith.addf %219, %218 : vector<2x32xf32>
    %221 = arith.divf %219, %220 : vector<2x32xf32>
    %c1_169 = arith.constant 1 : index
    %c2_170 = arith.constant 2 : index
    %c5_171 = arith.constant 5 : index
    %c0_172 = arith.constant 0 : index
    %c0_173 = arith.constant 0 : index
    %222 = vector.load %arg0[%c1_169, %c2_170, %c5_171, %c0_172, %c0_173] : memref<2x3x8x2x32xf32, #tpu.memory_space<vmem>>, vector<1x1x1x2x32xf32>
    %223 = vector.shape_cast %222 : vector<1x1x1x2x32xf32> to vector<2x32xf32>
    %224 = arith.mulf %213, %181 : vector<2x32xf32>
    %225 = arith.addf %223, %224 : vector<2x32xf32>
    %226 = math.tanh %225 : vector<2x32xf32>
    %227 = arith.subf %163, %226 : vector<2x32xf32>
    %228 = arith.mulf %221, %227 : vector<2x32xf32>
    %229 = arith.addf %226, %228 : vector<2x32xf32>
    %c0_174 = arith.constant 0 : index
    %c2_175 = arith.constant 2 : index
    %c0_176 = arith.constant 0 : index
    %230 = vector.load %arg3[%c0_174, %c2_175, %c0_176] : memref<2x8x64xf32, #tpu.memory_space<vmem>>, vector<2x1x32xf32>
    %231 = vector.shape_cast %230 : vector<2x1x32xf32> to vector<2x32xf32>
    %232 = vector.shape_cast %205 : vector<2x32xf32> to vector<2x1x32xf32>
    tpu.vector_store %arg3[%c0_174, %c2_175, %c0_176], %232 {strides = array<i32>} : memref<2x8x64xf32, #tpu.memory_space<vmem>>, vector<2x1x32xf32>,
    %c0_177 = arith.constant 0 : index
    %c5_178 = arith.constant 5 : index
    %c32_179 = arith.constant 32 : index
    %233 = vector.load %arg3[%c0_177, %c5_178, %c32_179] : memref<2x8x64xf32, #tpu.memory_space<vmem>>, vector<2x1x32xf32>
    %234 = vector.shape_cast %233 : vector<2x1x32xf32> to vector<2x32xf32>
    %235 = vector.shape_cast %229 : vector<2x32xf32> to vector<2x1x32xf32>
    tpu.vector_store %arg3[%c0_177, %c5_178, %c32_179], %235 {strides = array<i32>} : memref<2x8x64xf32, #tpu.memory_space<vmem>>, vector<2x1x32xf32>,
    %cst_180 = arith.constant dense<0.000000e+00> : vector<2x32xf32>
    %236 = tpu.matmul %205, %1, %cst_180 {dimension_numbers = #tpu.dot_dimension_numbers<[1], [0], [0], [1], [0, 0, 1, 1], [], []>} : vector<2x32xf32>, vector<32x32xf32>, vector<2x32xf32> -> vector<2x32xf32>
    %237 = arith.addf %236, %15 : vector<2x32xf32>
    %cst_181 = arith.constant dense<0.000000e+00> : vector<2x32xf32>
    %238 = tpu.matmul %205, %3, %cst_181 {dimension_numbers = #tpu.dot_dimension_numbers<[1], [0], [0], [1], [0, 0, 1, 1], [], []>} : vector<2x32xf32>, vector<32x32xf32>, vector<2x32xf32> -> vector<2x32xf32>
    %239 = arith.addf %238, %19 : vector<2x32xf32>
    %cst_182 = arith.constant dense<0.000000e+00> : vector<2x32xf32>
    %240 = tpu.matmul %205, %5, %cst_182 {dimension_numbers = #tpu.dot_dimension_numbers<[1], [0], [0], [1], [0, 0, 1, 1], [], []>} : vector<2x32xf32>, vector<32x32xf32>, vector<2x32xf32> -> vector<2x32xf32>
    %241 = arith.addf %240, %23 : vector<2x32xf32>
    %cst_183 = arith.constant dense<0.000000e+00> : vector<2x32xf32>
    %242 = tpu.matmul %229, %7, %cst_183 {dimension_numbers = #tpu.dot_dimension_numbers<[1], [0], [0], [1], [0, 0, 1, 1], [], []>} : vector<2x32xf32>, vector<32x32xf32>, vector<2x32xf32> -> vector<2x32xf32>
    %243 = arith.addf %242, %27 : vector<2x32xf32>
    %cst_184 = arith.constant dense<0.000000e+00> : vector<2x32xf32>
    %244 = tpu.matmul %229, %9, %cst_184 {dimension_numbers = #tpu.dot_dimension_numbers<[1], [0], [0], [1], [0, 0, 1, 1], [], []>} : vector<2x32xf32>, vector<32x32xf32>, vector<2x32xf32> -> vector<2x32xf32>
    %245 = arith.addf %244, %31 : vector<2x32xf32>
    %cst_185 = arith.constant dense<0.000000e+00> : vector<2x32xf32>
    %246 = tpu.matmul %229, %11, %cst_185 {dimension_numbers = #tpu.dot_dimension_numbers<[1], [0], [0], [1], [0, 0, 1, 1], [], []>} : vector<2x32xf32>, vector<32x32xf32>, vector<2x32xf32> -> vector<2x32xf32>
    %247 = arith.addf %246, %35 : vector<2x32xf32>
    %c0_186 = arith.constant 0 : index
    %c0_187 = arith.constant 0 : index
    %c3 = arith.constant 3 : index
    %c0_188 = arith.constant 0 : index
    %c0_189 = arith.constant 0 : index
    %248 = vector.load %arg0[%c0_186, %c0_187, %c3, %c0_188, %c0_189] : memref<2x3x8x2x32xf32, #tpu.memory_space<vmem>>, vector<1x1x1x2x32xf32>
    %249 = vector.shape_cast %248 : vector<1x1x1x2x32xf32> to vector<2x32xf32>
    %250 = arith.addf %249, %237 : vector<2x32xf32>
    %251 = arith.negf %250 : vector<2x32xf32>
    %252 = math.exp %251 : vector<2x32xf32>
    %cst_190 = arith.constant 1.000000e+00 : f32
    %253 = vector.broadcast %cst_190 : f32 to vector<2x32xf32>
    %254 = arith.addf %253, %252 : vector<2x32xf32>
    %255 = arith.divf %253, %254 : vector<2x32xf32>
    %c0_191 = arith.constant 0 : index
    %c1_192 = arith.constant 1 : index
    %c3_193 = arith.constant 3 : index
    %c0_194 = arith.constant 0 : index
    %c0_195 = arith.constant 0 : index
    %256 = vector.load %arg0[%c0_191, %c1_192, %c3_193, %c0_194, %c0_195] : memref<2x3x8x2x32xf32, #tpu.memory_space<vmem>>, vector<1x1x1x2x32xf32>
    %257 = vector.shape_cast %256 : vector<1x1x1x2x32xf32> to vector<2x32xf32>
    %258 = arith.addf %257, %239 : vector<2x32xf32>
    %259 = arith.negf %258 : vector<2x32xf32>
    %260 = math.exp %259 : vector<2x32xf32>
    %cst_196 = arith.constant 1.000000e+00 : f32
    %261 = vector.broadcast %cst_196 : f32 to vector<2x32xf32>
    %262 = arith.addf %261, %260 : vector<2x32xf32>
    %263 = arith.divf %261, %262 : vector<2x32xf32>
    %c0_197 = arith.constant 0 : index
    %c2_198 = arith.constant 2 : index
    %c3_199 = arith.constant 3 : index
    %c0_200 = arith.constant 0 : index
    %c0_201 = arith.constant 0 : index
    %264 = vector.load %arg0[%c0_197, %c2_198, %c3_199, %c0_200, %c0_201] : memref<2x3x8x2x32xf32, #tpu.memory_space<vmem>>, vector<1x1x1x2x32xf32>
    %265 = vector.shape_cast %264 : vector<1x1x1x2x32xf32> to vector<2x32xf32>
    %266 = arith.mulf %255, %241 : vector<2x32xf32>
    %267 = arith.addf %265, %266 : vector<2x32xf32>
    %268 = math.tanh %267 : vector<2x32xf32>
    %269 = arith.subf %205, %268 : vector<2x32xf32>
    %270 = arith.mulf %263, %269 : vector<2x32xf32>
    %271 = arith.addf %268, %270 : vector<2x32xf32>
    %c1_202 = arith.constant 1 : index
    %c0_203 = arith.constant 0 : index
    %c4 = arith.constant 4 : index
    %c0_204 = arith.constant 0 : index
    %c0_205 = arith.constant 0 : index
    %272 = vector.load %arg0[%c1_202, %c0_203, %c4, %c0_204, %c0_205] : memref<2x3x8x2x32xf32, #tpu.memory_space<vmem>>, vector<1x1x1x2x32xf32>
    %273 = vector.shape_cast %272 : vector<1x1x1x2x32xf32> to vector<2x32xf32>
    %274 = arith.addf %273, %243 : vector<2x32xf32>
    %275 = arith.negf %274 : vector<2x32xf32>
    %276 = math.exp %275 : vector<2x32xf32>
    %cst_206 = arith.constant 1.000000e+00 : f32
    %277 = vector.broadcast %cst_206 : f32 to vector<2x32xf32>
    %278 = arith.addf %277, %276 : vector<2x32xf32>
    %279 = arith.divf %277, %278 : vector<2x32xf32>
    %c1_207 = arith.constant 1 : index
    %c1_208 = arith.constant 1 : index
    %c4_209 = arith.constant 4 : index
    %c0_210 = arith.constant 0 : index
    %c0_211 = arith.constant 0 : index
    %280 = vector.load %arg0[%c1_207, %c1_208, %c4_209, %c0_210, %c0_211] : memref<2x3x8x2x32xf32, #tpu.memory_space<vmem>>, vector<1x1x1x2x32xf32>
    %281 = vector.shape_cast %280 : vector<1x1x1x2x32xf32> to vector<2x32xf32>
    %282 = arith.addf %281, %245 : vector<2x32xf32>
    %283 = arith.negf %282 : vector<2x32xf32>
    %284 = math.exp %283 : vector<2x32xf32>
    %cst_212 = arith.constant 1.000000e+00 : f32
    %285 = vector.broadcast %cst_212 : f32 to vector<2x32xf32>
    %286 = arith.addf %285, %284 : vector<2x32xf32>
    %287 = arith.divf %285, %286 : vector<2x32xf32>
    %c1_213 = arith.constant 1 : index
    %c2_214 = arith.constant 2 : index
    %c4_215 = arith.constant 4 : index
    %c0_216 = arith.constant 0 : index
    %c0_217 = arith.constant 0 : index
    %288 = vector.load %arg0[%c1_213, %c2_214, %c4_215, %c0_216, %c0_217] : memref<2x3x8x2x32xf32, #tpu.memory_space<vmem>>, vector<1x1x1x2x32xf32>
    %289 = vector.shape_cast %288 : vector<1x1x1x2x32xf32> to vector<2x32xf32>
    %290 = arith.mulf %279, %247 : vector<2x32xf32>
    %291 = arith.addf %289, %290 : vector<2x32xf32>
    %292 = math.tanh %291 : vector<2x32xf32>
    %293 = arith.subf %229, %292 : vector<2x32xf32>
    %294 = arith.mulf %287, %293 : vector<2x32xf32>
    %295 = arith.addf %292, %294 : vector<2x32xf32>
    %c0_218 = arith.constant 0 : index
    %c3_219 = arith.constant 3 : index
    %c0_220 = arith.constant 0 : index
    %296 = vector.load %arg3[%c0_218, %c3_219, %c0_220] : memref<2x8x64xf32, #tpu.memory_space<vmem>>, vector<2x1x32xf32>
    %297 = vector.shape_cast %296 : vector<2x1x32xf32> to vector<2x32xf32>
    %298 = vector.shape_cast %271 : vector<2x32xf32> to vector<2x1x32xf32>
    tpu.vector_store %arg3[%c0_218, %c3_219, %c0_220], %298 {strides = array<i32>} : memref<2x8x64xf32, #tpu.memory_space<vmem>>, vector<2x1x32xf32>,
    %c0_221 = arith.constant 0 : index
    %c4_222 = arith.constant 4 : index
    %c32_223 = arith.constant 32 : index
    %299 = vector.load %arg3[%c0_221, %c4_222, %c32_223] : memref<2x8x64xf32, #tpu.memory_space<vmem>>, vector<2x1x32xf32>
    %300 = vector.shape_cast %299 : vector<2x1x32xf32> to vector<2x32xf32>
    %301 = vector.shape_cast %295 : vector<2x32xf32> to vector<2x1x32xf32>
    tpu.vector_store %arg3[%c0_221, %c4_222, %c32_223], %301 {strides = array<i32>} : memref<2x8x64xf32, #tpu.memory_space<vmem>>, vector<2x1x32xf32>,
    %cst_224 = arith.constant dense<0.000000e+00> : vector<2x32xf32>
    %302 = tpu.matmul %271, %1, %cst_224 {dimension_numbers = #tpu.dot_dimension_numbers<[1], [0], [0], [1], [0, 0, 1, 1], [], []>} : vector<2x32xf32>, vector<32x32xf32>, vector<2x32xf32> -> vector<2x32xf32>
    %303 = arith.addf %302, %15 : vector<2x32xf32>
    %cst_225 = arith.constant dense<0.000000e+00> : vector<2x32xf32>
    %304 = tpu.matmul %271, %3, %cst_225 {dimension_numbers = #tpu.dot_dimension_numbers<[1], [0], [0], [1], [0, 0, 1, 1], [], []>} : vector<2x32xf32>, vector<32x32xf32>, vector<2x32xf32> -> vector<2x32xf32>
    %305 = arith.addf %304, %19 : vector<2x32xf32>
    %cst_226 = arith.constant dense<0.000000e+00> : vector<2x32xf32>
    %306 = tpu.matmul %271, %5, %cst_226 {dimension_numbers = #tpu.dot_dimension_numbers<[1], [0], [0], [1], [0, 0, 1, 1], [], []>} : vector<2x32xf32>, vector<32x32xf32>, vector<2x32xf32> -> vector<2x32xf32>
    %307 = arith.addf %306, %23 : vector<2x32xf32>
    %cst_227 = arith.constant dense<0.000000e+00> : vector<2x32xf32>
    %308 = tpu.matmul %295, %7, %cst_227 {dimension_numbers = #tpu.dot_dimension_numbers<[1], [0], [0], [1], [0, 0, 1, 1], [], []>} : vector<2x32xf32>, vector<32x32xf32>, vector<2x32xf32> -> vector<2x32xf32>
    %309 = arith.addf %308, %27 : vector<2x32xf32>
    %cst_228 = arith.constant dense<0.000000e+00> : vector<2x32xf32>
    %310 = tpu.matmul %295, %9, %cst_228 {dimension_numbers = #tpu.dot_dimension_numbers<[1], [0], [0], [1], [0, 0, 1, 1], [], []>} : vector<2x32xf32>, vector<32x32xf32>, vector<2x32xf32> -> vector<2x32xf32>
    %311 = arith.addf %310, %31 : vector<2x32xf32>
    %cst_229 = arith.constant dense<0.000000e+00> : vector<2x32xf32>
    %312 = tpu.matmul %295, %11, %cst_229 {dimension_numbers = #tpu.dot_dimension_numbers<[1], [0], [0], [1], [0, 0, 1, 1], [], []>} : vector<2x32xf32>, vector<32x32xf32>, vector<2x32xf32> -> vector<2x32xf32>
    %313 = arith.addf %312, %35 : vector<2x32xf32>
    %c0_230 = arith.constant 0 : index
    %c0_231 = arith.constant 0 : index
    %c4_232 = arith.constant 4 : index
    %c0_233 = arith.constant 0 : index
    %c0_234 = arith.constant 0 : index
    %314 = vector.load %arg0[%c0_230, %c0_231, %c4_232, %c0_233, %c0_234] : memref<2x3x8x2x32xf32, #tpu.memory_space<vmem>>, vector<1x1x1x2x32xf32>
    %315 = vector.shape_cast %314 : vector<1x1x1x2x32xf32> to vector<2x32xf32>
    %316 = arith.addf %315, %303 : vector<2x32xf32>
    %317 = arith.negf %316 : vector<2x32xf32>
    %318 = math.exp %317 : vector<2x32xf32>
    %cst_235 = arith.constant 1.000000e+00 : f32
    %319 = vector.broadcast %cst_235 : f32 to vector<2x32xf32>
    %320 = arith.addf %319, %318 : vector<2x32xf32>
    %321 = arith.divf %319, %320 : vector<2x32xf32>
    %c0_236 = arith.constant 0 : index
    %c1_237 = arith.constant 1 : index
    %c4_238 = arith.constant 4 : index
    %c0_239 = arith.constant 0 : index
    %c0_240 = arith.constant 0 : index
    %322 = vector.load %arg0[%c0_236, %c1_237, %c4_238, %c0_239, %c0_240] : memref<2x3x8x2x32xf32, #tpu.memory_space<vmem>>, vector<1x1x1x2x32xf32>
    %323 = vector.shape_cast %322 : vector<1x1x1x2x32xf32> to vector<2x32xf32>
    %324 = arith.addf %323, %305 : vector<2x32xf32>
    %325 = arith.negf %324 : vector<2x32xf32>
    %326 = math.exp %325 : vector<2x32xf32>
    %cst_241 = arith.constant 1.000000e+00 : f32
    %327 = vector.broadcast %cst_241 : f32 to vector<2x32xf32>
    %328 = arith.addf %327, %326 : vector<2x32xf32>
    %329 = arith.divf %327, %328 : vector<2x32xf32>
    %c0_242 = arith.constant 0 : index
    %c2_243 = arith.constant 2 : index
    %c4_244 = arith.constant 4 : index
    %c0_245 = arith.constant 0 : index
    %c0_246 = arith.constant 0 : index
    %330 = vector.load %arg0[%c0_242, %c2_243, %c4_244, %c0_245, %c0_246] : memref<2x3x8x2x32xf32, #tpu.memory_space<vmem>>, vector<1x1x1x2x32xf32>
    %331 = vector.shape_cast %330 : vector<1x1x1x2x32xf32> to vector<2x32xf32>
    %332 = arith.mulf %321, %307 : vector<2x32xf32>
    %333 = arith.addf %331, %332 : vector<2x32xf32>
    %334 = math.tanh %333 : vector<2x32xf32>
    %335 = arith.subf %271, %334 : vector<2x32xf32>
    %336 = arith.mulf %329, %335 : vector<2x32xf32>
    %337 = arith.addf %334, %336 : vector<2x32xf32>
    %c1_247 = arith.constant 1 : index
    %c0_248 = arith.constant 0 : index
    %c3_249 = arith.constant 3 : index
    %c0_250 = arith.constant 0 : index
    %c0_251 = arith.constant 0 : index
    %338 = vector.load %arg0[%c1_247, %c0_248, %c3_249, %c0_250, %c0_251] : memref<2x3x8x2x32xf32, #tpu.memory_space<vmem>>, vector<1x1x1x2x32xf32>
    %339 = vector.shape_cast %338 : vector<1x1x1x2x32xf32> to vector<2x32xf32>
    %340 = arith.addf %339, %309 : vector<2x32xf32>
    %341 = arith.negf %340 : vector<2x32xf32>
    %342 = math.exp %341 : vector<2x32xf32>
    %cst_252 = arith.constant 1.000000e+00 : f32
    %343 = vector.broadcast %cst_252 : f32 to vector<2x32xf32>
    %344 = arith.addf %343, %342 : vector<2x32xf32>
    %345 = arith.divf %343, %344 : vector<2x32xf32>
    %c1_253 = arith.constant 1 : index
    %c1_254 = arith.constant 1 : index
    %c3_255 = arith.constant 3 : index
    %c0_256 = arith.constant 0 : index
    %c0_257 = arith.constant 0 : index
    %346 = vector.load %arg0[%c1_253, %c1_254, %c3_255, %c0_256, %c0_257] : memref<2x3x8x2x32xf32, #tpu.memory_space<vmem>>, vector<1x1x1x2x32xf32>
    %347 = vector.shape_cast %346 : vector<1x1x1x2x32xf32> to vector<2x32xf32>
    %348 = arith.addf %347, %311 : vector<2x32xf32>
    %349 = arith.negf %348 : vector<2x32xf32>
    %350 = math.exp %349 : vector<2x32xf32>
    %cst_258 = arith.constant 1.000000e+00 : f32
    %351 = vector.broadcast %cst_258 : f32 to vector<2x32xf32>
    %352 = arith.addf %351, %350 : vector<2x32xf32>
    %353 = arith.divf %351, %352 : vector<2x32xf32>
    %c1_259 = arith.constant 1 : index
    %c2_260 = arith.constant 2 : index
    %c3_261 = arith.constant 3 : index
    %c0_262 = arith.constant 0 : index
    %c0_263 = arith.constant 0 : index
    %354 = vector.load %arg0[%c1_259, %c2_260, %c3_261, %c0_262, %c0_263] : memref<2x3x8x2x32xf32, #tpu.memory_space<vmem>>, vector<1x1x1x2x32xf32>
    %355 = vector.shape_cast %354 : vector<1x1x1x2x32xf32> to vector<2x32xf32>
    %356 = arith.mulf %345, %313 : vector<2x32xf32>
    %357 = arith.addf %355, %356 : vector<2x32xf32>
    %358 = math.tanh %357 : vector<2x32xf32>
    %359 = arith.subf %295, %358 : vector<2x32xf32>
    %360 = arith.mulf %353, %359 : vector<2x32xf32>
    %361 = arith.addf %358, %360 : vector<2x32xf32>
    %c0_264 = arith.constant 0 : index
    %c4_265 = arith.constant 4 : index
    %c0_266 = arith.constant 0 : index
    %362 = vector.load %arg3[%c0_264, %c4_265, %c0_266] : memref<2x8x64xf32, #tpu.memory_space<vmem>>, vector<2x1x32xf32>
    %363 = vector.shape_cast %362 : vector<2x1x32xf32> to vector<2x32xf32>
    %364 = vector.shape_cast %337 : vector<2x32xf32> to vector<2x1x32xf32>
    tpu.vector_store %arg3[%c0_264, %c4_265, %c0_266], %364 {strides = array<i32>} : memref<2x8x64xf32, #tpu.memory_space<vmem>>, vector<2x1x32xf32>,
    %c0_267 = arith.constant 0 : index
    %c3_268 = arith.constant 3 : index
    %c32_269 = arith.constant 32 : index
    %365 = vector.load %arg3[%c0_267, %c3_268, %c32_269] : memref<2x8x64xf32, #tpu.memory_space<vmem>>, vector<2x1x32xf32>
    %366 = vector.shape_cast %365 : vector<2x1x32xf32> to vector<2x32xf32>
    %367 = vector.shape_cast %361 : vector<2x32xf32> to vector<2x1x32xf32>
    tpu.vector_store %arg3[%c0_267, %c3_268, %c32_269], %367 {strides = array<i32>} : memref<2x8x64xf32, #tpu.memory_space<vmem>>, vector<2x1x32xf32>,
    %cst_270 = arith.constant dense<0.000000e+00> : vector<2x32xf32>
    %368 = tpu.matmul %337, %1, %cst_270 {dimension_numbers = #tpu.dot_dimension_numbers<[1], [0], [0], [1], [0, 0, 1, 1], [], []>} : vector<2x32xf32>, vector<32x32xf32>, vector<2x32xf32> -> vector<2x32xf32>
    %369 = arith.addf %368, %15 : vector<2x32xf32>
    %cst_271 = arith.constant dense<0.000000e+00> : vector<2x32xf32>
    %370 = tpu.matmul %337, %3, %cst_271 {dimension_numbers = #tpu.dot_dimension_numbers<[1], [0], [0], [1], [0, 0, 1, 1], [], []>} : vector<2x32xf32>, vector<32x32xf32>, vector<2x32xf32> -> vector<2x32xf32>
    %371 = arith.addf %370, %19 : vector<2x32xf32>
    %cst_272 = arith.constant dense<0.000000e+00> : vector<2x32xf32>
    %372 = tpu.matmul %337, %5, %cst_272 {dimension_numbers = #tpu.dot_dimension_numbers<[1], [0], [0], [1], [0, 0, 1, 1], [], []>} : vector<2x32xf32>, vector<32x32xf32>, vector<2x32xf32> -> vector<2x32xf32>
    %373 = arith.addf %372, %23 : vector<2x32xf32>
    %cst_273 = arith.constant dense<0.000000e+00> : vector<2x32xf32>
    %374 = tpu.matmul %361, %7, %cst_273 {dimension_numbers = #tpu.dot_dimension_numbers<[1], [0], [0], [1], [0, 0, 1, 1], [], []>} : vector<2x32xf32>, vector<32x32xf32>, vector<2x32xf32> -> vector<2x32xf32>
    %375 = arith.addf %374, %27 : vector<2x32xf32>
    %cst_274 = arith.constant dense<0.000000e+00> : vector<2x32xf32>
    %376 = tpu.matmul %361, %9, %cst_274 {dimension_numbers = #tpu.dot_dimension_numbers<[1], [0], [0], [1], [0, 0, 1, 1], [], []>} : vector<2x32xf32>, vector<32x32xf32>, vector<2x32xf32> -> vector<2x32xf32>
    %377 = arith.addf %376, %31 : vector<2x32xf32>
    %cst_275 = arith.constant dense<0.000000e+00> : vector<2x32xf32>
    %378 = tpu.matmul %361, %11, %cst_275 {dimension_numbers = #tpu.dot_dimension_numbers<[1], [0], [0], [1], [0, 0, 1, 1], [], []>} : vector<2x32xf32>, vector<32x32xf32>, vector<2x32xf32> -> vector<2x32xf32>
    %379 = arith.addf %378, %35 : vector<2x32xf32>
    %c0_276 = arith.constant 0 : index
    %c0_277 = arith.constant 0 : index
    %c5_278 = arith.constant 5 : index
    %c0_279 = arith.constant 0 : index
    %c0_280 = arith.constant 0 : index
    %380 = vector.load %arg0[%c0_276, %c0_277, %c5_278, %c0_279, %c0_280] : memref<2x3x8x2x32xf32, #tpu.memory_space<vmem>>, vector<1x1x1x2x32xf32>
    %381 = vector.shape_cast %380 : vector<1x1x1x2x32xf32> to vector<2x32xf32>
    %382 = arith.addf %381, %369 : vector<2x32xf32>
    %383 = arith.negf %382 : vector<2x32xf32>
    %384 = math.exp %383 : vector<2x32xf32>
    %cst_281 = arith.constant 1.000000e+00 : f32
    %385 = vector.broadcast %cst_281 : f32 to vector<2x32xf32>
    %386 = arith.addf %385, %384 : vector<2x32xf32>
    %387 = arith.divf %385, %386 : vector<2x32xf32>
    %c0_282 = arith.constant 0 : index
    %c1_283 = arith.constant 1 : index
    %c5_284 = arith.constant 5 : index
    %c0_285 = arith.constant 0 : index
    %c0_286 = arith.constant 0 : index
    %388 = vector.load %arg0[%c0_282, %c1_283, %c5_284, %c0_285, %c0_286] : memref<2x3x8x2x32xf32, #tpu.memory_space<vmem>>, vector<1x1x1x2x32xf32>
    %389 = vector.shape_cast %388 : vector<1x1x1x2x32xf32> to vector<2x32xf32>
    %390 = arith.addf %389, %371 : vector<2x32xf32>
    %391 = arith.negf %390 : vector<2x32xf32>
    %392 = math.exp %391 : vector<2x32xf32>
    %cst_287 = arith.constant 1.000000e+00 : f32
    %393 = vector.broadcast %cst_287 : f32 to vector<2x32xf32>
    %394 = arith.addf %393, %392 : vector<2x32xf32>
    %395 = arith.divf %393, %394 : vector<2x32xf32>
    %c0_288 = arith.constant 0 : index
    %c2_289 = arith.constant 2 : index
    %c5_290 = arith.constant 5 : index
    %c0_291 = arith.constant 0 : index
    %c0_292 = arith.constant 0 : index
    %396 = vector.load %arg0[%c0_288, %c2_289, %c5_290, %c0_291, %c0_292] : memref<2x3x8x2x32xf32, #tpu.memory_space<vmem>>, vector<1x1x1x2x32xf32>
    %397 = vector.shape_cast %396 : vector<1x1x1x2x32xf32> to vector<2x32xf32>
    %398 = arith.mulf %387, %373 : vector<2x32xf32>
    %399 = arith.addf %397, %398 : vector<2x32xf32>
    %400 = math.tanh %399 : vector<2x32xf32>
    %401 = arith.subf %337, %400 : vector<2x32xf32>
    %402 = arith.mulf %395, %401 : vector<2x32xf32>
    %403 = arith.addf %400, %402 : vector<2x32xf32>
    %c1_293 = arith.constant 1 : index
    %c0_294 = arith.constant 0 : index
    %c2_295 = arith.constant 2 : index
    %c0_296 = arith.constant 0 : index
    %c0_297 = arith.constant 0 : index
    %404 = vector.load %arg0[%c1_293, %c0_294, %c2_295, %c0_296, %c0_297] : memref<2x3x8x2x32xf32, #tpu.memory_space<vmem>>, vector<1x1x1x2x32xf32>
    %405 = vector.shape_cast %404 : vector<1x1x1x2x32xf32> to vector<2x32xf32>
    %406 = arith.addf %405, %375 : vector<2x32xf32>
    %407 = arith.negf %406 : vector<2x32xf32>
    %408 = math.exp %407 : vector<2x32xf32>
    %cst_298 = arith.constant 1.000000e+00 : f32
    %409 = vector.broadcast %cst_298 : f32 to vector<2x32xf32>
    %410 = arith.addf %409, %408 : vector<2x32xf32>
    %411 = arith.divf %409, %410 : vector<2x32xf32>
    %c1_299 = arith.constant 1 : index
    %c1_300 = arith.constant 1 : index
    %c2_301 = arith.constant 2 : index
    %c0_302 = arith.constant 0 : index
    %c0_303 = arith.constant 0 : index
    %412 = vector.load %arg0[%c1_299, %c1_300, %c2_301, %c0_302, %c0_303] : memref<2x3x8x2x32xf32, #tpu.memory_space<vmem>>, vector<1x1x1x2x32xf32>
    %413 = vector.shape_cast %412 : vector<1x1x1x2x32xf32> to vector<2x32xf32>
    %414 = arith.addf %413, %377 : vector<2x32xf32>
    %415 = arith.negf %414 : vector<2x32xf32>
    %416 = math.exp %415 : vector<2x32xf32>
    %cst_304 = arith.constant 1.000000e+00 : f32
    %417 = vector.broadcast %cst_304 : f32 to vector<2x32xf32>
    %418 = arith.addf %417, %416 : vector<2x32xf32>
    %419 = arith.divf %417, %418 : vector<2x32xf32>
    %c1_305 = arith.constant 1 : index
    %c2_306 = arith.constant 2 : index
    %c2_307 = arith.constant 2 : index
    %c0_308 = arith.constant 0 : index
    %c0_309 = arith.constant 0 : index
    %420 = vector.load %arg0[%c1_305, %c2_306, %c2_307, %c0_308, %c0_309] : memref<2x3x8x2x32xf32, #tpu.memory_space<vmem>>, vector<1x1x1x2x32xf32>
    %421 = vector.shape_cast %420 : vector<1x1x1x2x32xf32> to vector<2x32xf32>
    %422 = arith.mulf %411, %379 : vector<2x32xf32>
    %423 = arith.addf %421, %422 : vector<2x32xf32>
    %424 = math.tanh %423 : vector<2x32xf32>
    %425 = arith.subf %361, %424 : vector<2x32xf32>
    %426 = arith.mulf %419, %425 : vector<2x32xf32>
    %427 = arith.addf %424, %426 : vector<2x32xf32>
    %c0_310 = arith.constant 0 : index
    %c5_311 = arith.constant 5 : index
    %c0_312 = arith.constant 0 : index
    %428 = vector.load %arg3[%c0_310, %c5_311, %c0_312] : memref<2x8x64xf32, #tpu.memory_space<vmem>>, vector<2x1x32xf32>
    %429 = vector.shape_cast %428 : vector<2x1x32xf32> to vector<2x32xf32>
    %430 = vector.shape_cast %403 : vector<2x32xf32> to vector<2x1x32xf32>
    tpu.vector_store %arg3[%c0_310, %c5_311, %c0_312], %430 {strides = array<i32>} : memref<2x8x64xf32, #tpu.memory_space<vmem>>, vector<2x1x32xf32>,
    %c0_313 = arith.constant 0 : index
    %c2_314 = arith.constant 2 : index
    %c32_315 = arith.constant 32 : index
    %431 = vector.load %arg3[%c0_313, %c2_314, %c32_315] : memref<2x8x64xf32, #tpu.memory_space<vmem>>, vector<2x1x32xf32>
    %432 = vector.shape_cast %431 : vector<2x1x32xf32> to vector<2x32xf32>
    %433 = vector.shape_cast %427 : vector<2x32xf32> to vector<2x1x32xf32>
    tpu.vector_store %arg3[%c0_313, %c2_314, %c32_315], %433 {strides = array<i32>} : memref<2x8x64xf32, #tpu.memory_space<vmem>>, vector<2x1x32xf32>,
    %cst_316 = arith.constant dense<0.000000e+00> : vector<2x32xf32>
    %434 = tpu.matmul %403, %1, %cst_316 {dimension_numbers = #tpu.dot_dimension_numbers<[1], [0], [0], [1], [0, 0, 1, 1], [], []>} : vector<2x32xf32>, vector<32x32xf32>, vector<2x32xf32> -> vector<2x32xf32>
    %435 = arith.addf %434, %15 : vector<2x32xf32>
    %cst_317 = arith.constant dense<0.000000e+00> : vector<2x32xf32>
    %436 = tpu.matmul %403, %3, %cst_317 {dimension_numbers = #tpu.dot_dimension_numbers<[1], [0], [0], [1], [0, 0, 1, 1], [], []>} : vector<2x32xf32>, vector<32x32xf32>, vector<2x32xf32> -> vector<2x32xf32>
    %437 = arith.addf %436, %19 : vector<2x32xf32>
    %cst_318 = arith.constant dense<0.000000e+00> : vector<2x32xf32>
    %438 = tpu.matmul %403, %5, %cst_318 {dimension_numbers = #tpu.dot_dimension_numbers<[1], [0], [0], [1], [0, 0, 1, 1], [], []>} : vector<2x32xf32>, vector<32x32xf32>, vector<2x32xf32> -> vector<2x32xf32>
    %439 = arith.addf %438, %23 : vector<2x32xf32>
    %cst_319 = arith.constant dense<0.000000e+00> : vector<2x32xf32>
    %440 = tpu.matmul %427, %7, %cst_319 {dimension_numbers = #tpu.dot_dimension_numbers<[1], [0], [0], [1], [0, 0, 1, 1], [], []>} : vector<2x32xf32>, vector<32x32xf32>, vector<2x32xf32> -> vector<2x32xf32>
    %441 = arith.addf %440, %27 : vector<2x32xf32>
    %cst_320 = arith.constant dense<0.000000e+00> : vector<2x32xf32>
    %442 = tpu.matmul %427, %9, %cst_320 {dimension_numbers = #tpu.dot_dimension_numbers<[1], [0], [0], [1], [0, 0, 1, 1], [], []>} : vector<2x32xf32>, vector<32x32xf32>, vector<2x32xf32> -> vector<2x32xf32>
    %443 = arith.addf %442, %31 : vector<2x32xf32>
    %cst_321 = arith.constant dense<0.000000e+00> : vector<2x32xf32>
    %444 = tpu.matmul %427, %11, %cst_321 {dimension_numbers = #tpu.dot_dimension_numbers<[1], [0], [0], [1], [0, 0, 1, 1], [], []>} : vector<2x32xf32>, vector<32x32xf32>, vector<2x32xf32> -> vector<2x32xf32>
    %445 = arith.addf %444, %35 : vector<2x32xf32>
    %c0_322 = arith.constant 0 : index
    %c0_323 = arith.constant 0 : index
    %c6_324 = arith.constant 6 : index
    %c0_325 = arith.constant 0 : index
    %c0_326 = arith.constant 0 : index
    %446 = vector.load %arg0[%c0_322, %c0_323, %c6_324, %c0_325, %c0_326] : memref<2x3x8x2x32xf32, #tpu.memory_space<vmem>>, vector<1x1x1x2x32xf32>
    %447 = vector.shape_cast %446 : vector<1x1x1x2x32xf32> to vector<2x32xf32>
    %448 = arith.addf %447, %435 : vector<2x32xf32>
    %449 = arith.negf %448 : vector<2x32xf32>
    %450 = math.exp %449 : vector<2x32xf32>
    %cst_327 = arith.constant 1.000000e+00 : f32
    %451 = vector.broadcast %cst_327 : f32 to vector<2x32xf32>
    %452 = arith.addf %451, %450 : vector<2x32xf32>
    %453 = arith.divf %451, %452 : vector<2x32xf32>
    %c0_328 = arith.constant 0 : index
    %c1_329 = arith.constant 1 : index
    %c6_330 = arith.constant 6 : index
    %c0_331 = arith.constant 0 : index
    %c0_332 = arith.constant 0 : index
    %454 = vector.load %arg0[%c0_328, %c1_329, %c6_330, %c0_331, %c0_332] : memref<2x3x8x2x32xf32, #tpu.memory_space<vmem>>, vector<1x1x1x2x32xf32>
    %455 = vector.shape_cast %454 : vector<1x1x1x2x32xf32> to vector<2x32xf32>
    %456 = arith.addf %455, %437 : vector<2x32xf32>
    %457 = arith.negf %456 : vector<2x32xf32>
    %458 = math.exp %457 : vector<2x32xf32>
    %cst_333 = arith.constant 1.000000e+00 : f32
    %459 = vector.broadcast %cst_333 : f32 to vector<2x32xf32>
    %460 = arith.addf %459, %458 : vector<2x32xf32>
    %461 = arith.divf %459, %460 : vector<2x32xf32>
    %c0_334 = arith.constant 0 : index
    %c2_335 = arith.constant 2 : index
    %c6_336 = arith.constant 6 : index
    %c0_337 = arith.constant 0 : index
    %c0_338 = arith.constant 0 : index
    %462 = vector.load %arg0[%c0_334, %c2_335, %c6_336, %c0_337, %c0_338] : memref<2x3x8x2x32xf32, #tpu.memory_space<vmem>>, vector<1x1x1x2x32xf32>
    %463 = vector.shape_cast %462 : vector<1x1x1x2x32xf32> to vector<2x32xf32>
    %464 = arith.mulf %453, %439 : vector<2x32xf32>
    %465 = arith.addf %463, %464 : vector<2x32xf32>
    %466 = math.tanh %465 : vector<2x32xf32>
    %467 = arith.subf %403, %466 : vector<2x32xf32>
    %468 = arith.mulf %461, %467 : vector<2x32xf32>
    %469 = arith.addf %466, %468 : vector<2x32xf32>
    %c1_339 = arith.constant 1 : index
    %c0_340 = arith.constant 0 : index
    %c1_341 = arith.constant 1 : index
    %c0_342 = arith.constant 0 : index
    %c0_343 = arith.constant 0 : index
    %470 = vector.load %arg0[%c1_339, %c0_340, %c1_341, %c0_342, %c0_343] : memref<2x3x8x2x32xf32, #tpu.memory_space<vmem>>, vector<1x1x1x2x32xf32>
    %471 = vector.shape_cast %470 : vector<1x1x1x2x32xf32> to vector<2x32xf32>
    %472 = arith.addf %471, %441 : vector<2x32xf32>
    %473 = arith.negf %472 : vector<2x32xf32>
    %474 = math.exp %473 : vector<2x32xf32>
    %cst_344 = arith.constant 1.000000e+00 : f32
    %475 = vector.broadcast %cst_344 : f32 to vector<2x32xf32>
    %476 = arith.addf %475, %474 : vector<2x32xf32>
    %477 = arith.divf %475, %476 : vector<2x32xf32>
    %c1_345 = arith.constant 1 : index
    %c1_346 = arith.constant 1 : index
    %c1_347 = arith.constant 1 : index
    %c0_348 = arith.constant 0 : index
    %c0_349 = arith.constant 0 : index
    %478 = vector.load %arg0[%c1_345, %c1_346, %c1_347, %c0_348, %c0_349] : memref<2x3x8x2x32xf32, #tpu.memory_space<vmem>>, vector<1x1x1x2x32xf32>
    %479 = vector.shape_cast %478 : vector<1x1x1x2x32xf32> to vector<2x32xf32>
    %480 = arith.addf %479, %443 : vector<2x32xf32>
    %481 = arith.negf %480 : vector<2x32xf32>
    %482 = math.exp %481 : vector<2x32xf32>
    %cst_350 = arith.constant 1.000000e+00 : f32
    %483 = vector.broadcast %cst_350 : f32 to vector<2x32xf32>
    %484 = arith.addf %483, %482 : vector<2x32xf32>
    %485 = arith.divf %483, %484 : vector<2x32xf32>
    %c1_351 = arith.constant 1 : index
    %c2_352 = arith.constant 2 : index
    %c1_353 = arith.constant 1 : index
    %c0_354 = arith.constant 0 : index
    %c0_355 = arith.constant 0 : index
    %486 = vector.load %arg0[%c1_351, %c2_352, %c1_353, %c0_354, %c0_355] : memref<2x3x8x2x32xf32, #tpu.memory_space<vmem>>, vector<1x1x1x2x32xf32>
    %487 = vector.shape_cast %486 : vector<1x1x1x2x32xf32> to vector<2x32xf32>
    %488 = arith.mulf %477, %445 : vector<2x32xf32>
    %489 = arith.addf %487, %488 : vector<2x32xf32>
    %490 = math.tanh %489 : vector<2x32xf32>
    %491 = arith.subf %427, %490 : vector<2x32xf32>
    %492 = arith.mulf %485, %491 : vector<2x32xf32>
    %493 = arith.addf %490, %492 : vector<2x32xf32>
    %c0_356 = arith.constant 0 : index
    %c6_357 = arith.constant 6 : index
    %c0_358 = arith.constant 0 : index
    %494 = vector.load %arg3[%c0_356, %c6_357, %c0_358] : memref<2x8x64xf32, #tpu.memory_space<vmem>>, vector<2x1x32xf32>
    %495 = vector.shape_cast %494 : vector<2x1x32xf32> to vector<2x32xf32>
    %496 = vector.shape_cast %469 : vector<2x32xf32> to vector<2x1x32xf32>
    tpu.vector_store %arg3[%c0_356, %c6_357, %c0_358], %496 {strides = array<i32>} : memref<2x8x64xf32, #tpu.memory_space<vmem>>, vector<2x1x32xf32>,
    %c0_359 = arith.constant 0 : index
    %c1_360 = arith.constant 1 : index
    %c32_361 = arith.constant 32 : index
    %497 = vector.load %arg3[%c0_359, %c1_360, %c32_361] : memref<2x8x64xf32, #tpu.memory_space<vmem>>, vector<2x1x32xf32>
    %498 = vector.shape_cast %497 : vector<2x1x32xf32> to vector<2x32xf32>
    %499 = vector.shape_cast %493 : vector<2x32xf32> to vector<2x1x32xf32>
    tpu.vector_store %arg3[%c0_359, %c1_360, %c32_361], %499 {strides = array<i32>} : memref<2x8x64xf32, #tpu.memory_space<vmem>>, vector<2x1x32xf32>,
    %cst_362 = arith.constant dense<0.000000e+00> : vector<2x32xf32>
    %500 = tpu.matmul %469, %1, %cst_362 {dimension_numbers = #tpu.dot_dimension_numbers<[1], [0], [0], [1], [0, 0, 1, 1], [], []>} : vector<2x32xf32>, vector<32x32xf32>, vector<2x32xf32> -> vector<2x32xf32>
    %501 = arith.addf %500, %15 : vector<2x32xf32>
    %cst_363 = arith.constant dense<0.000000e+00> : vector<2x32xf32>
    %502 = tpu.matmul %469, %3, %cst_363 {dimension_numbers = #tpu.dot_dimension_numbers<[1], [0], [0], [1], [0, 0, 1, 1], [], []>} : vector<2x32xf32>, vector<32x32xf32>, vector<2x32xf32> -> vector<2x32xf32>
    %503 = arith.addf %502, %19 : vector<2x32xf32>
    %cst_364 = arith.constant dense<0.000000e+00> : vector<2x32xf32>
    %504 = tpu.matmul %469, %5, %cst_364 {dimension_numbers = #tpu.dot_dimension_numbers<[1], [0], [0], [1], [0, 0, 1, 1], [], []>} : vector<2x32xf32>, vector<32x32xf32>, vector<2x32xf32> -> vector<2x32xf32>
    %505 = arith.addf %504, %23 : vector<2x32xf32>
    %cst_365 = arith.constant dense<0.000000e+00> : vector<2x32xf32>
    %506 = tpu.matmul %493, %7, %cst_365 {dimension_numbers = #tpu.dot_dimension_numbers<[1], [0], [0], [1], [0, 0, 1, 1], [], []>} : vector<2x32xf32>, vector<32x32xf32>, vector<2x32xf32> -> vector<2x32xf32>
    %507 = arith.addf %506, %27 : vector<2x32xf32>
    %cst_366 = arith.constant dense<0.000000e+00> : vector<2x32xf32>
    %508 = tpu.matmul %493, %9, %cst_366 {dimension_numbers = #tpu.dot_dimension_numbers<[1], [0], [0], [1], [0, 0, 1, 1], [], []>} : vector<2x32xf32>, vector<32x32xf32>, vector<2x32xf32> -> vector<2x32xf32>
    %509 = arith.addf %508, %31 : vector<2x32xf32>
    %cst_367 = arith.constant dense<0.000000e+00> : vector<2x32xf32>
    %510 = tpu.matmul %493, %11, %cst_367 {dimension_numbers = #tpu.dot_dimension_numbers<[1], [0], [0], [1], [0, 0, 1, 1], [], []>} : vector<2x32xf32>, vector<32x32xf32>, vector<2x32xf32> -> vector<2x32xf32>
    %511 = arith.addf %510, %35 : vector<2x32xf32>
    %c0_368 = arith.constant 0 : index
    %c0_369 = arith.constant 0 : index
    %c7_370 = arith.constant 7 : index
    %c0_371 = arith.constant 0 : index
    %c0_372 = arith.constant 0 : index
    %512 = vector.load %arg0[%c0_368, %c0_369, %c7_370, %c0_371, %c0_372] : memref<2x3x8x2x32xf32, #tpu.memory_space<vmem>>, vector<1x1x1x2x32xf32>
    %513 = vector.shape_cast %512 : vector<1x1x1x2x32xf32> to vector<2x32xf32>
    %514 = arith.addf %513, %501 : vector<2x32xf32>
    %515 = arith.negf %514 : vector<2x32xf32>
    %516 = math.exp %515 : vector<2x32xf32>
    %cst_373 = arith.constant 1.000000e+00 : f32
    %517 = vector.broadcast %cst_373 : f32 to vector<2x32xf32>
    %518 = arith.addf %517, %516 : vector<2x32xf32>
    %519 = arith.divf %517, %518 : vector<2x32xf32>
    %c0_374 = arith.constant 0 : index
    %c1_375 = arith.constant 1 : index
    %c7_376 = arith.constant 7 : index
    %c0_377 = arith.constant 0 : index
    %c0_378 = arith.constant 0 : index
    %520 = vector.load %arg0[%c0_374, %c1_375, %c7_376, %c0_377, %c0_378] : memref<2x3x8x2x32xf32, #tpu.memory_space<vmem>>, vector<1x1x1x2x32xf32>
    %521 = vector.shape_cast %520 : vector<1x1x1x2x32xf32> to vector<2x32xf32>
    %522 = arith.addf %521, %503 : vector<2x32xf32>
    %523 = arith.negf %522 : vector<2x32xf32>
    %524 = math.exp %523 : vector<2x32xf32>
    %cst_379 = arith.constant 1.000000e+00 : f32
    %525 = vector.broadcast %cst_379 : f32 to vector<2x32xf32>
    %526 = arith.addf %525, %524 : vector<2x32xf32>
    %527 = arith.divf %525, %526 : vector<2x32xf32>
    %c0_380 = arith.constant 0 : index
    %c2_381 = arith.constant 2 : index
    %c7_382 = arith.constant 7 : index
    %c0_383 = arith.constant 0 : index
    %c0_384 = arith.constant 0 : index
    %528 = vector.load %arg0[%c0_380, %c2_381, %c7_382, %c0_383, %c0_384] : memref<2x3x8x2x32xf32, #tpu.memory_space<vmem>>, vector<1x1x1x2x32xf32>
    %529 = vector.shape_cast %528 : vector<1x1x1x2x32xf32> to vector<2x32xf32>
    %530 = arith.mulf %519, %505 : vector<2x32xf32>
    %531 = arith.addf %529, %530 : vector<2x32xf32>
    %532 = math.tanh %531 : vector<2x32xf32>
    %533 = arith.subf %469, %532 : vector<2x32xf32>
    %534 = arith.mulf %527, %533 : vector<2x32xf32>
    %535 = arith.addf %532, %534 : vector<2x32xf32>
    %c1_385 = arith.constant 1 : index
    %c0_386 = arith.constant 0 : index
    %c0_387 = arith.constant 0 : index
    %c0_388 = arith.constant 0 : index
    %c0_389 = arith.constant 0 : index
    %536 = vector.load %arg0[%c1_385, %c0_386, %c0_387, %c0_388, %c0_389] : memref<2x3x8x2x32xf32, #tpu.memory_space<vmem>>, vector<1x1x1x2x32xf32>
    %537 = vector.shape_cast %536 : vector<1x1x1x2x32xf32> to vector<2x32xf32>
    %538 = arith.addf %537, %507 : vector<2x32xf32>
    %539 = arith.negf %538 : vector<2x32xf32>
    %540 = math.exp %539 : vector<2x32xf32>
    %cst_390 = arith.constant 1.000000e+00 : f32
    %541 = vector.broadcast %cst_390 : f32 to vector<2x32xf32>
    %542 = arith.addf %541, %540 : vector<2x32xf32>
    %543 = arith.divf %541, %542 : vector<2x32xf32>
    %c1_391 = arith.constant 1 : index
    %c1_392 = arith.constant 1 : index
    %c0_393 = arith.constant 0 : index
    %c0_394 = arith.constant 0 : index
    %c0_395 = arith.constant 0 : index
    %544 = vector.load %arg0[%c1_391, %c1_392, %c0_393, %c0_394, %c0_395] : memref<2x3x8x2x32xf32, #tpu.memory_space<vmem>>, vector<1x1x1x2x32xf32>
    %545 = vector.shape_cast %544 : vector<1x1x1x2x32xf32> to vector<2x32xf32>
    %546 = arith.addf %545, %509 : vector<2x32xf32>
    %547 = arith.negf %546 : vector<2x32xf32>
    %548 = math.exp %547 : vector<2x32xf32>
    %cst_396 = arith.constant 1.000000e+00 : f32
    %549 = vector.broadcast %cst_396 : f32 to vector<2x32xf32>
    %550 = arith.addf %549, %548 : vector<2x32xf32>
    %551 = arith.divf %549, %550 : vector<2x32xf32>
    %c1_397 = arith.constant 1 : index
    %c2_398 = arith.constant 2 : index
    %c0_399 = arith.constant 0 : index
    %c0_400 = arith.constant 0 : index
    %c0_401 = arith.constant 0 : index
    %552 = vector.load %arg0[%c1_397, %c2_398, %c0_399, %c0_400, %c0_401] : memref<2x3x8x2x32xf32, #tpu.memory_space<vmem>>, vector<1x1x1x2x32xf32>
    %553 = vector.shape_cast %552 : vector<1x1x1x2x32xf32> to vector<2x32xf32>
    %554 = arith.mulf %543, %511 : vector<2x32xf32>
    %555 = arith.addf %553, %554 : vector<2x32xf32>
    %556 = math.tanh %555 : vector<2x32xf32>
    %557 = arith.subf %493, %556 : vector<2x32xf32>
    %558 = arith.mulf %551, %557 : vector<2x32xf32>
    %559 = arith.addf %556, %558 : vector<2x32xf32>
    %c0_402 = arith.constant 0 : index
    %c7_403 = arith.constant 7 : index
    %c0_404 = arith.constant 0 : index
    %560 = vector.load %arg3[%c0_402, %c7_403, %c0_404] : memref<2x8x64xf32, #tpu.memory_space<vmem>>, vector<2x1x32xf32>
    %561 = vector.shape_cast %560 : vector<2x1x32xf32> to vector<2x32xf32>
    %562 = vector.shape_cast %535 : vector<2x32xf32> to vector<2x1x32xf32>
    tpu.vector_store %arg3[%c0_402, %c7_403, %c0_404], %562 {strides = array<i32>} : memref<2x8x64xf32, #tpu.memory_space<vmem>>, vector<2x1x32xf32>,
    %c0_405 = arith.constant 0 : index
    %c0_406 = arith.constant 0 : index
    %c32_407 = arith.constant 32 : index
    %563 = vector.load %arg3[%c0_405, %c0_406, %c32_407] : memref<2x8x64xf32, #tpu.memory_space<vmem>>, vector<2x1x32xf32>
    %564 = vector.shape_cast %563 : vector<2x1x32xf32> to vector<2x32xf32>
    %565 = vector.shape_cast %559 : vector<2x32xf32> to vector<2x1x32xf32>
    tpu.vector_store %arg3[%c0_405, %c0_406, %c32_407], %565 {strides = array<i32>} : memref<2x8x64xf32, #tpu.memory_space<vmem>>, vector<2x1x32xf32>,
    return
  }
}

</mosaic_0001>

<bundles_post_ra>
// kernel: encoder_attn_forward.2
= control target key start
LH: loop header
LB: loop body
LE: loop exit
PB: predicated region body
PF: predicated region fallthrough
CT: control target
= control target key end

     0   :  { %v2381_v16 = vmov 0.0   ;;  %vm72_vm14 = vcmask 261120   ;;  %vm302_vm15 = vcmask 253952   ;;  %s2382_s7 = smov 32   ;;  %s3564_s1 = inlined_call_operand.vmem [shape: f32[2,3,32,32], index: 1, kind: input, shape index: {}]   ;;  %s3565_s2 = inlined_call_operand.vmem [shape: f32[2,3,1,32], index: 2, kind: input, shape index: {}]   ;;  %s3566_s0 = inlined_call_operand.vmem [shape: f32[2,3,8,2,32], index: 0, kind: input, shape index: {}]   ;;  %s3567_s3 = inlined_call_operand.vmem [shape: f32[2,8,64], index: 3, kind: output, shape index: {}]  }
   0x1   :  { %v2406_v0 = vld [vmem:[%s3564_s1 + $0x18] sm:$0xff]  ;;  %v2416_v2 = vld [vmem:[%s3564_s1 + $0x10] sm:$0xff]  ;;  %v2428_v4 = vld [vmem:[%s3564_s1 + $0x8] sm:$0xff] }
   0x2   :  { %v2411_v1 = vld [vmem:[%s3564_s1 + $0x78] sm:$0xff]  ;;  %88 = vmatpush.msra.mxu0 %v2406_v0  ;;  %v2423_v3 = vld [vmem:[%s3564_s1 + $0x70] sm:$0xff]  ;;  %v2433_v5 = vld [vmem:[%s3564_s1 + $0x68] sm:$0xff] }
   0x3   :  { %148 = vmatpush.msra.mxu3 %v2411_v1  ;;  %v2438_v6 = vld [vmem:[%s3564_s1 + $0x38] sm:$0xff]  ;;  %v2445_v7 = vld [vmem:[%s3564_s1 + $0x30] sm:$0xff]  ;;  %v2451_v8 = vld [vmem:[%s3564_s1] sm:$0xff] }
   0x4   :  { %89 = vmatpush.msra.mxu0 %v2416_v2  ;;  %108 = vmatpush.msra.mxu1 %v2438_v6  ;;  %v2456_v9 = vld [vmem:[%s3564_s1 + $0x60] sm:$0xff]  ;;  %v2463_v10 = vld [vmem:[%s3564_s1 + $0x58] sm:$0xff]  ;;  %v2474_v12 = vld [vmem:[%s3564_s1 + $0x28] sm:$0xff] }
   0x5   :  { %149 = vmatpush.msra.mxu3 %v2423_v3  ;;  %v2469_v11 = vld [vmem:[%s3564_s1 + $0x98] sm:$0xff]  ;;  %128 = vmatpush.msra.mxu2 %v2463_v10  ;;  %v2482_v13 = vld [vmem:[%s3564_s1 + $0x90] sm:$0xff]  ;;  %v2487_v14 = vld [vmem:[%s3564_s1 + $0x20] sm:$0xff] }
   0x6   :  { %90 = vmatpush.msra.mxu0 %v2428_v4  ;;  %109 = vmatpush.msra.mxu1 %v2445_v7  ;;  %v2492_v15 = vld [vmem:[%s3564_s1 + $0x50] sm:$0xff]  ;;  %v2497_v17 = vld [vmem:[%s3564_s1 + $0x48] sm:$0xff]  ;;  %v2510_v19 = vld [vmem:[%s3564_s1 + $0xb8] sm:$0xff] }
   0x7   :  { %150 = vmatpush.msra.mxu3 %v2433_v5  ;;  %v2504_v18 = vld [vmem:[%s3564_s1 + $0x88] sm:$0xff]  ;;  %129 = vmatpush.msra.mxu2 %v2492_v15  ;;  %v2518_v20 = vld [vmem:[%s3564_s1 + $0x40] sm:$0xff]  ;;  %v2531_v22 = vld [vmem:[%s3564_s1 + $0xb0] sm:$0xff] }
   0x8   :  { %91 = vmatpush.msra.mxu0 %v2451_v8  ;;  %110 = vmatpush.msra.mxu1 %v2474_v12  ;;  %v2523_v21 = vld [vmem:[%s3564_s1 + $0x80] sm:$0xff]  ;;  %v2539_v23 = vld [vmem:[%s3564_s1 + $0xa8] sm:$0xff]  ;;  %v2063_v33 = vld [vmem:[%s3566_s0 + $0x10] sm:$0x3] }
   0x9   :  { %151 = vmatpush.msra.mxu3 %v2456_v9  ;;  %92 = vmatmul.f32.vlgmr.msra.gmra.mxu0 %v2381_v16  ;;  %v2545_v24 = vld [vmem:[%s3564_s1 + $0xa0] sm:$0xff]  ;;  %v2066_v38 = vld [vmem:[%s3566_s0 + $0x3e] sm:$0x3]  ;;  %v2068_v42 = vld [vmem:[%s3566_s0 + $0x4e] sm:$0x3] }
   0xa   :  { %152 = vmatmul.f32.vlgmr.msra.gmra.mxu3 %v2381_v16  ;;  %168 = vmatpush.msrb.mxu0 %v2469_v11  ;;  %v2582_v25 = vld [vmem:[%s3565_s2] ss:$0 sm:$0xff]  ;;  %v2591_v29 = vld [vmem:[%s3565_s2 + $0x1] ss:$0 sm:$0xff]  ;;  %v2596_v31 = vld [vmem:[%s3565_s2 + $0x3] ss:$0 sm:$0xff] }
   0xb   :  { %352 = vmatpush.msrb.mxu3 %v2438_v6  ;;  %111 = vmatpush.msra.mxu1 %v2487_v14  ;;  %v196_v27 = vld [vmem:[%s3566_s0] sm:$0x3]  ;;  %v2605_v36 = vld [vmem:[%s3565_s2 + $0x4] ss:$0 sm:$0xff]  ;;  %v2624_v59 = vld [vmem:[%s3565_s2 + $0x2] ss:$0 sm:$0xff] }
   0xc   :  { %169 = vmatpush.msrb.mxu0 %v2482_v13  ;;  %112 = vmatmul.f32.vlgmr.msra.gmra.mxu1 %v2381_v16 }
   0xd   :  { %130 = vmatpush.msra.mxu2 %v2497_v17  ;;  %188 = vmatpush.msrb.mxu1 %v2510_v19 }
   0xe   :  { %170 = vmatpush.msrb.mxu0 %v2504_v18  ;;  %353 = vmatpush.msrb.mxu3 %v2445_v7 }
   0xf   :  { %131 = vmatpush.msra.mxu2 %v2518_v20  ;;  %189 = vmatpush.msrb.mxu1 %v2531_v22 }
  0x10   :  { %171 = vmatpush.msrb.mxu0 %v2523_v21  ;;  %132 = vmatmul.f32.vlgmr.msra.gmra.mxu2 %v2381_v16 }
  0x11   :  { %172 = vmatmul.f32.vlgmr.msrb.gmra.mxu0 %v2381_v16  ;;  %332 = vmatpush.msrb.mxu2 %v2406_v0 }
  0x12   :  { %372 = vmatpush.msra.mxu0 %v2463_v10  ;;  %190 = vmatpush.msrb.mxu1 %v2539_v23 }
  0x13   :  { %354 = vmatpush.msrb.mxu3 %v2474_v12  ;;  %333 = vmatpush.msrb.mxu2 %v2416_v2 }
  0x14   :  { %373 = vmatpush.msra.mxu0 %v2492_v15  ;;  %191 = vmatpush.msrb.mxu1 %v2545_v24 }
  0x15   :  { %355 = vmatpush.msrb.mxu3 %v2487_v14  ;;  %192 = vmatmul.f32.vlgmr.msrb.gmra.mxu1 %v2381_v16 }
  0x16   :  { %334 = vmatpush.msrb.mxu2 %v2428_v4  ;;  %374 = vmatpush.msra.mxu0 %v2497_v17 }
  0x17   :  { %394 = vmatpush.msra.mxu1 %v2411_v1  ;;  %434 = vmatpush.msra.mxu3 %v2510_v19 }
  0x18   :  { %335 = vmatpush.msrb.mxu2 %v2451_v8  ;;  %375 = vmatpush.msra.mxu0 %v2518_v20 }
  0x19   :  { %395 = vmatpush.msra.mxu1 %v2423_v3  ;;  %435 = vmatpush.msra.mxu3 %v2531_v22 }
  0x1a   :  { %414 = vmatpush.msra.mxu2 %v2469_v11  ;;  %577 = vmatpush.msrb.mxu0 %v2406_v0 }
  0x1b   :  { %396 = vmatpush.msra.mxu1 %v2433_v5  ;;  %436 = vmatpush.msra.mxu3 %v2539_v23 }
  0x1c   :  { %415 = vmatpush.msra.mxu2 %v2482_v13  ;;  %578 = vmatpush.msrb.mxu0 %v2416_v2 }
  0x1d   :  { %397 = vmatpush.msra.mxu1 %v2456_v9  ;;  %437 = vmatpush.msra.mxu3 %v2545_v24 }
  0x1e   :  { %416 = vmatpush.msra.mxu2 %v2504_v18  ;;  %579 = vmatpush.msrb.mxu0 %v2428_v4 }
  0x1f   :  { %597 = vmatpush.msrb.mxu1 %v2438_v6 }
  0x20   :  { %417 = vmatpush.msra.mxu2 %v2523_v21  ;;  %580 = vmatpush.msrb.mxu0 %v2451_v8 }
  0x21   :  { %598 = vmatpush.msrb.mxu1 %v2445_v7 }
  0x23   :  { %599 = vmatpush.msrb.mxu1 %v2474_v12 }
  0x25   :  { %600 = vmatpush.msrb.mxu1 %v2487_v14 }
  0x86   :  { %v93_v26 = vpop.f32.mrf.mxu0 }
  0x87   :  { %v94_v28 = vadd.f32 %v2582_v25, %v93_v26 }
  0x89   :  { %v197_v30 = vadd.f32 %v196_v27, %v94_v28  ;;  %v113_v32 = vpop.f32.mrf.mxu1 }
  0x8a   :  { %v114_v35 = vadd.f32 %v2591_v29, %v113_v32 }
  0x8b   :  { %v2062_v34 = vmul.f32 -1.442695, %v197_v30 }
  0x8c   :  { %v219_v39 = vadd.f32 %v2063_v33, %v114_v35 }
  0x8d   :  { %v153_v37 = vpop.f32.mrf.mxu3  ;;  %2191 = vpow2.f32 %v2062_v34 }
  0x8e   :  { %v154_v40 = vadd.f32 %v2596_v31, %v153_v37  ;;  %v173_v41 = vpop.f32.mrf.mxu0  ;;  %v2064_v43 = vmul.f32 -1.442695, %v219_v39  ;;  %v2633_v39 = vld [vmem:[%s3565_s2 + $0x5] ss:$0 sm:$0xff] }
  0x8f   :  { %v174_v45 = vadd.f32 %v2605_v36, %v173_v41  ;;  %v2065_v41 = vld [vmem:[%s3566_s0 + $0x20] sm:$0x3] }
  0x90   :  { %v249_v44 = vadd.f32 %v2066_v38, %v154_v40  ;;  %2193 = vpow2.f32 %v2064_v43 }
  0x91   :  { %v271_v47 = vadd.f32 %v2068_v42, %v174_v45 }
  0x92   :  { %v2067_v46 = vmul.f32 -1.442695, %v249_v44  ;;  %v193_v42 = vpop.f32.mrf.mxu1 }
  0x93   :  { %v2192_v48 = vpop.eup %2191  ;;  %v2069_v49 = vmul.f32 -1.442695, %v271_v47  ;;  %v133_v62 = vpop.f32.mrf.mxu2 }
  0x94   :  { %2195 = vpow2.f32 %v2067_v46  ;;  %v201_v50 = vadd.f32 1.0, %v2192_v48  ;;  %v134_v30 = vadd.f32 %v2624_v59, %v133_v62 }
  0x95   :  { %2197 = vpow2.f32 %v2069_v49 }
  0x96   :  { %2199 = vrcp.f32 %v201_v50  ;;  %v2194_v51 = vpop.eup %2193  ;;  %v213_v63 = vand.u32 2147483648, %v201_v50  ;;  %v211_v27 = vand.u32 2147483647, %v201_v50  ;;  %vm207_vm1 = vweird.f32 %v201_v50 }
  0x97   :  { %v2615_v52 = vadd.f32 1.0, %v2194_v51  ;;  %v194_v51 = vadd.f32 %v2633_v39, %v193_v42 }
  0x98   :  { %v214_v37 = vor.u32 1.1754944e-38, %v213_v63  ;;  %vm212_vm3 = vcmp.eq.f32.partialorder %v211_v27, 8.507059e+37 }
  0x99   :  { %2201 = vrcp.f32 %v2615_v52  ;;  %vm229_vm5 = vweird.f32 %v2615_v52  ;;  %v233_v62 = vand.u32 2147483647, %v2615_v52 }
  0x9a   :  { %v2196_v53 = vpop.eup %2195 }
  0x9b   :  { %v253_v54 = vadd.f32 1.0, %v2196_v53  ;;  %v2198_v55 = vpop.eup %2197  ;;  %vm234_vm11 = vcmp.eq.f32.partialorder %v233_v62, 8.507059e+37 }
  0x9c   :  { %v2200_v56 = vpop.eup %2199  ;;  %v2618_v57 = vadd.f32 1.0, %v2198_v55  ;;  %v235_v55 = vand.u32 2147483648, %v2615_v52 }
  0x9d   :  { %2203 = vrcp.f32 %v253_v54  ;;  %v203_v58 = vmul.f32 %v2200_v56, %v201_v50  ;;  %vm208_vm0 = vweird.f32 %v2200_v56  ;;  %v265_v46 = vand.u32 2147483648, %v253_v54 }
  0x9e   :  { %2205 = vrcp.f32 %v2618_v57  ;;  %vm209_vm2 = vmor %vm207_vm1, %vm208_vm0  ;;  %v263_v49 = vand.u32 2147483647, %v253_v54  ;;  %vm259_vm7 = vweird.f32 %v253_v54  ;;  %vm281_vm12 = vweird.f32 %v2618_v57 }
  0x9f   :  { %v204_v60 = vsub.f32 1.0, %v203_v58  ;;  %v2202_v61 = vpop.eup %2201  ;;  %v266_v58 = vor.u32 1.1754944e-38, %v265_v46  ;;  %v285_v42 = vand.u32 2147483647, %v2618_v57 }
  0xa0   :  { %v225_v16 = vmul.f32 %v2202_v61, %v2615_v52  ;;  %vm230_vm6 = vweird.f32 %v2202_v61  ;;  %vm264_vm9 = vcmp.eq.f32.partialorder %v263_v49, 8.507059e+37 }
  0xa1   :  { %v205_v26 = vmul.f32 %v2200_v56, %v204_v60  ;;  %vm2644_vm10 = vmor %vm229_vm5, %vm230_vm6  ;;  %vm286_vm1 = vcmp.eq.f32.partialorder %v285_v42, 8.507059e+37 }
  0xa2   :  { %v226_v35 = vsub.f32 1.0, %v225_v16 }
  0xa3   :  { %v2204_v28 = vpop.eup %2203  ;;  %v206_v32 = vadd.f32 %v2200_v56, %v205_v26 }
  0xa4   :  { %v255_v33 = vmul.f32 %v2204_v28, %v253_v54  ;;  %v2628_v34 = vpop.eup %2205  ;;  %v227_v47 = vmul.f32 %v2202_v61, %v226_v35  ;;  %vm260_vm4 = vweird.f32 %v2204_v28  ;;  %v2070_v54 = vld [vmem:[%s3566_s0 + $0x5e] sm:$0x3]  ;;  %v287_v35 = vand.u32 2147483648, %v2618_v57 }
  0xa5   :  { %v210_v38 = vsel %vm209_vm2, %v2200_v56, %v206_v32  ;;  %v277_v44 = vmul.f32 %v2628_v34, %v2618_v57  ;;  %vm261_vm8 = vmor %vm259_vm7, %vm260_vm4  ;;  %vm282_vm13 = vweird.f32 %v2628_v34  ;;  %vm315_vm2 = vcmask 516352  }
  0xa6   :  { %v215_v40 = vsel %vm212_vm3, %v214_v37, %v210_v38  ;;  %v256_v43 = vsub.f32 1.0, %v255_v33  ;;  %v228_v60 = vadd.f32 %v2202_v61, %v227_v47  ;;  %vm283_vm0 = vmor %vm281_vm12, %vm282_vm13 }
  0xa7   :  { %v241_v45 = vmul.f32 %v215_v40, %v134_v30  ;;  %v278_v56 = vsub.f32 1.0, %v277_v44  ;;  %v236_v30 = vor.u32 1.1754944e-38, %v235_v55 }
  0xa8   :  { %v257_v48 = vmul.f32 %v2204_v28, %v256_v43  ;;  %v232_v33 = vsel %vm2644_vm10, %v2202_v61, %v228_v60  ;;  %v288_v61 = vor.u32 1.1754944e-38, %v287_v35 }
  0xa9   :  { %v242_v50 = vadd.f32 %v2065_v41, %v241_v45  ;;  %v279_v32 = vmul.f32 %v2628_v34, %v278_v56  ;;  %v237_v38 = vsel %vm234_vm11, %v236_v30, %v232_v33 }
  0xaa   :  { %v258_v53 = vadd.f32 %v2204_v28, %v257_v48 }
  0xab   :  { %2207 = vtanh.f32 %v242_v50  ;;  %v280_v40 = vadd.f32 %v2628_v34, %v279_v32 }
  0xac   :  { %v262_v63 = vsel %vm261_vm8, %v2204_v28, %v258_v53 }
  0xad   :  { %v267_v26 = vsel %vm264_vm9, %v266_v58, %v262_v63  ;;  %v284_v44 = vsel %vm283_vm0, %v2628_v34, %v280_v40  ;;  %v2077_v58 = vld [vmem:[%s3566_s0 + $0x2] sm:$0x3]  ;;  %v2079_v63 = vld [vmem:[%s3566_s0 + $0x12] sm:$0x3] }
  0xae   :  { %v293_v27 = vmul.f32 %v267_v26, %v194_v51  ;;  %v289_v34 = vsel %vm286_vm1, %v288_v61, %v284_v44  ;;  %v2082_v26 = vld [vmem:[%s3566_s0 + $0x3c] sm:$0x3] }
  0xb0   :  { %v294_v52 = vadd.f32 %v2070_v54, %v293_v27 }
  0xb1   :  { %v2208_v28 = vpop.eup %2207 }
  0xb2   :  { %v244_v37 = vsub.f32 0.0, %v2208_v28  ;;  %2209 = vtanh.f32 %v294_v52 }
  0xb4   :  { %v245_v41 = vmul.f32 %v244_v37, %v237_v38  ;;  %v2084_v38 = vld [vmem:[%s3566_s0 + $0x4c] sm:$0x3] }
  0xb6   :  { %v2659_v43 = vadd.f32 %v2208_v28, %v245_v41 }
  0xb8   :  { %v2210_v45 = vpop.eup %2209  ;;  %2071 = vmatmul.msk.f32.vlgmr.msrb.gmra.mxu2 %vm72_vm14, %v2659_v43  ;;  %2072 = vmatmul.msk.f32.vlgmr.msrb.gmra.mxu3 %vm72_vm14, %v2659_v43  ;;  %303 = vst.msk [vmem:[%s3567_s3] sm:$0x1] %vm302_vm15, %v2659_v43  ;;  %v300_v57 = vrot.slane %v2659_v43, 1 }
  0xb9   :  { %v296_v46 = vsub.f32 0.0, %v2210_v45  ;;  %2073 = vmatmul.msk.f32.vlgmr.msra.gmra.mxu0 %vm72_vm14, %v2659_v43  ;;  %639 = vmatpush.msrb.mxu3 %v2411_v1 }
  0xba   :  { %617 = vmatpush.msrb.mxu2 %v2463_v10  ;;  %659 = vmatpush.msra.mxu0 %v2469_v11  ;;  %304 = vst.msk [vmem:[%s3567_s3 + $0x8] sm:$0x1] %vm302_vm15, %v300_v57 }
  0xbb   :  { %v297_v47 = vmul.f32 %v296_v46, %v289_v34  ;;  %640 = vmatpush.msrb.mxu3 %v2423_v3 }
  0xbc   :  { %618 = vmatpush.msrb.mxu2 %v2492_v15  ;;  %660 = vmatpush.msra.mxu0 %v2482_v13 }
  0xbd   :  { %v2684_v48 = vadd.f32 %v2210_v45, %v297_v47  ;;  %641 = vmatpush.msrb.mxu3 %v2433_v5 }
  0xbe   :  { %619 = vmatpush.msrb.mxu2 %v2497_v17  ;;  %661 = vmatpush.msra.mxu0 %v2504_v18 }
  0xbf   :  { %2074 = vmatmul.msk.f32.vlgmr.msra.gmra.mxu1 %vm72_vm14, %v2684_v48  ;;  %v307_v49 = vperm.slane %v2684_v48, 0  ;;  %642 = vmatpush.msrb.mxu3 %v2456_v9  ;;  %v306_v50 = vrot.slane %v2684_v48, 1 }
  0xc0   :  { %2075 = vmatmul.msk.f32.vlgmr.msra.gmra.mxu2 %vm72_vm14, %v2684_v48  ;;  %2076 = vmatmul.msk.f32.vlgmr.msra.gmra.mxu3 %vm72_vm14, %v2684_v48 }
  0xc1   :  { %309 = vrot.lane.b32.xlu0 %v307_v49, %s2382_s7  ;;  %620 = vmatpush.msrb.mxu2 %v2518_v20  ;;  %v308_v51 = vperm.slane %v306_v50, 0 }
  0xc2   :  { %679 = vmatpush.msra.mxu1 %v2510_v19  ;;  %662 = vmatpush.msra.mxu0 %v2523_v21 }
  0xc3   :  { %822 = vmatpush.msra.mxu2 %v2406_v0  ;;  %842 = vmatpush.msra.mxu3 %v2438_v6 }
  0xc4   :  { %680 = vmatpush.msra.mxu1 %v2531_v22 }
  0xc5   :  { %823 = vmatpush.msra.mxu2 %v2416_v2  ;;  %843 = vmatpush.msra.mxu3 %v2445_v7 }
  0xc6   :  { %681 = vmatpush.msra.mxu1 %v2539_v23 }
  0xc7   :  { %824 = vmatpush.msra.mxu2 %v2428_v4  ;;  %844 = vmatpush.msra.mxu3 %v2474_v12 }
  0xc8   :  { %682 = vmatpush.msra.mxu1 %v2545_v24 }
  0xc9   :  { %311 = vrot.lane.b32.xlu0 %v308_v51, %s2382_s7  ;;  %825 = vmatpush.msra.mxu2 %v2451_v8 }
  0xca   :  { %845 = vmatpush.msra.mxu3 %v2487_v14 }
 0x133   :  { %v310_v53 = vpop.permute.xlu0 %309 }
 0x134   :  { %316 = vst.msk [vmem:[%s3567_s3 + $0x7] sm:$0x1] %vm315_vm2, %v310_v53 }
 0x13b   :  { %v312_v55 = vpop.permute.xlu0 %311  ;;  %v337_v56 = vpop.f32.mrf.mxu2 }
 0x13c   :  { %317 = vst.msk [vmem:[%s3567_s3 + $0xf] sm:$0x1] %vm315_vm2, %v312_v55  ;;  %v338_v60 = vadd.f32 %v2582_v25, %v337_v56  ;;  %v357_v62 = vpop.f32.mrf.mxu3  ;;  %v399_v16 = vpop.f32.mrf.mxu1 }
 0x13d   :  { %v358_v54 = vadd.f32 %v2591_v29, %v357_v62  ;;  %v400_v27 = vadd.f32 %v2596_v31, %v399_v16  ;;  %v377_v55 = vpop.f32.mrf.mxu0 }
 0x13e   :  { %v444_v30 = vadd.f32 %v2077_v58, %v338_v60 }
 0x13f   :  { %v466_v32 = vadd.f32 %v2079_v63, %v358_v54  ;;  %v496_v33 = vadd.f32 %v2082_v26, %v400_v27  ;;  %v378_v54 = vadd.f32 %v2624_v59, %v377_v55 }
 0x140   :  { %v2078_v52 = vmul.f32 -1.442695, %v444_v30 }
 0x141   :  { %v2080_v28 = vmul.f32 -1.442695, %v466_v32  ;;  %v2083_v35 = vmul.f32 -1.442695, %v496_v33 }
 0x142   :  { %2211 = vpow2.f32 %v2078_v52 }
 0x143   :  { %2213 = vpow2.f32 %v2080_v28  ;;  %v419_v37 = vpop.f32.mrf.mxu2 }
 0x144   :  { %2215 = vpow2.f32 %v2083_v35  ;;  %v420_v40 = vadd.f32 %v2605_v36, %v419_v37 }
 0x146   :  { %v518_v41 = vadd.f32 %v2084_v38, %v420_v40 }
 0x148   :  { %v2212_v42 = vpop.eup %2211  ;;  %v2085_v61 = vmul.f32 -1.442695, %v518_v41 }
 0x149   :  { %v2214_v44 = vpop.eup %2213  ;;  %v448_v45 = vadd.f32 1.0, %v2212_v42  ;;  %v2081_v42 = vld [vmem:[%s3566_s0 + $0x22] sm:$0x3] }
 0x14a   :  { %v2216_v57 = vpop.eup %2215  ;;  %v2738_v46 = vadd.f32 1.0, %v2214_v44  ;;  %2217 = vpow2.f32 %v2085_v61  ;;  %v439_v61 = vpop.f32.mrf.mxu3 }
 0x14b   :  { %2219 = vrcp.f32 %v448_v45  ;;  %v500_v34 = vadd.f32 1.0, %v2216_v57  ;;  %v458_v58 = vand.u32 2147483647, %v448_v45  ;;  %v460_v62 = vand.u32 2147483648, %v448_v45 }
 0x14c   :  { %2221 = vrcp.f32 %v2738_v46  ;;  %vm454_vm4 = vweird.f32 %v448_v45  ;;  %vm476_vm12 = vweird.f32 %v2738_v46 }
 0x14d   :  { %2223 = vrcp.f32 %v500_v34  ;;  %vm459_vm5 = vcmp.eq.f32.partialorder %v458_v58, 8.507059e+37  ;;  %v461_v33 = vor.u32 1.1754944e-38, %v460_v62  ;;  %v510_v28 = vand.u32 2147483647, %v500_v34  ;;  %v2086_v62 = vld [vmem:[%s3566_s0 + $0x5c] sm:$0x3] }
 0x14e   :  { %v512_v35 = vand.u32 2147483648, %v500_v34  ;;  %vm506_vm8 = vweird.f32 %v500_v34 }
 0x14f   :  { %vm511_vm10 = vcmp.eq.f32.partialorder %v510_v28, 8.507059e+37 }
 0x150   :  { %v2218_v47 = vpop.eup %2217 }
 0x151   :  { %v2220_v49 = vpop.eup %2219  ;;  %v2741_v50 = vadd.f32 1.0, %v2218_v47 }
 0x152   :  { %v2743_v51 = vpop.eup %2221  ;;  %v450_v53 = vmul.f32 %v2220_v49, %v448_v45  ;;  %vm455_vm3 = vweird.f32 %v2220_v49 }
 0x153   :  { %2225 = vrcp.f32 %v2741_v50  ;;  %v2224_v60 = vpop.eup %2223  ;;  %v472_v63 = vmul.f32 %v2743_v51, %v2738_v46  ;;  %vm456_vm6 = vmor %vm454_vm4, %vm455_vm3  ;;  %vm477_vm11 = vweird.f32 %v2743_v51  ;;  %v534_v28 = vand.u32 2147483648, %v2741_v50 }
 0x154   :  { %v451_v56 = vsub.f32 1.0, %v450_v53  ;;  %v502_v26 = vmul.f32 %v2224_v60, %v500_v34  ;;  %vm507_vm7 = vweird.f32 %v2224_v60  ;;  %v513_v53 = vor.u32 1.1754944e-38, %v512_v35  ;;  %vm478_vm13 = vmor %vm476_vm12, %vm477_vm11 }
 0x155   :  { %v473_v52 = vsub.f32 1.0, %v472_v63  ;;  %vm508_vm9 = vmor %vm506_vm8, %vm507_vm7  ;;  %vm528_vm3 = vweird.f32 %v2741_v50  ;;  %v532_v35 = vand.u32 2147483647, %v2741_v50 }
 0x156   :  { %v452_v16 = vmul.f32 %v2220_v49, %v451_v56  ;;  %v503_v30 = vsub.f32 1.0, %v502_v26  ;;  %v482_v26 = vand.u32 2147483648, %v2738_v46 }
 0x157   :  { %v474_v57 = vmul.f32 %v2743_v51, %v473_v52 }
 0x158   :  { %v453_v27 = vadd.f32 %v2220_v49, %v452_v16  ;;  %v504_v40 = vmul.f32 %v2224_v60, %v503_v30  ;;  %v483_v52 = vor.u32 1.1754944e-38, %v482_v26 }
 0x159   :  { %v2226_v32 = vpop.eup %2225  ;;  %v475_v16 = vadd.f32 %v2743_v51, %v474_v57 }
 0x15a   :  { %v457_v37 = vsel %vm456_vm6, %v2220_v49, %v453_v27  ;;  %v524_v38 = vmul.f32 %v2226_v32, %v2741_v50  ;;  %v505_v45 = vadd.f32 %v2224_v60, %v504_v40  ;;  %v440_v49 = vadd.f32 %v2633_v39, %v439_v61 }
 0x15b   :  { %v462_v41 = vsel %vm459_vm5, %v461_v33, %v457_v37  ;;  %v479_v27 = vsel %vm478_vm13, %v2743_v51, %v475_v16  ;;  %vm529_vm0 = vweird.f32 %v2226_v32  ;;  %vm533_vm5 = vcmp.eq.f32.partialorder %v532_v35, 8.507059e+37 }
 0x15c   :  { %v488_v44 = vmul.f32 %v462_v41, %v378_v54  ;;  %v525_v47 = vsub.f32 1.0, %v524_v38  ;;  %v509_v56 = vsel %vm508_vm9, %v2224_v60, %v505_v45  ;;  %v480_v60 = vand.u32 2147483647, %v2738_v46  ;;  %vm530_vm4 = vmor %vm528_vm3, %vm529_vm0 }
 0x15d   :  { %v514_v58 = vsel %vm511_vm10, %v513_v53, %v509_v56  ;;  %v2100_v53 = vld [vmem:[%s3566_s0 + $0x4a] sm:$0x3]  ;;  %v2098_v56 = vld [vmem:[%s3566_s0 + $0x3a] sm:$0x3] }
 0x15e   :  { %v489_v55 = vadd.f32 %v2081_v42, %v488_v44  ;;  %v540_v63 = vmul.f32 %v514_v58, %v440_v49  ;;  %v526_v34 = vmul.f32 %v2226_v32, %v525_v47  ;;  %vm481_vm1 = vcmp.eq.f32.partialorder %v480_v60, 8.507059e+37 }
 0x15f   :  { %v484_v38 = vsel %vm481_vm1, %v483_v52, %v479_v27  ;;  %v535_v42 = vor.u32 1.1754944e-38, %v534_v28 }
 0x160   :  { %2227 = vtanh.f32 %v489_v55  ;;  %v541_v54 = vadd.f32 %v2086_v62, %v540_v63  ;;  %v527_v30 = vadd.f32 %v2226_v32, %v526_v34 }
 0x162   :  { %2229 = vtanh.f32 %v541_v54  ;;  %v531_v46 = vsel %vm530_vm4, %v2226_v32, %v527_v30 }
 0x163   :  { %v536_v44 = vsel %vm533_vm5, %v535_v42, %v531_v46 }
 0x166   :  { %v2228_v33 = vpop.eup %2227 }
 0x167   :  { %v491_v37 = vsub.f32 %v2659_v43, %v2228_v33 }
 0x168   :  { %v2230_v41 = vpop.eup %2229 }
 0x169   :  { %v492_v40 = vmul.f32 %v491_v37, %v484_v38  ;;  %v543_v51 = vsub.f32 %v2684_v48, %v2230_v41 }
 0x16b   :  { %v2769_v61 = vadd.f32 %v2228_v33, %v492_v40  ;;  %v544_v45 = vmul.f32 %v543_v51, %v536_v44 }
 0x16d   :  { %2087 = vmatmul.msk.f32.vlgmr.msrb.gmra.mxu0 %vm72_vm14, %v2769_v61  ;;  %2088 = vmatmul.msk.f32.vlgmr.msrb.gmra.mxu1 %vm72_vm14, %v2769_v61  ;;  %549 = vst.msk [vmem:[%s3567_s3 + $0x1] sm:$0x1] %vm302_vm15, %v2769_v61  ;;  %v547_v43 = vrot.slane %v2769_v61, 1  ;;  %v2784_v48 = vadd.f32 %v2230_v41, %v544_v45 }
 0x16e   :  { %2089 = vmatmul.msk.f32.vlgmr.msrb.gmra.mxu2 %vm72_vm14, %v2769_v61  ;;  %862 = vmatpush.msrb.mxu0 %v2463_v10 }
 0x16f   :  { %884 = vmatpush.msrb.mxu1 %v2411_v1  ;;  %904 = vmatpush.msrb.mxu2 %v2469_v11  ;;  %550 = vst.msk [vmem:[%s3567_s3 + $0x9] sm:$0x1] %vm302_vm15, %v547_v43  ;;  %v553_v50 = vperm.slane %v2784_v48, 0  ;;  %v552_v1 = vrot.slane %v2784_v48, 1 }
 0x170   :  { %863 = vmatpush.msrb.mxu0 %v2492_v15  ;;  %2090 = vmatmul.msk.f32.vlgmr.msrb.gmra.mxu3 %vm72_vm14, %v2784_v48 }
 0x171   :  { %885 = vmatpush.msrb.mxu1 %v2423_v3  ;;  %924 = vmatpush.msrb.mxu3 %v2510_v19  ;;  %v554_v3 = vperm.slane %v552_v1, 0 }
 0x172   :  { %864 = vmatpush.msrb.mxu0 %v2497_v17  ;;  %555 = vrot.lane.b32.xlu1 %v553_v50, %s2382_s7 }
 0x173   :  { %886 = vmatpush.msrb.mxu1 %v2433_v5  ;;  %905 = vmatpush.msrb.mxu2 %v2482_v13  ;;  %v2093_v5 = vld [vmem:[%s3566_s0 + $0x4] sm:$0x3] }
 0x174   :  { %865 = vmatpush.msrb.mxu0 %v2518_v20  ;;  %925 = vmatpush.msrb.mxu3 %v2531_v22 }
 0x175   :  { %2091 = vmatmul.msk.f32.vlgmr.msra.gmra.mxu0 %vm72_vm14, %v2784_v48  ;;  %2092 = vmatmul.msk.f32.vlgmr.msra.gmra.mxu1 %vm72_vm14, %v2784_v48 }
 0x176   :  { %887 = vmatpush.msrb.mxu1 %v2456_v9  ;;  %906 = vmatpush.msrb.mxu2 %v2504_v18 }
 0x177   :  { %1067 = vmatpush.msra.mxu0 %v2406_v0  ;;  %926 = vmatpush.msrb.mxu3 %v2539_v23 }
 0x178   :  { %1087 = vmatpush.msra.mxu1 %v2438_v6  ;;  %907 = vmatpush.msrb.mxu2 %v2523_v21 }
 0x179   :  { %1068 = vmatpush.msra.mxu0 %v2416_v2  ;;  %927 = vmatpush.msrb.mxu3 %v2545_v24 }
 0x17a   :  { %1088 = vmatpush.msra.mxu1 %v2445_v7  ;;  %557 = vrot.lane.b32.xlu1 %v554_v3, %s2382_s7 }
 0x17b   :  { %1069 = vmatpush.msra.mxu0 %v2428_v4  ;;  %v2095_v4 = vld [vmem:[%s3566_s0 + $0x14] sm:$0x3] }
 0x17c   :  { %1089 = vmatpush.msra.mxu1 %v2474_v12 }
 0x17d   :  { %1070 = vmatpush.msra.mxu0 %v2451_v8 }
 0x17e   :  { %1090 = vmatpush.msra.mxu1 %v2487_v14 }
 0x1e4   :  { %v556_v0 = vpop.permute.xlu1 %555 }
 0x1e5   :  { %561 = vst.msk [vmem:[%s3567_s3 + $0x6] sm:$0x1] %vm315_vm2, %v556_v0 }
 0x1ea   :  { %v582_v2 = vpop.f32.mrf.mxu0  ;;  %v602_v6 = vpop.f32.mrf.mxu1 }
 0x1eb   :  { %v583_v7 = vadd.f32 %v2582_v25, %v582_v2  ;;  %v603_v8 = vadd.f32 %v2591_v29, %v602_v6  ;;  %v2097_v2 = vld [vmem:[%s3566_s0 + $0x24] sm:$0x3] }
 0x1ec   :  { %v558_v9 = vpop.permute.xlu1 %557 }
 0x1ed   :  { %v689_v12 = vadd.f32 %v2093_v5, %v583_v7  ;;  %v711_v14 = vadd.f32 %v2095_v4, %v603_v8  ;;  %562 = vst.msk [vmem:[%s3567_s3 + $0xe] sm:$0x1] %vm315_vm2, %v558_v9 }
 0x1ef   :  { %v2094_v32 = vmul.f32 -1.442695, %v689_v12  ;;  %v2096_v57 = vmul.f32 -1.442695, %v711_v14 }
 0x1f1   :  { %2231 = vpow2.f32 %v2094_v32  ;;  %v622_v44 = vpop.f32.mrf.mxu2 }
 0x1f2   :  { %2233 = vpow2.f32 %v2096_v57  ;;  %v664_v47 = vpop.f32.mrf.mxu0  ;;  %v623_v1 = vadd.f32 %v2624_v59, %v622_v44 }
 0x1f3   :  { %v665_v55 = vadd.f32 %v2605_v36, %v664_v47  ;;  %v644_v49 = vpop.f32.mrf.mxu3 }
 0x1f4   :  { %v645_v58 = vadd.f32 %v2596_v31, %v644_v49  ;;  %v684_v49 = vpop.f32.mrf.mxu1 }
 0x1f5   :  { %v763_v62 = vadd.f32 %v2100_v53, %v665_v55 }
 0x1f6   :  { %v741_v16 = vadd.f32 %v2098_v56, %v645_v58 }
 0x1f7   :  { %v2232_v63 = vpop.eup %2231  ;;  %v2101_v34 = vmul.f32 -1.442695, %v763_v62 }
 0x1f8   :  { %v2234_v26 = vpop.eup %2233  ;;  %v693_v54 = vadd.f32 1.0, %v2232_v63  ;;  %v2099_v27 = vmul.f32 -1.442695, %v741_v16 }
 0x1f9   :  { %v2847_v60 = vadd.f32 1.0, %v2234_v26  ;;  %2235 = vpow2.f32 %v2101_v34  ;;  %v685_v26 = vadd.f32 %v2633_v39, %v684_v49 }
 0x1fa   :  { %2237 = vrcp.f32 %v693_v54  ;;  %v705_v41 = vand.u32 2147483648, %v693_v54  ;;  %v703_v51 = vand.u32 2147483647, %v693_v54  ;;  %vm699_vm7 = vweird.f32 %v693_v54 }
 0x1fb   :  { %2239 = vrcp.f32 %v2847_v60  ;;  %vm721_vm12 = vweird.f32 %v2847_v60  ;;  %v727_v55 = vand.u32 2147483648, %v2847_v60  ;;  %v725_v58 = vand.u32 2147483647, %v2847_v60 }
 0x1fc   :  { %2241 = vpow2.f32 %v2099_v27  ;;  %v706_v50 = vor.u32 1.1754944e-38, %v705_v41  ;;  %vm704_vm9 = vcmp.eq.f32.partialorder %v703_v51, 8.507059e+37 }
 0x1fd   :  { %vm726_vm4 = vcmp.eq.f32.partialorder %v725_v58, 8.507059e+37  ;;  %v2114_v58 = vld [vmem:[%s3566_s0 + $0x38] sm:$0x3] }
 0x1ff   :  { %v2236_v30 = vpop.eup %2235 }
 0x200   :  { %v2238_v33 = vpop.eup %2237  ;;  %v2850_v37 = vadd.f32 1.0, %v2236_v30  ;;  %v728_v30 = vor.u32 1.1754944e-38, %v727_v55 }
 0x201   :  { %v2240_v52 = vpop.eup %2239  ;;  %v695_v28 = vmul.f32 %v2238_v33, %v693_v54  ;;  %vm700_vm6 = vweird.f32 %v2238_v33 }
 0x202   :  { %v2242_v35 = vpop.eup %2241  ;;  %v717_v40 = vmul.f32 %v2240_v52, %v2847_v60  ;;  %vm701_vm8 = vmor %vm699_vm7, %vm700_vm6  ;;  %vm722_vm10 = vweird.f32 %v2240_v52  ;;  %v779_v51 = vand.u32 2147483648, %v2850_v37  ;;  %vm773_vm6 = vweird.f32 %v2850_v37 }
 0x203   :  { %v696_v38 = vsub.f32 1.0, %v695_v28  ;;  %v745_v46 = vadd.f32 1.0, %v2242_v35  ;;  %vm2864_vm13 = vmor %vm721_vm12, %vm722_vm10  ;;  %v2102_v28 = vld [vmem:[%s3566_s0 + $0x5a] sm:$0x3]  ;;  %v777_v44 = vand.u32 2147483647, %v2850_v37 }
 0x204   :  { %v718_v43 = vsub.f32 1.0, %v717_v40 }
 0x205   :  { %v697_v42 = vmul.f32 %v2238_v33, %v696_v38  ;;  %2243 = vrcp.f32 %v745_v46  ;;  %v757_v32 = vand.u32 2147483648, %v745_v46  ;;  %v755_v53 = vand.u32 2147483647, %v745_v46 }
 0x206   :  { %2245 = vrcp.f32 %v2850_v37  ;;  %v719_v7 = vmul.f32 %v2240_v52, %v718_v43  ;;  %vm751_vm0 = vweird.f32 %v745_v46 }
 0x207   :  { %v698_v45 = vadd.f32 %v2238_v33, %v697_v42  ;;  %v758_v16 = vor.u32 1.1754944e-38, %v757_v32  ;;  %vm756_vm3 = vcmp.eq.f32.partialorder %v755_v53, 8.507059e+37 }
 0x208   :  { %v720_v57 = vadd.f32 %v2240_v52, %v719_v7 }
 0x209   :  { %v702_v3 = vsel %vm701_vm8, %v2238_v33, %v698_v45  ;;  %v2899_v45 = vld [vmem:[%s3564_s1 + $0x78] sm:$0xff]  ;;  %vm778_vm8 = vcmp.eq.f32.partialorder %v777_v44, 8.507059e+37 }
 0x20a   :  { %v707_v0 = vsel %vm704_vm9, %v706_v50, %v702_v3  ;;  %v724_v34 = vsel %vm2864_vm13, %v2240_v52, %v720_v57  ;;  %v2918_v50 = vld [vmem:[%s3564_s1 + $0x70] sm:$0xff]  ;;  %v2927_v3 = vld [vmem:[%s3564_s1 + $0x68] sm:$0xff] }
 0x20b   :  { %v2244_v5 = vpop.eup %2243  ;;  %v733_v6 = vmul.f32 %v707_v0, %v623_v1  ;;  %v729_v38 = vsel %vm726_vm4, %v728_v30, %v724_v34 }
 0x20c   :  { %v2858_v4 = vpop.eup %2245  ;;  %v747_v8 = vmul.f32 %v2244_v5, %v745_v46  ;;  %vm752_vm11 = vweird.f32 %v2244_v5 }
 0x20d   :  { %v734_v9 = vadd.f32 %v2097_v2, %v733_v6  ;;  %v769_v14 = vmul.f32 %v2858_v4, %v2850_v37  ;;  %vm753_vm1 = vmor %vm751_vm0, %vm752_vm11  ;;  %vm774_vm5 = vweird.f32 %v2858_v4  ;;  %v2994_v6 = vld [vmem:[%s3564_s1] sm:$0xff] }
 0x20e   :  { %v748_v12 = vsub.f32 1.0, %v747_v8  ;;  %vm2902_vm7 = vmor %vm773_vm6, %vm774_vm5 }
 0x20f   :  { %2247 = vtanh.f32 %v734_v9  ;;  %v770_v63 = vsub.f32 1.0, %v769_v14  ;;  %v2109_v9 = vld [vmem:[%s3566_s0 + $0x6] sm:$0x3]  ;;  %v2111_v14 = vld [vmem:[%s3566_s0 + $0x16] sm:$0x3] }
 0x210   :  { %v749_v47 = vmul.f32 %v2244_v5, %v748_v12 }
 0x211   :  { %v771_v46 = vmul.f32 %v2858_v4, %v770_v63 }
 0x212   :  { %v750_v62 = vadd.f32 %v2244_v5, %v749_v47 }
 0x213   :  { %v772_v42 = vadd.f32 %v2858_v4, %v771_v46 }
 0x214   :  { %v754_v54 = vsel %vm753_vm1, %v2244_v5, %v750_v62 }
 0x215   :  { %v2248_v27 = vpop.eup %2247  ;;  %v759_v33 = vsel %vm756_vm3, %v758_v16, %v754_v54  ;;  %v776_v37 = vsel %vm2902_vm7, %v2858_v4, %v772_v42  ;;  %v3000_v4 = vld [vmem:[%s3564_s1 + $0x20] sm:$0xff] }
 0x216   :  { %v736_v60 = vsub.f32 %v2769_v61, %v2248_v27  ;;  %v785_v35 = vmul.f32 %v759_v33, %v685_v26 }
 0x218   :  { %v737_v40 = vmul.f32 %v736_v60, %v729_v38  ;;  %v786_v52 = vadd.f32 %v2102_v28, %v785_v35 }
 0x21a   :  { %v2877_v41 = vadd.f32 %v2248_v27, %v737_v40  ;;  %2249 = vtanh.f32 %v786_v52 }
 0x21c   :  { %2103 = vmatmul.msk.f32.vlgmr.msra.gmra.mxu2 %vm72_vm14, %v2877_v41  ;;  %2104 = vmatmul.msk.f32.vlgmr.msra.gmra.mxu3 %vm72_vm14, %v2877_v41  ;;  %794 = vst.msk [vmem:[%s3567_s3 + $0x2] sm:$0x1] %vm302_vm15, %v2877_v41  ;;  %v792_v61 = vrot.slane %v2877_v41, 1 }
 0x21d   :  { %2105 = vmatmul.msk.f32.vlgmr.msrb.gmra.mxu0 %vm72_vm14, %v2877_v41  ;;  %1129 = vmatpush.msra.mxu3 %v2899_v45 }
 0x21e   :  { %1107 = vmatpush.msra.mxu2 %v2463_v10  ;;  %1149 = vmatpush.msrb.mxu0 %v2469_v11  ;;  %795 = vst.msk [vmem:[%s3567_s3 + $0xa] sm:$0x1] %vm302_vm15, %v792_v61  ;;  %v780_v10 = vor.u32 1.1754944e-38, %v779_v51 }
 0x21f   :  { %1130 = vmatpush.msra.mxu3 %v2918_v50 }
 0x220   :  { %v2250_v1 = vpop.eup %2249  ;;  %1108 = vmatpush.msra.mxu2 %v2492_v15  ;;  %1150 = vmatpush.msrb.mxu0 %v2482_v13  ;;  %v781_v0 = vsel %vm778_vm8, %v780_v10, %v776_v37  ;;  %v2935_v13 = vld [vmem:[%s3564_s1 + $0x60] sm:$0xff] }
 0x221   :  { %v788_v11 = vsub.f32 %v2784_v48, %v2250_v1  ;;  %1131 = vmatpush.msra.mxu3 %v2927_v3  ;;  %v2981_v48 = vld [vmem:[%s3564_s1 + $0x8] sm:$0xff] }
 0x222   :  { %1109 = vmatpush.msra.mxu2 %v2497_v17  ;;  %1151 = vmatpush.msrb.mxu0 %v2504_v18  ;;  %v2954_v18 = vld [vmem:[%s3564_s1 + $0x18] sm:$0xff] }
 0x223   :  { %v789_v2 = vmul.f32 %v788_v11, %v781_v0  ;;  %1132 = vmatpush.msra.mxu3 %v2935_v13 }
 0x224   :  { %1110 = vmatpush.msra.mxu2 %v2518_v20  ;;  %1152 = vmatpush.msrb.mxu0 %v2523_v21  ;;  %v2961_v20 = vld [vmem:[%s3564_s1 + $0x38] sm:$0xff]  ;;  %v2968_v21 = vld [vmem:[%s3564_s1 + $0x10] sm:$0xff] }
 0x225   :  { %v2940_v15 = vadd.f32 %v2250_v1, %v789_v2 }
 0x227   :  { %2106 = vmatmul.msk.f32.vlgmr.msrb.gmra.mxu1 %vm72_vm14, %v2940_v15  ;;  %v798_v17 = vperm.slane %v2940_v15, 0  ;;  %2107 = vmatmul.msk.f32.vlgmr.msrb.gmra.mxu2 %vm72_vm14, %v2940_v15 }
 0x228   :  { %2108 = vmatmul.msk.f32.vlgmr.msrb.gmra.mxu3 %vm72_vm14, %v2940_v15  ;;  %1169 = vmatpush.msrb.mxu1 %v2510_v19  ;;  %v797_v19 = vrot.slane %v2940_v15, 1 }
 0x229   :  { %800 = vrot.lane.b32.xlu2 %v798_v17, %s2382_s7  ;;  %1312 = vmatpush.msrb.mxu2 %v2954_v18 }
 0x22a   :  { %1170 = vmatpush.msrb.mxu1 %v2531_v22  ;;  %1332 = vmatpush.msrb.mxu3 %v2961_v20  ;;  %v2975_v22 = vld [vmem:[%s3564_s1 + $0x30] sm:$0xff]  ;;  %v799_v5 = vperm.slane %v797_v19, 0 }
 0x22b   :  { %1313 = vmatpush.msrb.mxu2 %v2968_v21 }
 0x22c   :  { %1171 = vmatpush.msrb.mxu1 %v2539_v23  ;;  %1333 = vmatpush.msrb.mxu3 %v2975_v22  ;;  %v2988_v23 = vld [vmem:[%s3564_s1 + $0x28] sm:$0xff] }
 0x22d   :  { %1314 = vmatpush.msrb.mxu2 %v2981_v48 }
 0x22e   :  { %1172 = vmatpush.msrb.mxu1 %v2545_v24  ;;  %1334 = vmatpush.msrb.mxu3 %v2988_v23 }
 0x22f   :  { %1315 = vmatpush.msrb.mxu2 %v2994_v6 }
 0x230   :  { %1335 = vmatpush.msrb.mxu3 %v3000_v4 }
 0x231   :  { %802 = vrot.lane.b32.xlu2 %v799_v5, %s2382_s7 }
 0x283   :  { %v801_v24 = vpop.permute.xlu2 %800 }
 0x284   :  { %806 = vst.msk [vmem:[%s3567_s3 + $0x5] sm:$0x1] %vm315_vm2, %v801_v24 }
 0x28b   :  { %v803_v7 = vpop.permute.xlu2 %802 }
 0x28c   :  { %807 = vst.msk [vmem:[%s3567_s3 + $0xd] sm:$0x1] %vm315_vm2, %v803_v7  ;;  %v2113_v7 = vld [vmem:[%s3566_s0 + $0x26] sm:$0x3] }
 0x29a   :  { %v867_v37 = vpop.f32.mrf.mxu0 }
 0x29b   :  { %v868_v17 = vadd.f32 %v2624_v59, %v867_v37  ;;  %v3095_v37 = vld [vmem:[%s3564_s1 + $0x50] sm:$0xff] }
 0x29f   :  { %v827_v8 = vpop.f32.mrf.mxu2  ;;  %v847_v12 = vpop.f32.mrf.mxu3 }
 0x2a0   :  { %v828_v32 = vadd.f32 %v2582_v25, %v827_v8  ;;  %v848_v57 = vadd.f32 %v2591_v29, %v847_v12  ;;  %v2116_v25 = vld [vmem:[%s3566_s0 + $0x48] sm:$0x3] }
 0x2a2   :  { %v934_v47 = vadd.f32 %v2109_v9, %v828_v32  ;;  %v956_v53 = vadd.f32 %v2111_v14, %v848_v57 }
 0x2a4   :  { %v2110_v55 = vmul.f32 -1.442695, %v934_v47  ;;  %v2112_v49 = vmul.f32 -1.442695, %v956_v53  ;;  %v889_v56 = vpop.f32.mrf.mxu1 }
 0x2a5   :  { %v890_v62 = vadd.f32 %v2596_v31, %v889_v56 }
 0x2a6   :  { %2251 = vpow2.f32 %v2110_v55 }
 0x2a7   :  { %2253 = vpow2.f32 %v2112_v49  ;;  %v986_v63 = vadd.f32 %v2114_v58, %v890_v62  ;;  %v2118_v62 = vld [vmem:[%s3566_s0 + $0x58] sm:$0x3] }
 0x2a9   :  { %v2115_v16 = vmul.f32 -1.442695, %v986_v63 }
 0x2aa   :  { %v909_v34 = vpop.f32.mrf.mxu2 }
 0x2ab   :  { %2255 = vpow2.f32 %v2115_v16  ;;  %v910_v29 = vadd.f32 %v2605_v36, %v909_v34  ;;  %v929_v14 = vpop.f32.mrf.mxu3 }
 0x2ac   :  { %v2252_v26 = vpop.eup %2251  ;;  %v930_v49 = vadd.f32 %v2633_v39, %v929_v14 }
 0x2ad   :  { %v2254_v54 = vpop.eup %2253  ;;  %v938_v27 = vadd.f32 1.0, %v2252_v26  ;;  %v1008_v30 = vadd.f32 %v2116_v25, %v910_v29 }
 0x2ae   :  { %v3028_v33 = vadd.f32 1.0, %v2254_v54 }
 0x2af   :  { %2257 = vrcp.f32 %v938_v27  ;;  %v2117_v28 = vmul.f32 -1.442695, %v1008_v30  ;;  %v950_v52 = vand.u32 2147483648, %v938_v27  ;;  %v948_v44 = vand.u32 2147483647, %v938_v27 }
 0x2b0   :  { %2259 = vrcp.f32 %v3028_v33  ;;  %vm944_vm10 = vweird.f32 %v938_v27  ;;  %v972_v25 = vand.u32 2147483648, %v3028_v33  ;;  %vm966_vm5 = vweird.f32 %v3028_v33 }
 0x2b1   :  { %v2256_v31 = vpop.eup %2255  ;;  %2261 = vpow2.f32 %v2117_v28  ;;  %v951_v11 = vor.u32 1.1754944e-38, %v950_v52  ;;  %vm949_vm12 = vcmp.eq.f32.partialorder %v948_v44, 8.507059e+37  ;;  %v970_v39 = vand.u32 2147483647, %v3028_v33  ;;  %v3083_v44 = vld [vmem:[%s3564_s1 + $0x98] sm:$0xff] }
 0x2b2   :  { %v990_v60 = vadd.f32 1.0, %v2256_v31  ;;  %v973_v30 = vor.u32 1.1754944e-38, %v972_v25  ;;  %v2132_v25 = vld [vmem:[%s3566_s0 + $0x46] sm:$0x3] }
 0x2b3   :  { %vm971_vm8 = vcmp.eq.f32.partialorder %v970_v39, 8.507059e+37  ;;  %v3205_v39 = vld [vmem:[%s3565_s2 + $0x4] ss:$0 sm:$0xff] }
 0x2b4   :  { %2263 = vrcp.f32 %v990_v60  ;;  %v1002_v5 = vand.u32 2147483648, %v990_v60  ;;  %v1000_v9 = vand.u32 2147483647, %v990_v60  ;;  %vm996_vm0 = vweird.f32 %v990_v60 }
 0x2b5   :  { %v2258_v35 = vpop.eup %2257 }
 0x2b6   :  { %v3031_v38 = vpop.eup %2259  ;;  %v940_v46 = vmul.f32 %v2258_v35, %v938_v27  ;;  %vm945_vm9 = vweird.f32 %v2258_v35  ;;  %v1003_v59 = vor.u32 1.1754944e-38, %v1002_v5  ;;  %vm1001_vm3 = vcmp.eq.f32.partialorder %v1000_v9, 8.507059e+37  ;;  %v3137_v5 = vld [vmem:[%s3564_s1 + $0xb0] sm:$0xff]  ;;  %v3164_v9 = vld [vmem:[%s3564_s1 + $0xa0] sm:$0xff] }
 0x2b7   :  { %v2262_v36 = vpop.eup %2261  ;;  %v962_v42 = vmul.f32 %v3031_v38, %v3028_v33  ;;  %vm946_vm11 = vmor %vm944_vm10, %vm945_vm9  ;;  %vm967_vm4 = vweird.f32 %v3031_v38 }
 0x2b8   :  { %v941_v40 = vsub.f32 1.0, %v940_v46  ;;  %v3035_v43 = vadd.f32 1.0, %v2262_v36  ;;  %vm968_vm6 = vmor %vm966_vm5, %vm967_vm4 }
 0x2b9   :  { %v963_v0 = vsub.f32 1.0, %v962_v42 }
 0x2ba   :  { %v2264_v51 = vpop.eup %2263  ;;  %v942_v61 = vmul.f32 %v2258_v35, %v941_v40  ;;  %2265 = vrcp.f32 %v3035_v43  ;;  %v1024_v28 = vand.u32 2147483648, %v3035_v43  ;;  %vm1018_vm9 = vweird.f32 %v3035_v43 }
 0x2bb   :  { %v992_v1 = vmul.f32 %v2264_v51, %v990_v60  ;;  %vm997_vm13 = vweird.f32 %v2264_v51  ;;  %v964_v32 = vmul.f32 %v3031_v38, %v963_v0  ;;  %v3112_v0 = vld [vmem:[%s3564_s1 + $0x48] sm:$0xff] }
 0x2bc   :  { %v943_v10 = vadd.f32 %v2258_v35, %v942_v61  ;;  %vm998_vm1 = vmor %vm996_vm0, %vm997_vm13 }
 0x2bd   :  { %v993_v2 = vsub.f32 1.0, %v992_v1  ;;  %v965_v63 = vadd.f32 %v3031_v38, %v964_v32  ;;  %v3102_v1 = vld [vmem:[%s3564_s1 + $0x90] sm:$0xff] }
 0x2be   :  { %v947_v19 = vsel %vm946_vm11, %v2258_v35, %v943_v10  ;;  %v1022_v35 = vand.u32 2147483647, %v3035_v43 }
 0x2bf   :  { %v952_v24 = vsel %vm949_vm12, %v951_v11, %v947_v19  ;;  %v994_v8 = vmul.f32 %v2264_v51, %v993_v2  ;;  %v969_v54 = vsel %vm968_vm6, %v3031_v38, %v965_v63  ;;  %v1025_v38 = vor.u32 1.1754944e-38, %v1024_v28  ;;  %v3118_v2 = vld [vmem:[%s3564_s1 + $0xb8] sm:$0xff]  ;;  %v3126_v19 = vld [vmem:[%s3564_s1 + $0x40] sm:$0xff] }
 0x2c0   :  { %v978_v12 = vmul.f32 %v952_v24, %v868_v17  ;;  %v2266_v47 = vpop.eup %2265  ;;  %v974_v33 = vsel %vm971_vm8, %v973_v30, %v969_v54  ;;  %vm1023_vm11 = vcmp.eq.f32.partialorder %v1022_v35, 8.507059e+37  ;;  %v3144_v24 = vld [vmem:[%s3564_s1 + $0x88] sm:$0xff]  ;;  %v2130_v54 = vld [vmem:[%s3566_s0 + $0x36] sm:$0x3]  ;;  %v3214_v30 = vld [vmem:[%s3565_s2 + $0x3] ss:$0 sm:$0xff] }
 0x2c1   :  { %v995_v57 = vadd.f32 %v2264_v51, %v994_v8  ;;  %v1014_v55 = vmul.f32 %v2266_v47, %v3035_v43  ;;  %vm1019_vm7 = vweird.f32 %v2266_v47  ;;  %v3157_v8 = vld [vmem:[%s3564_s1 + $0x80] sm:$0xff] }
 0x2c2   :  { %v979_v53 = vadd.f32 %v2113_v7, %v978_v12  ;;  %vm1020_vm10 = vmor %vm1018_vm9, %vm1019_vm7  ;;  %v3150_v7 = vld [vmem:[%s3564_s1 + $0xa8] sm:$0xff] }
 0x2c3   :  { %v999_v56 = vsel %vm998_vm1, %v2264_v51, %v995_v57  ;;  %v1015_v16 = vsub.f32 1.0, %v1014_v55  ;;  %v2125_v57 = vld [vmem:[%s3566_s0 + $0x8] sm:$0x3] }
 0x2c4   :  { %2267 = vtanh.f32 %v979_v53  ;;  %v1004_v58 = vsel %vm1001_vm3, %v1003_v59, %v999_v56  ;;  %v2127_v53 = vld [vmem:[%s3566_s0 + $0x18] sm:$0x3]  ;;  %v3190_v59 = vld [vmem:[%s3565_s2] ss:$0 sm:$0xff] }
 0x2c5   :  { %v1030_v34 = vmul.f32 %v1004_v58, %v930_v49  ;;  %v1016_v29 = vmul.f32 %v2266_v47, %v1015_v16  ;;  %v3196_v49 = vld [vmem:[%s3565_s2 + $0x1] ss:$0 sm:$0xff] }
 0x2c7   :  { %v1031_v26 = vadd.f32 %v2118_v62, %v1030_v34  ;;  %v1017_v31 = vadd.f32 %v2266_v47, %v1016_v29 }
 0x2c9   :  { %2269 = vtanh.f32 %v1031_v26  ;;  %v1021_v40 = vsel %vm1020_vm10, %v2266_v47, %v1017_v31 }
 0x2ca   :  { %v2268_v27 = vpop.eup %2267  ;;  %v1026_v51 = vsel %vm1023_vm11, %v1025_v38, %v1021_v40 }
 0x2cb   :  { %v981_v60 = vsub.f32 %v2877_v41, %v2268_v27 }
 0x2cd   :  { %v982_v46 = vmul.f32 %v981_v60, %v974_v33 }
 0x2cf   :  { %v2270_v36 = vpop.eup %2269  ;;  %v3058_v52 = vadd.f32 %v2268_v27, %v982_v46 }
 0x2d0   :  { %v1033_v42 = vsub.f32 %v2940_v15, %v2270_v36  ;;  %v3076_v15 = vld [vmem:[%s3564_s1 + $0x58] sm:$0xff] }
 0x2d1   :  { %2119 = vmatmul.msk.f32.vlgmr.msra.gmra.mxu0 %vm72_vm14, %v3058_v52  ;;  %2120 = vmatmul.msk.f32.vlgmr.msra.gmra.mxu1 %vm72_vm14, %v3058_v52  ;;  %1039 = vst.msk [vmem:[%s3567_s3 + $0x3] sm:$0x1] %vm302_vm15, %v3058_v52  ;;  %v1037_v41 = vrot.slane %v3058_v52, 1 }
 0x2d2   :  { %v1034_v61 = vmul.f32 %v1033_v42, %v1026_v51  ;;  %2121 = vmatmul.msk.f32.vlgmr.msra.gmra.mxu2 %vm72_vm14, %v3058_v52  ;;  %1352 = vmatpush.msra.mxu0 %v3076_v15 }
 0x2d3   :  { %1374 = vmatpush.msra.mxu1 %v2899_v45  ;;  %1394 = vmatpush.msra.mxu2 %v3083_v44  ;;  %1040 = vst.msk [vmem:[%s3567_s3 + $0xb] sm:$0x1] %vm302_vm15, %v1037_v41 }
 0x2d4   :  { %v3090_v43 = vadd.f32 %v2270_v36, %v1034_v61  ;;  %1353 = vmatpush.msra.mxu0 %v3095_v37 }
 0x2d5   :  { %1375 = vmatpush.msra.mxu1 %v2918_v50  ;;  %1395 = vmatpush.msra.mxu2 %v3102_v1 }
 0x2d6   :  { %2122 = vmatmul.msk.f32.vlgmr.msra.gmra.mxu3 %vm72_vm14, %v3090_v43  ;;  %v1043_v10 = vperm.slane %v3090_v43, 0  ;;  %v1042_v11 = vrot.slane %v3090_v43, 1  ;;  %1354 = vmatpush.msra.mxu0 %v3112_v0 }
 0x2d7   :  { %1414 = vmatpush.msra.mxu3 %v3118_v2  ;;  %1376 = vmatpush.msra.mxu1 %v2927_v3 }
 0x2d8   :  { %1045 = vrot.lane.b32.xlu0 %v1043_v10, %s2382_s7  ;;  %v1044_v17 = vperm.slane %v1042_v11, 0  ;;  %1355 = vmatpush.msra.mxu0 %v3126_v19 }
 0x2d9   :  { %2123 = vmatmul.msk.f32.vlgmr.msrb.gmra.mxu0 %vm72_vm14, %v3090_v43  ;;  %2124 = vmatmul.msk.f32.vlgmr.msrb.gmra.mxu1 %vm72_vm14, %v3090_v43 }
 0x2da   :  { %1047 = vrot.lane.b32.xlu1 %v1044_v17, %s2382_s7  ;;  %1415 = vmatpush.msra.mxu3 %v3137_v5 }
 0x2db   :  { %1377 = vmatpush.msra.mxu1 %v2935_v13  ;;  %1396 = vmatpush.msra.mxu2 %v3144_v24 }
 0x2dc   :  { %1416 = vmatpush.msra.mxu3 %v3150_v7  ;;  %1557 = vmatpush.msrb.mxu0 %v2954_v18 }
 0x2dd   :  { %1397 = vmatpush.msra.mxu2 %v3157_v8  ;;  %1577 = vmatpush.msrb.mxu1 %v2961_v20 }
 0x2de   :  { %1417 = vmatpush.msra.mxu3 %v3164_v9  ;;  %1558 = vmatpush.msrb.mxu0 %v2968_v21 }
 0x2df   :  { %1578 = vmatpush.msrb.mxu1 %v2975_v22 }
 0x2e0   :  { %1559 = vmatpush.msrb.mxu0 %v2981_v48 }
 0x2e1   :  { %1579 = vmatpush.msrb.mxu1 %v2988_v23 }
 0x2e2   :  { %1560 = vmatpush.msrb.mxu0 %v2994_v6 }
 0x2e3   :  { %1580 = vmatpush.msrb.mxu1 %v3000_v4 }
 0x34a   :  { %v1046_v12 = vpop.permute.xlu0 %1045 }
 0x34b   :  { %1051 = vst.msk [vmem:[%s3567_s3 + $0x4] sm:$0x1] %vm315_vm2, %v1046_v12 }
 0x34c   :  { %v1048_v14 = vpop.permute.xlu1 %1047 }
 0x34d   :  { %1052 = vst.msk [vmem:[%s3567_s3 + $0xc] sm:$0x1] %vm315_vm2, %v1048_v14 }
 0x34e   :  { %v1072_v32 = vpop.f32.mrf.mxu0  ;;  %v1092_v47 = vpop.f32.mrf.mxu1 }
 0x34f   :  { %v1073_v55 = vadd.f32 %v3190_v59, %v1072_v32  ;;  %v1093_v56 = vadd.f32 %v3196_v49, %v1092_v47 }
 0x351   :  { %v1179_v58 = vadd.f32 %v2125_v57, %v1073_v55  ;;  %v1201_v62 = vadd.f32 %v2127_v53, %v1093_v56 }
 0x353   :  { %v2126_v63 = vmul.f32 -1.442695, %v1179_v58  ;;  %v2128_v16 = vmul.f32 -1.442695, %v1201_v62  ;;  %v3227_v58 = vld [vmem:[%s3565_s2 + $0x2] ss:$0 sm:$0xff] }
 0x355   :  { %2271 = vpow2.f32 %v2126_v63  ;;  %v1112_v47 = vpop.f32.mrf.mxu2 }
 0x356   :  { %2273 = vpow2.f32 %v2128_v16  ;;  %v1154_v34 = vpop.f32.mrf.mxu0  ;;  %v1113_v62 = vadd.f32 %v3227_v58, %v1112_v47 }
 0x357   :  { %v1155_v29 = vadd.f32 %v3205_v39, %v1154_v34  ;;  %v2129_v34 = vld [vmem:[%s3566_s0 + $0x28] sm:$0x3] }
 0x359   :  { %v1134_v26 = vpop.f32.mrf.mxu3  ;;  %v1253_v27 = vadd.f32 %v2132_v25, %v1155_v29 }
 0x35a   :  { %v1135_v31 = vadd.f32 %v3214_v30, %v1134_v26 }
 0x35b   :  { %v2272_v28 = vpop.eup %2271  ;;  %v2133_v60 = vmul.f32 -1.442695, %v1253_v27 }
 0x35c   :  { %v2274_v35 = vpop.eup %2273  ;;  %v1183_v33 = vadd.f32 1.0, %v2272_v28  ;;  %v1231_v46 = vadd.f32 %v2130_v54, %v1135_v31 }
 0x35d   :  { %v3217_v40 = vadd.f32 1.0, %v2274_v35  ;;  %2275 = vpow2.f32 %v2133_v60 }
 0x35e   :  { %2277 = vrcp.f32 %v1183_v33  ;;  %v2131_v36 = vmul.f32 -1.442695, %v1231_v46  ;;  %v1195_v17 = vand.u32 2147483648, %v1183_v33  ;;  %v1193_v32 = vand.u32 2147483647, %v1183_v33 }
 0x35f   :  { %2279 = vrcp.f32 %v3217_v40  ;;  %vm1189_vm13 = vweird.f32 %v1183_v33  ;;  %vm1211_vm4 = vweird.f32 %v3217_v40  ;;  %v1217_v35 = vand.u32 2147483648, %v3217_v40 }
 0x360   :  { %2281 = vpow2.f32 %v2131_v36  ;;  %v1196_v56 = vor.u32 1.1754944e-38, %v1195_v17  ;;  %vm1194_vm1 = vcmp.eq.f32.partialorder %v1193_v32, 8.507059e+37  ;;  %v1215_v36 = vand.u32 2147483647, %v3217_v40 }
 0x362   :  { %vm1216_vm9 = vcmp.eq.f32.partialorder %v1215_v36, 8.507059e+37 }
 0x363   :  { %v2276_v38 = vpop.eup %2275 }
 0x364   :  { %v2278_v42 = vpop.eup %2277  ;;  %v3221_v12 = vadd.f32 1.0, %v2276_v38  ;;  %v1174_v38 = vpop.f32.mrf.mxu1 }
 0x365   :  { %v2280_v51 = vpop.eup %2279  ;;  %v1185_v41 = vmul.f32 %v2278_v42, %v1183_v33  ;;  %vm1190_vm12 = vweird.f32 %v2278_v42 }
 0x366   :  { %v2282_v10 = vpop.eup %2281  ;;  %v1207_v11 = vmul.f32 %v2280_v51, %v3217_v40  ;;  %vm1191_vm0 = vmor %vm1189_vm13, %vm1190_vm12  ;;  %vm1212_vm3 = vweird.f32 %v2280_v51  ;;  %v3249_v40 = vld [vmem:[%s3565_s2 + $0x5] ss:$0 sm:$0xff]  ;;  %vm1263_vm12 = vweird.f32 %v3221_v12 }
 0x367   :  { %v1186_v61 = vsub.f32 1.0, %v1185_v41  ;;  %v1235_v57 = vadd.f32 1.0, %v2282_v10  ;;  %vm3240_vm6 = vmor %vm1211_vm4, %vm1212_vm3  ;;  %v1175_v47 = vadd.f32 %v3249_v40, %v1174_v38 }
 0x368   :  { %v1208_v55 = vsub.f32 1.0, %v1207_v11 }
 0x369   :  { %v1187_v14 = vmul.f32 %v2278_v42, %v1186_v61  ;;  %2283 = vrcp.f32 %v1235_v57  ;;  %v1247_v46 = vand.u32 2147483648, %v1235_v57  ;;  %v1245_v41 = vand.u32 2147483647, %v1235_v57 }
 0x36a   :  { %2285 = vrcp.f32 %v3221_v12  ;;  %v1209_v29 = vmul.f32 %v2280_v51, %v1208_v55  ;;  %vm1241_vm7 = vweird.f32 %v1235_v57 }
 0x36b   :  { %v1188_v53 = vadd.f32 %v2278_v42, %v1187_v14  ;;  %v1218_v14 = vor.u32 1.1754944e-38, %v1217_v35  ;;  %vm1246_vm10 = vcmp.eq.f32.partialorder %v1245_v41, 8.507059e+37 }
 0x36c   :  { %v1210_v28 = vadd.f32 %v2280_v51, %v1209_v29 }
 0x36d   :  { %v1192_v63 = vsel %vm1191_vm0, %v2278_v42, %v1188_v53  ;;  %v1248_v53 = vor.u32 1.1754944e-38, %v1247_v46 }
 0x36e   :  { %v1197_v16 = vsel %vm1194_vm1, %v1196_v56, %v1192_v63  ;;  %v1214_v10 = vsel %vm3240_vm6, %v2280_v51, %v1210_v28 }
 0x36f   :  { %v1223_v25 = vmul.f32 %v1197_v16, %v1113_v62  ;;  %v2284_v26 = vpop.eup %2283  ;;  %v1219_v51 = vsel %vm1216_vm9, %v1218_v14, %v1214_v10 }
 0x370   :  { %v3233_v27 = vpop.eup %2285  ;;  %v1237_v31 = vmul.f32 %v2284_v26, %v1235_v57  ;;  %vm1242_vm5 = vweird.f32 %v2284_v26  ;;  %v2134_v57 = vld [vmem:[%s3566_s0 + $0x56] sm:$0x3] }
 0x371   :  { %v1224_v54 = vadd.f32 %v2129_v34, %v1223_v25  ;;  %v1259_v33 = vmul.f32 %v3233_v27, %v3221_v12  ;;  %vm1243_vm8 = vmor %vm1241_vm7, %vm1242_vm5  ;;  %vm1264_vm11 = vweird.f32 %v3233_v27 }
 0x372   :  { %v1238_v60 = vsub.f32 1.0, %v1237_v31  ;;  %v1267_v31 = vand.u32 2147483647, %v3221_v12  ;;  %vm1265_vm13 = vmor %vm1263_vm12, %vm1264_vm11 }
 0x373   :  { %2287 = vtanh.f32 %v1224_v54  ;;  %v1260_v32 = vsub.f32 1.0, %v1259_v33 }
 0x374   :  { %v1239_v42 = vmul.f32 %v2284_v26, %v1238_v60  ;;  %vm1268_vm0 = vcmp.eq.f32.partialorder %v1267_v31, 8.507059e+37 }
 0x375   :  { %v1261_v34 = vmul.f32 %v3233_v27, %v1260_v32 }
 0x376   :  { %v1240_v11 = vadd.f32 %v2284_v26, %v1239_v42 }
 0x378   :  { %v1244_v56 = vsel %vm1243_vm8, %v2284_v26, %v1240_v11  ;;  %v1269_v26 = vand.u32 2147483648, %v3221_v12 }
 0x379   :  { %v2288_v17 = vpop.eup %2287  ;;  %v1249_v62 = vsel %vm1246_vm10, %v1248_v53, %v1244_v56 }
 0x37a   :  { %v1226_v55 = vsub.f32 %v3058_v52, %v2288_v17  ;;  %v1275_v16 = vmul.f32 %v1249_v62, %v1175_v47  ;;  %v1262_v52 = vadd.f32 %v3233_v27, %v1261_v34  ;;  %v1270_v35 = vor.u32 1.1754944e-38, %v1269_v26 }
 0x37c   :  { %v1227_v63 = vmul.f32 %v1226_v55, %v1219_v51  ;;  %v1276_v29 = vadd.f32 %v2134_v57, %v1275_v16  ;;  %v1266_v28 = vsel %vm1265_vm13, %v3233_v27, %v1262_v52 }
 0x37d   :  { %v1271_v33 = vsel %vm1268_vm0, %v1270_v35, %v1266_v28 }
 0x37e   :  { %v3257_v25 = vadd.f32 %v2288_v17, %v1227_v63  ;;  %2289 = vtanh.f32 %v1276_v29  ;;  %v2146_v17 = vld [vmem:[%s3566_s0 + $0x34] sm:$0x3]  ;;  %v2148_v63 = vld [vmem:[%s3566_s0 + $0x44] sm:$0x3] }
 0x380   :  { %v1282_v54 = vrot.slane %v3257_v25, 1  ;;  %1284 = vst.msk [vmem:[%s3567_s3 + $0x4] sm:$0x1] %vm302_vm15, %v3257_v25  ;;  %2135 = vmatmul.msk.f32.vlgmr.msrb.gmra.mxu2 %vm72_vm14, %v3257_v25  ;;  %2136 = vmatmul.msk.f32.vlgmr.msrb.gmra.mxu3 %vm72_vm14, %v3257_v25 }
 0x381   :  { %2137 = vmatmul.msk.f32.vlgmr.msra.gmra.mxu0 %vm72_vm14, %v3257_v25  ;;  %1619 = vmatpush.msrb.mxu3 %v2899_v45 }
 0x382   :  { %1285 = vst.msk [vmem:[%s3567_s3 + $0xc] sm:$0x1] %vm302_vm15, %v1282_v54  ;;  %1597 = vmatpush.msrb.mxu2 %v3076_v15  ;;  %1639 = vmatpush.msra.mxu0 %v3083_v44 }
 0x383   :  { %1620 = vmatpush.msrb.mxu3 %v2918_v50 }
 0x384   :  { %1598 = vmatpush.msrb.mxu2 %v3095_v37  ;;  %1640 = vmatpush.msra.mxu0 %v3102_v1  ;;  %v2290_v60 = vpop.eup %2289 }
 0x385   :  { %1621 = vmatpush.msrb.mxu3 %v2927_v3  ;;  %v1278_v12 = vsub.f32 %v3090_v43, %v2290_v60 }
 0x386   :  { %1599 = vmatpush.msrb.mxu2 %v3112_v0  ;;  %1641 = vmatpush.msra.mxu0 %v3144_v24 }
 0x387   :  { %1622 = vmatpush.msrb.mxu3 %v2935_v13  ;;  %v1279_v46 = vmul.f32 %v1278_v12, %v1271_v33 }
 0x388   :  { %1600 = vmatpush.msrb.mxu2 %v3126_v19  ;;  %1642 = vmatpush.msra.mxu0 %v3157_v8 }
 0x389   :  { %v3294_v27 = vadd.f32 %v2290_v60, %v1279_v46 }
 0x38b   :  { %2138 = vmatmul.msk.f32.vlgmr.msra.gmra.mxu1 %vm72_vm14, %v3294_v27  ;;  %v1288_v36 = vperm.slane %v3294_v27, 0  ;;  %2139 = vmatmul.msk.f32.vlgmr.msra.gmra.mxu2 %vm72_vm14, %v3294_v27  ;;  %v1287_v43 = vrot.slane %v3294_v27, 1 }
 0x38c   :  { %2140 = vmatmul.msk.f32.vlgmr.msra.gmra.mxu3 %vm72_vm14, %v3294_v27  ;;  %1659 = vmatpush.msra.mxu1 %v3118_v2 }
 0x38d   :  { %1290 = vrot.lane.b32.xlu2 %v1288_v36, %s2382_s7  ;;  %v1289_v38 = vperm.slane %v1287_v43, 0  ;;  %1802 = vmatpush.msra.mxu2 %v2954_v18 }
 0x38e   :  { %1660 = vmatpush.msra.mxu1 %v3137_v5  ;;  %1822 = vmatpush.msra.mxu3 %v2961_v20 }
 0x38f   :  { %1292 = vrot.lane.b32.xlu0 %v1289_v38, %s2382_s7  ;;  %1803 = vmatpush.msra.mxu2 %v2968_v21 }
 0x390   :  { %1661 = vmatpush.msra.mxu1 %v3150_v7  ;;  %1823 = vmatpush.msra.mxu3 %v2975_v22  ;;  %v2141_v22 = vld [vmem:[%s3566_s0 + $0xa] sm:$0x3] }
 0x391   :  { %1804 = vmatpush.msra.mxu2 %v2981_v48 }
 0x392   :  { %1662 = vmatpush.msra.mxu1 %v3164_v9  ;;  %1824 = vmatpush.msra.mxu3 %v2988_v23 }
 0x393   :  { %1805 = vmatpush.msra.mxu2 %v2994_v6  ;;  %v2143_v6 = vld [vmem:[%s3566_s0 + $0x1a] sm:$0x3] }
 0x394   :  { %1825 = vmatpush.msra.mxu3 %v3000_v4 }
 0x3e7   :  { %v1291_v18 = vpop.permute.xlu2 %1290 }
 0x3e8   :  { %1296 = vst.msk [vmem:[%s3567_s3 + $0x3] sm:$0x1] %vm315_vm2, %v1291_v18 }
 0x3fe   :  { %v1357_v36 = vpop.f32.mrf.mxu0 }
 0x401   :  { %v1293_v20 = vpop.permute.xlu0 %1292 }
 0x402   :  { %1297 = vst.msk [vmem:[%s3567_s3 + $0xb] sm:$0x1] %vm315_vm2, %v1293_v20 }
 0x403   :  { %v1317_v21 = vpop.f32.mrf.mxu2  ;;  %v1337_v23 = vpop.f32.mrf.mxu3 }
 0x404   :  { %v1318_v48 = vadd.f32 %v3190_v59, %v1317_v21  ;;  %v1338_v4 = vadd.f32 %v3196_v49, %v1337_v23 }
 0x406   :  { %v1424_v42 = vadd.f32 %v2141_v22, %v1318_v48  ;;  %v1446_v41 = vadd.f32 %v2143_v6, %v1338_v4  ;;  %v1358_v48 = vadd.f32 %v3227_v58, %v1357_v36  ;;  %v2145_v4 = vld [vmem:[%s3566_s0 + $0x2a] sm:$0x3] }
 0x408   :  { %v2142_v61 = vmul.f32 -1.442695, %v1424_v42  ;;  %v2144_v10 = vmul.f32 -1.442695, %v1446_v41  ;;  %v1379_v11 = vpop.f32.mrf.mxu1 }
 0x409   :  { %v1380_v14 = vadd.f32 %v3214_v30, %v1379_v11 }
 0x40a   :  { %2291 = vpow2.f32 %v2142_v61 }
 0x40b   :  { %2293 = vpow2.f32 %v2144_v10  ;;  %v1476_v32 = vadd.f32 %v2146_v17, %v1380_v14 }
 0x40d   :  { %v2147_v47 = vmul.f32 -1.442695, %v1476_v32 }
 0x40e   :  { %v1399_v55 = vpop.f32.mrf.mxu2 }
 0x40f   :  { %2295 = vpow2.f32 %v2147_v47  ;;  %v1400_v62 = vadd.f32 %v3205_v39, %v1399_v55  ;;  %v1419_v11 = vpop.f32.mrf.mxu3 }
 0x410   :  { %v2292_v53 = vpop.eup %2291  ;;  %v1420_v55 = vadd.f32 %v3249_v40, %v1419_v11 }
 0x411   :  { %v2294_v56 = vpop.eup %2293  ;;  %v1428_v51 = vadd.f32 1.0, %v2292_v53  ;;  %v1498_v16 = vadd.f32 %v2148_v63, %v1400_v62 }
 0x412   :  { %v3339_v57 = vadd.f32 1.0, %v2294_v56 }
 0x413   :  { %2297 = vrcp.f32 %v1428_v51  ;;  %v2149_v29 = vmul.f32 -1.442695, %v1498_v16  ;;  %v1440_v60 = vand.u32 2147483648, %v1428_v51  ;;  %v1438_v33 = vand.u32 2147483647, %v1428_v51 }
 0x414   :  { %2299 = vrcp.f32 %v3339_v57  ;;  %vm1434_vm3 = vweird.f32 %v1428_v51  ;;  %v1462_v16 = vand.u32 2147483648, %v3339_v57  ;;  %vm1456_vm11 = vweird.f32 %v3339_v57 }
 0x415   :  { %v2296_v34 = vpop.eup %2295  ;;  %2301 = vpow2.f32 %v2149_v29  ;;  %v1441_v20 = vor.u32 1.1754944e-38, %v1440_v60  ;;  %vm1439_vm5 = vcmp.eq.f32.partialorder %v1438_v33, 8.507059e+37  ;;  %v2150_v29 = vld [vmem:[%s3566_s0 + $0x54] sm:$0x3] }
 0x416   :  { %v1480_v54 = vadd.f32 1.0, %v2296_v34  ;;  %v1463_v33 = vor.u32 1.1754944e-38, %v1462_v16 }
 0x418   :  { %2303 = vrcp.f32 %v1480_v54  ;;  %v1492_v61 = vand.u32 2147483648, %v1480_v54  ;;  %v1490_v14 = vand.u32 2147483647, %v1480_v54  ;;  %vm1486_vm7 = vweird.f32 %v1480_v54 }
 0x419   :  { %v2298_v52 = vpop.eup %2297 }
 0x41a   :  { %v3345_v26 = vpop.eup %2299  ;;  %v1430_v31 = vmul.f32 %v2298_v52, %v1428_v51  ;;  %vm1435_vm1 = vweird.f32 %v2298_v52  ;;  %v1493_v56 = vor.u32 1.1754944e-38, %v1492_v61  ;;  %vm1491_vm10 = vcmp.eq.f32.partialorder %v1490_v14, 8.507059e+37 }
 0x41b   :  { %v1452_v35 = vmul.f32 %v3345_v26, %v3339_v57  ;;  %v2302_v46 = vpop.eup %2301  ;;  %vm1436_vm4 = vmor %vm1434_vm3, %vm1435_vm1  ;;  %vm1457_vm8 = vweird.f32 %v3345_v26 }
 0x41c   :  { %v1431_v28 = vsub.f32 1.0, %v1430_v31  ;;  %v3349_v18 = vadd.f32 1.0, %v2302_v46  ;;  %vm1458_vm12 = vmor %vm1456_vm11, %vm1457_vm8 }
 0x41d   :  { %v1453_v21 = vsub.f32 1.0, %v1452_v35 }
 0x41e   :  { %v1432_v12 = vmul.f32 %v2298_v52, %v1431_v28  ;;  %v2304_v43 = vpop.eup %2303  ;;  %2305 = vrcp.f32 %v3349_v18  ;;  %vm1508_vm1 = vweird.f32 %v3349_v18 }
 0x41f   :  { %v1482_v22 = vmul.f32 %v2304_v43, %v1480_v54  ;;  %v1454_v10 = vmul.f32 %v3345_v26, %v1453_v21  ;;  %vm1487_vm6 = vweird.f32 %v2304_v43  ;;  %v1460_v54 = vand.u32 2147483647, %v3339_v57 }
 0x420   :  { %v1433_v38 = vadd.f32 %v2298_v52, %v1432_v12  ;;  %vm1488_vm9 = vmor %vm1486_vm7, %vm1487_vm6  ;;  %v1514_v57 = vand.u32 2147483648, %v3349_v18 }
 0x421   :  { %v1483_v42 = vsub.f32 1.0, %v1482_v22  ;;  %v1455_v51 = vadd.f32 %v3345_v26, %v1454_v10  ;;  %vm1461_vm13 = vcmp.eq.f32.partialorder %v1460_v54, 8.507059e+37 }
 0x422   :  { %v1437_v23 = vsel %vm1436_vm4, %v2298_v52, %v1433_v38 }
 0x423   :  { %v1442_v6 = vsel %vm1439_vm5, %v1441_v20, %v1437_v23  ;;  %v1484_v17 = vmul.f32 %v2304_v43, %v1483_v42  ;;  %v1459_v28 = vsel %vm1458_vm12, %v3345_v26, %v1455_v51  ;;  %v1512_v20 = vand.u32 2147483647, %v3349_v18 }
 0x424   :  { %v1468_v41 = vmul.f32 %v1442_v6, %v1358_v48  ;;  %v2306_v53 = vpop.eup %2305  ;;  %v1515_v48 = vor.u32 1.1754944e-38, %v1514_v57 }
 0x425   :  { %v1485_v47 = vadd.f32 %v2304_v43, %v1484_v17  ;;  %v1504_v62 = vmul.f32 %v2306_v53, %v3349_v18  ;;  %vm1509_vm0 = vweird.f32 %v2306_v53  ;;  %vm1513_vm4 = vcmp.eq.f32.partialorder %v1512_v20, 8.507059e+37  ;;  %v2161_v20 = vld [vmem:[%s3566_s0 + $0x2c] sm:$0x3] }
 0x426   :  { %v1469_v32 = vadd.f32 %v2145_v4, %v1468_v41  ;;  %vm1510_vm3 = vmor %vm1508_vm1, %vm1509_vm0  ;;  %v2164_v4 = vld [vmem:[%s3566_s0 + $0x42] sm:$0x3] }
 0x427   :  { %v1489_v63 = vsel %vm1488_vm9, %v2304_v43, %v1485_v47  ;;  %v1505_v52 = vsub.f32 1.0, %v1504_v62  ;;  %v1464_v43 = vsel %vm1461_vm13, %v1463_v33, %v1459_v28  ;;  %v2162_v47 = vld [vmem:[%s3566_s0 + $0x32] sm:$0x3] }
 0x428   :  { %2307 = vtanh.f32 %v1469_v32  ;;  %v1494_v34 = vsel %vm1491_vm10, %v1493_v56, %v1489_v63 }
 0x429   :  { %v1520_v31 = vmul.f32 %v1494_v34, %v1420_v55  ;;  %v1506_v60 = vmul.f32 %v2306_v53, %v1505_v52 }
 0x42b   :  { %v1521_v35 = vadd.f32 %v2150_v29, %v1520_v31  ;;  %v1507_v36 = vadd.f32 %v2306_v53, %v1506_v60 }
 0x42d   :  { %2309 = vtanh.f32 %v1521_v35  ;;  %v1511_v21 = vsel %vm1510_vm3, %v2306_v53, %v1507_v36 }
 0x42e   :  { %v2308_v12 = vpop.eup %2307  ;;  %v1516_v18 = vsel %vm1513_vm4, %v1515_v48, %v1511_v21 }
 0x42f   :  { %v1471_v46 = vsub.f32 %v3257_v25, %v2308_v12 }
 0x431   :  { %v1472_v38 = vmul.f32 %v1471_v46, %v1464_v43 }
 0x433   :  { %v3374_v26 = vadd.f32 %v2308_v12, %v1472_v38  ;;  %v2310_v22 = vpop.eup %2309 }
 0x434   :  { %v1523_v25 = vsub.f32 %v3294_v27, %v2310_v22 }
 0x435   :  { %v1527_v23 = vrot.slane %v3374_v26, 1  ;;  %1529 = vst.msk [vmem:[%s3567_s3 + $0x5] sm:$0x1] %vm302_vm15, %v3374_v26  ;;  %2151 = vmatmul.msk.f32.vlgmr.msrb.gmra.mxu0 %vm72_vm14, %v3374_v26  ;;  %2152 = vmatmul.msk.f32.vlgmr.msrb.gmra.mxu1 %vm72_vm14, %v3374_v26 }
 0x436   :  { %2153 = vmatmul.msk.f32.vlgmr.msrb.gmra.mxu2 %vm72_vm14, %v3374_v26  ;;  %1842 = vmatpush.msrb.mxu0 %v3076_v15  ;;  %v1524_v6 = vmul.f32 %v1523_v25, %v1516_v18 }
 0x437   :  { %1530 = vst.msk [vmem:[%s3567_s3 + $0xd] sm:$0x1] %vm302_vm15, %v1527_v23  ;;  %1864 = vmatpush.msrb.mxu1 %v2899_v45  ;;  %1884 = vmatpush.msrb.mxu2 %v3083_v44 }
 0x438   :  { %1843 = vmatpush.msrb.mxu0 %v3095_v37  ;;  %v3399_v27 = vadd.f32 %v2310_v22, %v1524_v6  ;;  %v2157_v37 = vld [vmem:[%s3566_s0 + $0xc] sm:$0x3] }
 0x439   :  { %1865 = vmatpush.msrb.mxu1 %v2918_v50  ;;  %1885 = vmatpush.msrb.mxu2 %v3102_v1 }
 0x43a   :  { %1844 = vmatpush.msrb.mxu0 %v3112_v0  ;;  %2154 = vmatmul.msk.f32.vlgmr.msrb.gmra.mxu3 %vm72_vm14, %v3399_v27  ;;  %v1533_v45 = vperm.slane %v3399_v27, 0  ;;  %v1532_v15 = vrot.slane %v3399_v27, 1  ;;  %v2159_v0 = vld [vmem:[%s3566_s0 + $0x1c] sm:$0x3] }
 0x43b   :  { %1866 = vmatpush.msrb.mxu1 %v2927_v3  ;;  %1886 = vmatpush.msrb.mxu2 %v3144_v24 }
 0x43c   :  { %1845 = vmatpush.msrb.mxu0 %v3126_v19  ;;  %1535 = vrot.lane.b32.xlu1 %v1533_v45, %s2382_s7  ;;  %v1534_v50 = vperm.slane %v1532_v15, 0 }
 0x43d   :  { %2155 = vmatmul.msk.f32.vlgmr.msra.gmra.mxu0 %vm72_vm14, %v3399_v27  ;;  %2156 = vmatmul.msk.f32.vlgmr.msra.gmra.mxu1 %vm72_vm14, %v3399_v27 }
 0x43e   :  { %1904 = vmatpush.msrb.mxu3 %v3118_v2  ;;  %1867 = vmatpush.msrb.mxu1 %v2935_v13 }
 0x43f   :  { %1887 = vmatpush.msrb.mxu2 %v3157_v8  ;;  %1537 = vrot.lane.b32.xlu2 %v1534_v50, %s2382_s7 }
 0x440   :  { %1905 = vmatpush.msrb.mxu3 %v3137_v5 }
 0x442   :  { %1906 = vmatpush.msrb.mxu3 %v3150_v7 }
 0x444   :  { %1907 = vmatpush.msrb.mxu3 %v3164_v9 }
 0x499   :  { %v1538_v3 = vpop.permute.xlu2 %1537 }
 0x49a   :  { %1542 = vst.msk [vmem:[%s3567_s3 + $0xa] sm:$0x1] %vm315_vm2, %v1538_v3 }
 0x4ae   :  { %v1536_v44 = vpop.permute.xlu1 %1535 }
 0x4af   :  { %1541 = vst.msk [vmem:[%s3567_s3 + $0x2] sm:$0x1] %vm315_vm2, %v1536_v44 }
 0x4b2   :  { %v1562_v13 = vpop.f32.mrf.mxu0  ;;  %v1582_v1 = vpop.f32.mrf.mxu1 }
 0x4b3   :  { %v1563_v2 = vadd.f32 %v3190_v59, %v1562_v13  ;;  %v1583_v19 = vadd.f32 %v3196_v49, %v1582_v1 }
 0x4b5   :  { %v1669_v5 = vadd.f32 %v2157_v37, %v1563_v2  ;;  %v1691_v24 = vadd.f32 %v2159_v0, %v1583_v19 }
 0x4b7   :  { %v2158_v7 = vmul.f32 -1.442695, %v1669_v5  ;;  %v2160_v8 = vmul.f32 -1.442695, %v1691_v24 }
 0x4b9   :  { %2311 = vpow2.f32 %v2158_v7  ;;  %v1602_v60 = vpop.f32.mrf.mxu2 }
 0x4ba   :  { %2313 = vpow2.f32 %v2160_v8  ;;  %v1644_v9 = vpop.f32.mrf.mxu0  ;;  %v1603_v43 = vadd.f32 %v3227_v58, %v1602_v60  ;;  %v1664_v19 = vpop.f32.mrf.mxu1  ;;  %v2173_v60 = vld [vmem:[%s3566_s0 + $0xe] sm:$0x3] }
 0x4bb   :  { %v1645_v42 = vadd.f32 %v3205_v39, %v1644_v9 }
 0x4bd   :  { %v1743_v41 = vadd.f32 %v2164_v4, %v1645_v42  ;;  %v1624_v10 = vpop.f32.mrf.mxu3  ;;  %v1665_v42 = vadd.f32 %v3249_v40, %v1664_v19 }
 0x4be   :  { %v1625_v14 = vadd.f32 %v3214_v30, %v1624_v10  ;;  %v2166_v10 = vld [vmem:[%s3566_s0 + $0x52] sm:$0x3] }
 0x4bf   :  { %v2312_v61 = vpop.eup %2311  ;;  %v2165_v53 = vmul.f32 -1.442695, %v1743_v41 }
 0x4c0   :  { %v2314_v11 = vpop.eup %2313  ;;  %v1673_v17 = vadd.f32 1.0, %v2312_v61  ;;  %v1721_v55 = vadd.f32 %v2162_v47, %v1625_v14 }
 0x4c1   :  { %v1695_v32 = vadd.f32 1.0, %v2314_v11 }
 0x4c2   :  { %2315 = vrcp.f32 %v1673_v17  ;;  %v2163_v56 = vmul.f32 -1.442695, %v1721_v55  ;;  %v1685_v54 = vand.u32 2147483648, %v1673_v17  ;;  %v1683_v31 = vand.u32 2147483647, %v1673_v17 }
 0x4c3   :  { %2317 = vrcp.f32 %v1695_v32  ;;  %vm1679_vm6 = vweird.f32 %v1673_v17  ;;  %v1707_v45 = vand.u32 2147483648, %v1695_v32  ;;  %vm1701_vm10 = vweird.f32 %v1695_v32 }
 0x4c4   :  { %2319 = vpow2.f32 %v2165_v53  ;;  %v1686_v36 = vor.u32 1.1754944e-38, %v1685_v54  ;;  %vm1684_vm8 = vcmp.eq.f32.partialorder %v1683_v31, 8.507059e+37  ;;  %v1705_v15 = vand.u32 2147483647, %v1695_v32 }
 0x4c5   :  { %2321 = vpow2.f32 %v2163_v56  ;;  %v1708_v2 = vor.u32 1.1754944e-38, %v1707_v45 }
 0x4c6   :  { %vm1706_vm13 = vcmp.eq.f32.partialorder %v1705_v15, 8.507059e+37  ;;  %v2180_v15 = vld [vmem:[%s3566_s0 + $0x40] sm:$0x3] }
 0x4c8   :  { %v2316_v51 = vpop.eup %2315 }
 0x4c9   :  { %v2318_v62 = vpop.eup %2317  ;;  %v1675_v63 = vmul.f32 %v2316_v51, %v1673_v17  ;;  %vm1680_vm5 = vweird.f32 %v2316_v51 }
 0x4ca   :  { %v2320_v16 = vpop.eup %2319  ;;  %v1697_v29 = vmul.f32 %v2318_v62, %v1695_v32  ;;  %vm1681_vm7 = vmor %vm1679_vm6, %vm1680_vm5  ;;  %vm1702_vm9 = vweird.f32 %v2318_v62 }
 0x4cb   :  { %v1676_v34 = vsub.f32 1.0, %v1675_v63  ;;  %v2322_v28 = vpop.eup %2321  ;;  %v3445_v35 = vadd.f32 1.0, %v2320_v16  ;;  %vm1703_vm11 = vmor %vm1701_vm10, %vm1702_vm9 }
 0x4cc   :  { %v1725_v33 = vadd.f32 1.0, %v2322_v28  ;;  %v1698_v46 = vsub.f32 1.0, %v1697_v29 }
 0x4cd   :  { %v1677_v52 = vmul.f32 %v2316_v51, %v1676_v34  ;;  %v1759_v53 = vand.u32 2147483648, %v3445_v35  ;;  %vm1753_vm5 = vweird.f32 %v3445_v35  ;;  %v1757_v55 = vand.u32 2147483647, %v3445_v35 }
 0x4ce   :  { %2323 = vrcp.f32 %v1725_v33  ;;  %v1699_v22 = vmul.f32 %v2318_v62, %v1698_v46  ;;  %v1737_v44 = vand.u32 2147483648, %v1725_v33  ;;  %v1735_v1 = vand.u32 2147483647, %v1725_v33 }
 0x4cf   :  { %v1678_v12 = vadd.f32 %v2316_v51, %v1677_v52  ;;  %2325 = vrcp.f32 %v3445_v35  ;;  %vm1731_vm0 = vweird.f32 %v1725_v33 }
 0x4d0   :  { %v1700_v18 = vadd.f32 %v2318_v62, %v1699_v22  ;;  %v1738_v9 = vor.u32 1.1754944e-38, %v1737_v44  ;;  %vm1736_vm3 = vcmp.eq.f32.partialorder %v1735_v1, 8.507059e+37 }
 0x4d1   :  { %v1682_v57 = vsel %vm1681_vm7, %v2316_v51, %v1678_v12  ;;  %vm1758_vm7 = vcmp.eq.f32.partialorder %v1757_v55, 8.507059e+37 }
 0x4d2   :  { %v1687_v38 = vsel %vm1684_vm8, %v1686_v36, %v1682_v57  ;;  %v1704_v13 = vsel %vm1703_vm11, %v2318_v62, %v1700_v18  ;;  %v1760_v62 = vor.u32 1.1754944e-38, %v1759_v53 }
 0x4d3   :  { %v1713_v21 = vmul.f32 %v1687_v38, %v1603_v43  ;;  %v1709_v7 = vsel %vm1706_vm13, %v1708_v2, %v1704_v13 }
 0x4d4   :  { %v2324_v23 = vpop.eup %2323 }
 0x4d5   :  { %v1714_v48 = vadd.f32 %v2161_v20, %v1713_v21  ;;  %v2326_v25 = vpop.eup %2325  ;;  %v1727_v6 = vmul.f32 %v2324_v23, %v1725_v33  ;;  %vm1732_vm12 = vweird.f32 %v2324_v23  ;;  %v2175_v33 = vld [vmem:[%s3566_s0 + $0x1e] sm:$0x3]  ;;  %v2178_v21 = vld [vmem:[%s3566_s0 + $0x30] sm:$0x3] }
 0x4d6   :  { %v1749_v3 = vmul.f32 %v2326_v25, %v3445_v35  ;;  %vm1733_vm1 = vmor %vm1731_vm0, %vm1732_vm12  ;;  %vm1754_vm4 = vweird.f32 %v2326_v25 }
 0x4d7   :  { %2327 = vtanh.f32 %v1714_v48  ;;  %v1728_v50 = vsub.f32 1.0, %v1727_v6  ;;  %vm1755_vm6 = vmor %vm1753_vm5, %vm1754_vm4 }
 0x4d8   :  { %v1750_v8 = vsub.f32 1.0, %v1749_v3 }
 0x4d9   :  { %v1729_v37 = vmul.f32 %v2324_v23, %v1728_v50 }
 0x4db   :  { %v1730_v24 = vadd.f32 %v2324_v23, %v1729_v37 }
 0x4dd   :  { %v2328_v0 = vpop.eup %2327  ;;  %v1734_v41 = vsel %vm1733_vm1, %v2324_v23, %v1730_v24 }
 0x4de   :  { %v1716_v5 = vsub.f32 %v3374_v26, %v2328_v0  ;;  %v1739_v61 = vsel %vm1736_vm3, %v1738_v9, %v1734_v41  ;;  %v1751_v26 = vmul.f32 %v2326_v25, %v1750_v8 }
 0x4df   :  { %v1765_v17 = vmul.f32 %v1739_v61, %v1665_v42 }
 0x4e0   :  { %v1717_v4 = vmul.f32 %v1716_v5, %v1709_v7  ;;  %v1752_v47 = vadd.f32 %v2326_v25, %v1751_v26  ;;  %v2177_v26 = vld [vmem:[%s3566_s0 + $0x2e] sm:$0x3] }
 0x4e1   :  { %v1766_v32 = vadd.f32 %v2166_v10, %v1765_v17 }
 0x4e2   :  { %v3458_v11 = vadd.f32 %v2328_v0, %v1717_v4  ;;  %v1756_v56 = vsel %vm1755_vm6, %v2326_v25, %v1752_v47 }
 0x4e3   :  { %2329 = vtanh.f32 %v1766_v32  ;;  %v1761_v16 = vsel %vm1758_vm7, %v1760_v62, %v1756_v56 }
 0x4e4   :  { %v1772_v14 = vrot.slane %v3458_v11, 1  ;;  %1774 = vst.msk [vmem:[%s3567_s3 + $0x6] sm:$0x1] %vm302_vm15, %v3458_v11  ;;  %2167 = vmatmul.msk.f32.vlgmr.msra.gmra.mxu2 %vm72_vm14, %v3458_v11  ;;  %2168 = vmatmul.msk.f32.vlgmr.msra.gmra.mxu3 %vm72_vm14, %v3458_v11 }
 0x4e5   :  { %2169 = vmatmul.msk.f32.vlgmr.msrb.gmra.mxu0 %vm72_vm14, %v3458_v11 }
 0x4e6   :  { %1775 = vst.msk [vmem:[%s3567_s3 + $0xe] sm:$0x1] %vm302_vm15, %v1772_v14 }
 0x4e9   :  { %v2330_v51 = vpop.eup %2329 }
 0x4ea   :  { %v1768_v63 = vsub.f32 %v3399_v27, %v2330_v51 }
 0x4ec   :  { %v1769_v34 = vmul.f32 %v1768_v63, %v1761_v16 }
 0x4ee   :  { %v3480_v29 = vadd.f32 %v2330_v51, %v1769_v34 }
 0x4f0   :  { %2170 = vmatmul.msk.f32.vlgmr.msrb.gmra.mxu1 %vm72_vm14, %v3480_v29  ;;  %v1778_v54 = vperm.slane %v3480_v29, 0  ;;  %2171 = vmatmul.msk.f32.vlgmr.msrb.gmra.mxu2 %vm72_vm14, %v3480_v29  ;;  %v1777_v52 = vrot.slane %v3480_v29, 1 }
 0x4f1   :  { %2172 = vmatmul.msk.f32.vlgmr.msrb.gmra.mxu3 %vm72_vm14, %v3480_v29 }
 0x4f2   :  { %1780 = vrot.lane.b32.xlu0 %v1778_v54, %s2382_s7  ;;  %v1779_v27 = vperm.slane %v1777_v52, 0 }
 0x4f4   :  { %1782 = vrot.lane.b32.xlu1 %v1779_v27, %s2382_s7 }
 0x562   :  { %v1847_v8 = vpop.f32.mrf.mxu0 }
 0x563   :  { %v1848_v41 = vadd.f32 %v3227_v58, %v1847_v8 }
 0x564   :  { %v1781_v31 = vpop.permute.xlu0 %1780 }
 0x565   :  { %1786 = vst.msk [vmem:[%s3567_s3 + $0x1] sm:$0x1] %vm315_vm2, %v1781_v31 }
 0x566   :  { %v1783_v46 = vpop.permute.xlu1 %1782 }
 0x567   :  { %v1807_v28 = vpop.f32.mrf.mxu2  ;;  %v1827_v12 = vpop.f32.mrf.mxu3  ;;  %1787 = vst.msk [vmem:[%s3567_s3 + $0x9] sm:$0x1] %vm315_vm2, %v1783_v46 }
 0x568   :  { %v1808_v35 = vadd.f32 %v3190_v59, %v1807_v28  ;;  %v1828_v36 = vadd.f32 %v3196_v49, %v1827_v12 }
 0x56a   :  { %v1914_v43 = vadd.f32 %v2173_v60, %v1808_v35  ;;  %v1936_v57 = vadd.f32 %v2175_v33, %v1828_v36 }
 0x56c   :  { %v2174_v38 = vmul.f32 -1.442695, %v1914_v43  ;;  %v2176_v20 = vmul.f32 -1.442695, %v1936_v57 }
 0x56d   :  { %v1869_v59 = vpop.f32.mrf.mxu1 }
 0x56e   :  { %2331 = vpow2.f32 %v2174_v38  ;;  %v1870_v22 = vadd.f32 %v3214_v30, %v1869_v59  ;;  %v2182_v38 = vld [vmem:[%s3566_s0 + $0x50] sm:$0x3] }
 0x56f   :  { %2333 = vpow2.f32 %v2176_v20 }
 0x570   :  { %v1966_v48 = vadd.f32 %v2178_v21, %v1870_v22 }
 0x572   :  { %v2179_v18 = vmul.f32 -1.442695, %v1966_v48 }
 0x573   :  { %v1889_v45 = vpop.f32.mrf.mxu2 }
 0x574   :  { %v2332_v49 = vpop.eup %2331  ;;  %v1890_v50 = vadd.f32 %v3205_v39, %v1889_v45  ;;  %v1909_v62 = vpop.f32.mrf.mxu3 }
 0x575   :  { %v2334_v23 = vpop.eup %2333  ;;  %v1918_v25 = vadd.f32 1.0, %v2332_v49  ;;  %v1910_v60 = vadd.f32 %v3249_v40, %v1909_v62 }
 0x576   :  { %v3512_v6 = vadd.f32 1.0, %v2334_v23  ;;  %v1988_v3 = vadd.f32 %v2180_v15, %v1890_v50 }
 0x577   :  { %2335 = vrcp.f32 %v1918_v25  ;;  %v1930_v19 = vand.u32 2147483648, %v1918_v25  ;;  %v1928_v7 = vand.u32 2147483647, %v1918_v25  ;;  %vm1924_vm8 = vweird.f32 %v1918_v25 }
 0x578   :  { %2337 = vrcp.f32 %v3512_v6  ;;  %v2181_v44 = vmul.f32 -1.442695, %v1988_v3  ;;  %vm1946_vm13 = vweird.f32 %v3512_v6  ;;  %v1952_v54 = vand.u32 2147483648, %v3512_v6 }
 0x579   :  { %2339 = vpow2.f32 %v2179_v18  ;;  %v1931_v4 = vor.u32 1.1754944e-38, %v1930_v19  ;;  %vm1929_vm10 = vcmp.eq.f32.partialorder %v1928_v7, 8.507059e+37  ;;  %v1950_v27 = vand.u32 2147483647, %v3512_v6 }
 0x57a   :  { %2341 = vpow2.f32 %v2181_v44  ;;  %v1953_v43 = vor.u32 1.1754944e-38, %v1952_v54 }
 0x57b   :  { %vm1951_vm5 = vcmp.eq.f32.partialorder %v1950_v27, 8.507059e+37 }
 0x57d   :  { %v2336_v30 = vpop.eup %2335 }
 0x57e   :  { %v3519_v13 = vpop.eup %2337  ;;  %v1920_v37 = vmul.f32 %v2336_v30, %v1918_v25  ;;  %vm1925_vm14 = vweird.f32 %v2336_v30 }
 0x57f   :  { %v2340_v1 = vpop.eup %2339  ;;  %v1942_v5 = vmul.f32 %v3519_v13, %v3512_v6  ;;  %vm1926_vm9 = vmor %vm1924_vm8, %vm1925_vm14  ;;  %vm1947_vm11 = vweird.f32 %v3519_v13 }
 0x580   :  { %v1921_v0 = vsub.f32 1.0, %v1920_v37  ;;  %v1970_v2 = vadd.f32 1.0, %v2340_v1  ;;  %v2342_v9 = vpop.eup %2341  ;;  %vm3532_vm0 = vmor %vm1946_vm13, %vm1947_vm11 }
 0x581   :  { %v1943_v42 = vsub.f32 1.0, %v1942_v5  ;;  %v1992_v10 = vadd.f32 1.0, %v2342_v9 }
 0x582   :  { %v1922_v24 = vmul.f32 %v2336_v30, %v1921_v0  ;;  %2343 = vrcp.f32 %v1970_v2  ;;  %v1982_v58 = vand.u32 2147483648, %v1970_v2  ;;  %v1980_v16 = vand.u32 2147483647, %v1970_v2 }
 0x583   :  { %2345 = vrcp.f32 %v1992_v10  ;;  %v1944_v47 = vmul.f32 %v3519_v13, %v1943_v42  ;;  %vm1976_vm1 = vweird.f32 %v1970_v2  ;;  %v2004_v18 = vand.u32 2147483648, %v1992_v10 }
 0x584   :  { %v1923_v39 = vadd.f32 %v2336_v30, %v1922_v24  ;;  %v1983_v35 = vor.u32 1.1754944e-38, %v1982_v58  ;;  %vm1981_vm4 = vcmp.eq.f32.partialorder %v1980_v16, 8.507059e+37  ;;  %vm1998_vm7 = vweird.f32 %v1992_v10 }
 0x585   :  { %v1945_v51 = vadd.f32 %v3519_v13, %v1944_v47  ;;  %v2002_v6 = vand.u32 2147483647, %v1992_v10  ;;  %v2005_v15 = vor.u32 1.1754944e-38, %v2004_v18 }
 0x586   :  { %v1927_v61 = vsel %vm1926_vm9, %v2336_v30, %v1923_v39 }
 0x587   :  { %v1932_v17 = vsel %vm1929_vm10, %v1931_v4, %v1927_v61  ;;  %v1949_v12 = vsel %vm3532_vm0, %v3519_v13, %v1945_v51  ;;  %vm2003_vm8 = vcmp.eq.f32.partialorder %v2002_v6, 8.507059e+37 }
 0x588   :  { %v2344_v14 = vpop.eup %2343  ;;  %v1958_v32 = vmul.f32 %v1932_v17, %v1848_v41  ;;  %v1954_v59 = vsel %vm1951_vm5, %v1953_v43, %v1949_v12 }
 0x589   :  { %v1972_v53 = vmul.f32 %v2344_v14, %v1970_v2  ;;  %vm1977_vm12 = vweird.f32 %v2344_v14  ;;  %v2346_v34 = vpop.eup %2345 }
 0x58a   :  { %v1959_v55 = vadd.f32 %v2177_v26, %v1958_v32  ;;  %v1994_v31 = vmul.f32 %v2346_v34, %v1992_v10  ;;  %vm1978_vm3 = vmor %vm1976_vm1, %vm1977_vm12  ;;  %vm1999_vm6 = vweird.f32 %v2346_v34 }
 0x58b   :  { %v1973_v56 = vsub.f32 1.0, %v1972_v53  ;;  %vm2000_vm14 = vmor %vm1998_vm7, %vm1999_vm6 }
 0x58c   :  { %2347 = vtanh.f32 %v1959_v55  ;;  %v1995_v33 = vsub.f32 1.0, %v1994_v31 }
 0x58d   :  { %v1974_v63 = vmul.f32 %v2344_v14, %v1973_v56 }
 0x58e   :  { %v1996_v21 = vmul.f32 %v2346_v34, %v1995_v33 }
 0x58f   :  { %v1975_v28 = vadd.f32 %v2344_v14, %v1974_v63 }
 0x590   :  { %v1997_v23 = vadd.f32 %v2346_v34, %v1996_v21 }
 0x591   :  { %v1979_v46 = vsel %vm1978_vm3, %v2344_v14, %v1975_v28 }
 0x592   :  { %v2348_v36 = vpop.eup %2347  ;;  %v1984_v57 = vsel %vm1981_vm4, %v1983_v35, %v1979_v46 }
 0x593   :  { %v1961_v20 = vsub.f32 %v3458_v11, %v2348_v36  ;;  %v2010_v40 = vmul.f32 %v1984_v57, %v1910_v60  ;;  %v2001_v11 = vsel %vm2000_vm14, %v2346_v34, %v1997_v23 }
 0x594   :  { %v2006_v3 = vsel %vm2003_vm8, %v2005_v15, %v2001_v11 }
 0x595   :  { %v1962_v22 = vmul.f32 %v1961_v20, %v1954_v59  ;;  %v2011_v48 = vadd.f32 %v2182_v38, %v2010_v40 }
 0x597   :  { %v1963_v49 = vadd.f32 %v2348_v36, %v1962_v22  ;;  %2349 = vtanh.f32 %v2011_v48 }
 0x599   :  { %v2017_v25 = vrot.slane %v1963_v49, 1  ;;  %2019 = vst.msk [vmem:[%s3567_s3 + $0x7] sm:$0x1] %vm302_vm15, %v1963_v49 }
 0x59b   :  { %2020 = vst.msk [vmem:[%s3567_s3 + $0xf] sm:$0x1] %vm302_vm15, %v2017_v25 }
 0x59d   :  { %v2350_v45 = vpop.eup %2349 }
 0x59e   :  { %v2013_v50 = vsub.f32 %v3480_v29, %v2350_v45 }
 0x5a0   :  { %v2014_v30 = vmul.f32 %v2013_v50, %v2006_v3 }
 0x5a2   :  { %v2015_v44 = vadd.f32 %v2350_v45, %v2014_v30 }
 0x5a4   :  { %v2023_v13 = vperm.slane %v2015_v44, 0  ;;  %v2022_v37 = vrot.slane %v2015_v44, 1 }
 0x5a6   :  { %2025 = vrot.lane.b32.xlu2 %v2023_v13, %s2382_s7  ;;  %v2024_v1 = vperm.slane %v2022_v37, 0 }
 0x5a8   :  { %2027 = vrot.lane.b32.xlu0 %v2024_v1, %s2382_s7 }
 0x600   :  { %v2026_v0 = vpop.permute.xlu2 %2025 }
 0x601   :  { %2031 = vst.msk [vmem:[%s3567_s3] sm:$0x1] %vm315_vm2, %v2026_v0 }
 0x61a   :  { %v2028_v2 = vpop.permute.xlu0 %2027 }
 0x61b   :  { %2032 = vst.msk [vmem:[%s3567_s3 + $0x8] sm:$0x1] %vm315_vm2, %v2028_v2 }

</bundles_post_ra>
